<compile_context>
chip_gen: v7x
topology: tpu7x:2x2x1
jax: 0.10.0
libtpu: 0.0.40
codegen_flags: <defaults>
</compile_context>

<pallas_src>
import jax
import jax.numpy as jnp
from jax.experimental import pallas as pl
from jax.experimental.pallas import tpu as pltpu


def _bottleneck_kernel(x_ref, w1_ref, b1_ref, w2_ref, b2_ref, w3_ref, b3_ref,
                       out_ref, ypad_ref):
    H = ypad_ref.shape[0] - 2
    W = ypad_ref.shape[1] - 2
    width = ypad_ref.shape[2]

    xf = x_ref[0]                                   # (H*W, Cin) float32 (kept for residual)
    x_bf = xf.astype(jnp.bfloat16)

    # ---- conv1 (1x1, BN scale pre-folded into w1) + shift + ReLU ----
    y1 = jnp.dot(x_bf, w1_ref[...], preferred_element_type=jnp.float32)
    y1 = jnp.maximum(y1 + b1_ref[...], 0.0)

    # ---- stage y1 into the persistent padded scratch ----
    # Re-zero only the halo each step (tiny stores); interior is fully overwritten.
    # (Zeroing once under program_id==0 would be unsafe if the batch axis is sharded
    #  across TensorCores, so we pay the cheap per-step halo clear instead.)
    ypad_ref[0:1, :, :] = jnp.zeros((1, W + 2, width), jnp.bfloat16)
    ypad_ref[H + 1:H + 2, :, :] = jnp.zeros((1, W + 2, width), jnp.bfloat16)
    ypad_ref[:, 0:1, :] = jnp.zeros((H + 2, 1, width), jnp.bfloat16)
    ypad_ref[:, W + 1:W + 2, :] = jnp.zeros((H + 2, 1, width), jnp.bfloat16)
    # W is a multiple of 8 in the caller, so this reshape is a free sublane split.
    ypad_ref[1:H + 1, 1:W + 1, :] = y1.astype(jnp.bfloat16).reshape(H, W, width)

    # ---- conv2 (3x3, stride=1, pad=1) as one matmul with K = 9*width ----
    taps = [ypad_ref[kh:kh + H, kw:kw + W, :]
            for kh in range(3) for kw in range(3)]
    patch = jnp.concatenate(taps, axis=-1).reshape(H * W, 9 * width)
    y2 = jnp.dot(patch, w2_ref[...], preferred_element_type=jnp.float32)
    y2 = jnp.maximum(y2 + b2_ref[...], 0.0)

    # ---- conv3 (1x1) + shift + residual add + ReLU ----
    y3 = jnp.dot(y2.astype(jnp.bfloat16), w3_ref[...],
                 preferred_element_type=jnp.float32)
    y3 = y3 + b3_ref[...]
    out_ref[0] = jnp.maximum(y3 + xf, 0.0)          # identity path (inplanes == planes*4)


def bottleneck_pallas(x_nchw, w1_t, w2_t, w3_t, s1, b1, s2, b2, s3, b3):
    """x_nchw: (B, Cin, H, W) f32. w*_t are PyTorch OIHW conv weights; s*/b* are the
    folded inference-BN per-channel scale/shift vectors."""
    B, Cin, H, W = x_nchw.shape
    width = w1_t.shape[0]
    Cout = w3_t.shape[0]
    assert Cin == Cout, "identity residual requires inplanes == planes*expansion (upsample=None)"
    assert W % 8 == 0, "W must be a multiple of 8 for free sublane reshapes"

    # Fold BN scales into the conv weights' output-channel columns; cast to bf16 for MXU.
    w1 = (jnp.transpose(w1_t[:, :, 0, 0]) * s1[None, :]).astype(jnp.bfloat16)        # (Cin, width)
    w2 = jnp.transpose(w2_t, (2, 3, 1, 0)) * s2[None, None, None, :]                 # (kh, kw, cin, cout)
    w2 = w2.reshape(9 * width, width).astype(jnp.bfloat16)                           # K = 9*width
    w3 = (jnp.transpose(w3_t[:, :, 0, 0]) * s3[None, :]).astype(jnp.bfloat16)        # (width, Cout)
    bb1 = b1.reshape(1, width).astype(jnp.float32)
    bb2 = b2.reshape(1, width).astype(jnp.float32)
    bb3 = b3.reshape(1, Cout).astype(jnp.float32)

    # NCHW -> NHWC -> (B, H*W, C): channels on the 128-wide lane axis.
    # (For best performance keep activations in this layout across blocks instead of
    #  round-tripping through NCHW each call; here we convert at the boundary.)
    x = jnp.transpose(x_nchw, (0, 2, 3, 1)).astype(jnp.float32).reshape(B, H * W, Cin)

    out = pl.pallas_call(
        _bottleneck_kernel,
        out_shape=jax.ShapeDtypeStruct((B, H * W, Cout), jnp.float32),
        grid=(B,),
        in_specs=[
            pl.BlockSpec((1, H * W, Cin), lambda b: (b, 0, 0)),
            pl.BlockSpec((Cin, width), lambda b: (0, 0)),
            pl.BlockSpec((1, width), lambda b: (0, 0)),
            pl.BlockSpec((9 * width, width), lambda b: (0, 0)),
            pl.BlockSpec((1, width), lambda b: (0, 0)),
            pl.BlockSpec((width, Cout), lambda b: (0, 0)),
            pl.BlockSpec((1, Cout), lambda b: (0, 0)),
        ],
        out_specs=pl.BlockSpec((1, H * W, Cout), lambda b: (b, 0, 0)),
        scratch_shapes=[pltpu.VMEM((H + 2, W + 2, width), jnp.bfloat16)],
        compiler_params=pltpu.CompilerParams(dimension_semantics=("parallel",)),
    )(x, w1, bb1, w2, bb2, w3, bb3)

    out = out.reshape(B, H, W, Cout)
    return jnp.transpose(out, (0, 3, 1, 2))         # back to NCHW


# ---------------- deterministic parameter init + pure-JAX reference ----------------

def init_params(key, inplanes, planes):
    width = planes                                  # base_width=64, groups=1
    cout = planes * 4                               # expansion
    ks = jax.random.split(key, 6)
    w1_t = 0.1 * jax.random.normal(ks[0], (width, inplanes, 1, 1), jnp.float32)
    w2_t = 0.1 * jax.random.normal(ks[1], (width, width, 3, 3), jnp.float32)
    w3_t = 0.1 * jax.random.normal(ks[2], (cout, width, 1, 1), jnp.float32)

    def bn(k, c):
        k1, k2, k3, k4 = jax.random.split(k, 4)
        gamma = 1.0 + 0.1 * jax.random.normal(k1, (c,), jnp.float32)
        beta = 0.1 * jax.random.normal(k2, (c,), jnp.float32)
        mean = 0.1 * jax.random.normal(k3, (c,), jnp.float32)
        var = 0.5 + jax.random.uniform(k4, (c,), jnp.float32)
        scale = gamma / jnp.sqrt(var + 1e-5)        # BN folded (inference mode)
        shift = beta - mean * scale
        return scale, shift

    s1, b1 = bn(ks[3], width)
    s2, b2 = bn(ks[4], width)
    s3, b3 = bn(ks[5], cout)
    return w1_t, w2_t, w3_t, s1, b1, s2, b2, s3, b3


def bottleneck_ref(x, w1_t, w2_t, w3_t, s1, b1, s2, b2, s3, b3):
    conv = lambda y, w, pad: jax.lax.conv_general_dilated(
        y, w, (1, 1), [(pad, pad), (pad, pad)],
        dimension_numbers=('NCHW', 'OIHW', 'NCHW'))
    bn = lambda y, s, b: y * s[None, :, None, None] + b[None, :, None, None]
    y = jax.nn.relu(bn(conv(x, w1_t, 0), s1, b1))
    y = jax.nn.relu(bn(conv(y, w2_t, 1), s2, b2))
    y = bn(conv(y, w3_t, 0), s3, b3)
    return jax.nn.relu(y + x)


if __name__ == "__main__":
    B, inplanes, planes, H, W = 2, 16, 4, 16, 16    # inplanes == planes*4 -> identity path
    key = jax.random.PRNGKey(0)
    kx, kp = jax.random.split(key)
    x = jax.random.normal(kx, (B, inplanes, H, W), jnp.float32)

    w1_t, w2_t, w3_t, s1, b1, s2, b2, s3, b3 = init_params(kp, inplanes, planes)

    out = bottleneck_pallas(x, w1_t, w2_t, w3_t, s1, b1, s2, b2, s3, b3)
    out = jax.block_until_ready(out)

    ref = bottleneck_ref(x, w1_t, w2_t, w3_t, s1, b1, s2, b2, s3, b3)
    ref = jax.block_until_ready(ref)

    assert out.shape == (B, planes * 4, H, W)
    # bf16 MXU operands with f32 accumulation -> relaxed tolerance vs. the f32 reference.
    max_err = float(jnp.max(jnp.abs(out - ref)))
    assert jnp.allclose(out, ref, atol=5e-2, rtol=5e-2), max_err
    print("KERNEL_OK")
</pallas_src>

<mosaic_0001>
module attributes {stable_mosaic.version = 11 : i64} {
  func.func @_bottleneck_kernel(%arg0: i32, %arg1: memref<1x256x16xf32, #tpu.memory_space<vmem>>, %arg2: memref<16x4xbf16, #tpu.memory_space<vmem>>, %arg3: memref<1x4xf32, #tpu.memory_space<vmem>>, %arg4: memref<36x4xbf16, #tpu.memory_space<vmem>>, %arg5: memref<1x4xf32, #tpu.memory_space<vmem>>, %arg6: memref<4x16xbf16, #tpu.memory_space<vmem>>, %arg7: memref<1x16xf32, #tpu.memory_space<vmem>>, %arg8: memref<1x256x16xf32, #tpu.memory_space<vmem>>, %arg9: memref<18x18x4xbf16, #tpu.memory_space<vmem>>) attributes {dimension_semantics = [#tpu.dimension_semantics<parallel>], iteration_bounds = array<i64: 2>, scalar_prefetch = 0 : i64, scratch_operands = 1 : i64, tpu.core_type = #tpu.core_type<tc>, window_params = [{transform_indices = @transform_0, window_bounds = array<i64: 1, 256, 16>}, {pipeline_mode = #tpu.pipeline_mode<synchronous>, transform_indices = @transform_1, window_bounds = array<i64: 16, 4>}, {pipeline_mode = #tpu.pipeline_mode<synchronous>, transform_indices = @transform_2, window_bounds = array<i64: 1, 4>}, {pipeline_mode = #tpu.pipeline_mode<synchronous>, transform_indices = @transform_3, window_bounds = array<i64: 36, 4>}, {pipeline_mode = #tpu.pipeline_mode<synchronous>, transform_indices = @transform_4, window_bounds = array<i64: 1, 4>}, {pipeline_mode = #tpu.pipeline_mode<synchronous>, transform_indices = @transform_5, window_bounds = array<i64: 4, 16>}, {pipeline_mode = #tpu.pipeline_mode<synchronous>, transform_indices = @transform_6, window_bounds = array<i64: 1, 16>}, {transform_indices = @transform_7, window_bounds = array<i64: 1, 256, 16>}]} {
    %c0 = arith.constant 0 : index
    %c0_0 = arith.constant 0 : index
    %c0_1 = arith.constant 0 : index
    %0 = vector.load %arg1[%c0, %c0_0, %c0_1] : memref<1x256x16xf32, #tpu.memory_space<vmem>>, vector<1x256x16xf32>
    %1 = vector.shape_cast %0 : vector<1x256x16xf32> to vector<256x16xf32>
    %2 = arith.truncf %1 : vector<256x16xf32> to vector<256x16xbf16>
    %c0_2 = arith.constant 0 : index
    %c0_3 = arith.constant 0 : index
    %3 = vector.load %arg2[%c0_2, %c0_3] : memref<16x4xbf16, #tpu.memory_space<vmem>>, vector<16x4xbf16>
    %cst = arith.constant dense<0.000000e+00> : vector<256x4xf32>
    %4 = tpu.matmul %2, %3, %cst {dimension_numbers = #tpu.dot_dimension_numbers<[1], [0], [0], [1], [0, 0, 1, 1], [], []>} : vector<256x16xbf16>, vector<16x4xbf16>, vector<256x4xf32> -> vector<256x4xf32>
    %c0_4 = arith.constant 0 : index
    %c0_5 = arith.constant 0 : index
    %5 = vector.load %arg3[%c0_4, %c0_5] : memref<1x4xf32, #tpu.memory_space<vmem>>, vector<1x4xf32>
    %6 = vector.broadcast %5 : vector<1x4xf32> to vector<256x4xf32>
    %7 = arith.addf %4, %6 : vector<256x4xf32>
    %cst_6 = arith.constant 0.000000e+00 : f32
    %8 = vector.broadcast %cst_6 : f32 to vector<256x4xf32>
    %9 = arith.maximumf %7, %8 : vector<256x4xf32>
    %cst_7 = arith.constant 0.000000e+00 : bf16
    %10 = vector.broadcast %cst_7 : bf16 to vector<1x18x4xbf16>
    %c0_8 = arith.constant 0 : index
    %c0_9 = arith.constant 0 : index
    %c0_10 = arith.constant 0 : index
    %11 = vector.load %arg9[%c0_8, %c0_9, %c0_10] : memref<18x18x4xbf16, #tpu.memory_space<vmem>>, vector<1x18x4xbf16>
    tpu.vector_store %arg9[%c0_8, %c0_9, %c0_10], %10 {strides = array<i32>} : memref<18x18x4xbf16, #tpu.memory_space<vmem>>, vector<1x18x4xbf16>,
    %cst_11 = arith.constant 0.000000e+00 : bf16
    %12 = vector.broadcast %cst_11 : bf16 to vector<1x18x4xbf16>
    %c17 = arith.constant 17 : index
    %c0_12 = arith.constant 0 : index
    %c0_13 = arith.constant 0 : index
    %13 = vector.load %arg9[%c17, %c0_12, %c0_13] : memref<18x18x4xbf16, #tpu.memory_space<vmem>>, vector<1x18x4xbf16>
    tpu.vector_store %arg9[%c17, %c0_12, %c0_13], %12 {strides = array<i32>} : memref<18x18x4xbf16, #tpu.memory_space<vmem>>, vector<1x18x4xbf16>,
    %cst_14 = arith.constant 0.000000e+00 : bf16
    %14 = vector.broadcast %cst_14 : bf16 to vector<18x1x4xbf16>
    %c0_15 = arith.constant 0 : index
    %c0_16 = arith.constant 0 : index
    %c0_17 = arith.constant 0 : index
    %15 = vector.load %arg9[%c0_15, %c0_16, %c0_17] : memref<18x18x4xbf16, #tpu.memory_space<vmem>>, vector<18x1x4xbf16>
    tpu.vector_store %arg9[%c0_15, %c0_16, %c0_17], %14 {strides = array<i32>} : memref<18x18x4xbf16, #tpu.memory_space<vmem>>, vector<18x1x4xbf16>,
    %cst_18 = arith.constant 0.000000e+00 : bf16
    %16 = vector.broadcast %cst_18 : bf16 to vector<18x1x4xbf16>
    %c0_19 = arith.constant 0 : index
    %c17_20 = arith.constant 17 : index
    %c0_21 = arith.constant 0 : index
    %17 = vector.load %arg9[%c0_19, %c17_20, %c0_21] : memref<18x18x4xbf16, #tpu.memory_space<vmem>>, vector<18x1x4xbf16>
    tpu.vector_store %arg9[%c0_19, %c17_20, %c0_21], %16 {strides = array<i32>} : memref<18x18x4xbf16, #tpu.memory_space<vmem>>, vector<18x1x4xbf16>,
    %18 = arith.truncf %9 : vector<256x4xf32> to vector<256x4xbf16>
    %19 = vector.shape_cast %18 : vector<256x4xbf16> to vector<16x16x4xbf16>
    %c1 = arith.constant 1 : index
    %c1_22 = arith.constant 1 : index
    %c0_23 = arith.constant 0 : index
    %20 = vector.load %arg9[%c1, %c1_22, %c0_23] : memref<18x18x4xbf16, #tpu.memory_space<vmem>>, vector<16x16x4xbf16>
    tpu.vector_store %arg9[%c1, %c1_22, %c0_23], %19 {strides = array<i32>} : memref<18x18x4xbf16, #tpu.memory_space<vmem>>, vector<16x16x4xbf16>,
    %c0_24 = arith.constant 0 : index
    %c0_25 = arith.constant 0 : index
    %c0_26 = arith.constant 0 : index
    %21 = vector.load %arg9[%c0_24, %c0_25, %c0_26] : memref<18x18x4xbf16, #tpu.memory_space<vmem>>, vector<16x16x4xbf16>
    %c0_27 = arith.constant 0 : index
    %c1_28 = arith.constant 1 : index
    %c0_29 = arith.constant 0 : index
    %22 = vector.load %arg9[%c0_27, %c1_28, %c0_29] : memref<18x18x4xbf16, #tpu.memory_space<vmem>>, vector<16x16x4xbf16>
    %c0_30 = arith.constant 0 : index
    %c2 = arith.constant 2 : index
    %c0_31 = arith.constant 0 : index
    %23 = vector.load %arg9[%c0_30, %c2, %c0_31] : memref<18x18x4xbf16, #tpu.memory_space<vmem>>, vector<16x16x4xbf16>
    %c1_32 = arith.constant 1 : index
    %c0_33 = arith.constant 0 : index
    %c0_34 = arith.constant 0 : index
    %24 = vector.load %arg9[%c1_32, %c0_33, %c0_34] : memref<18x18x4xbf16, #tpu.memory_space<vmem>>, vector<16x16x4xbf16>
    %c1_35 = arith.constant 1 : index
    %c1_36 = arith.constant 1 : index
    %c0_37 = arith.constant 0 : index
    %25 = vector.load %arg9[%c1_35, %c1_36, %c0_37] : memref<18x18x4xbf16, #tpu.memory_space<vmem>>, vector<16x16x4xbf16>
    %c1_38 = arith.constant 1 : index
    %c2_39 = arith.constant 2 : index
    %c0_40 = arith.constant 0 : index
    %26 = vector.load %arg9[%c1_38, %c2_39, %c0_40] : memref<18x18x4xbf16, #tpu.memory_space<vmem>>, vector<16x16x4xbf16>
    %c2_41 = arith.constant 2 : index
    %c0_42 = arith.constant 0 : index
    %c0_43 = arith.constant 0 : index
    %27 = vector.load %arg9[%c2_41, %c0_42, %c0_43] : memref<18x18x4xbf16, #tpu.memory_space<vmem>>, vector<16x16x4xbf16>
    %c2_44 = arith.constant 2 : index
    %c1_45 = arith.constant 1 : index
    %c0_46 = arith.constant 0 : index
    %28 = vector.load %arg9[%c2_44, %c1_45, %c0_46] : memref<18x18x4xbf16, #tpu.memory_space<vmem>>, vector<16x16x4xbf16>
    %c2_47 = arith.constant 2 : index
    %c2_48 = arith.constant 2 : index
    %c0_49 = arith.constant 0 : index
    %29 = vector.load %arg9[%c2_47, %c2_48, %c0_49] : memref<18x18x4xbf16, #tpu.memory_space<vmem>>, vector<16x16x4xbf16>
    %30 = tpu.concatenate %21, %22, %23, %24, %25, %26, %27, %28, %29 in 2 : vector<16x16x4xbf16>, vector<16x16x4xbf16>, vector<16x16x4xbf16>, vector<16x16x4xbf16>, vector<16x16x4xbf16>, vector<16x16x4xbf16>, vector<16x16x4xbf16>, vector<16x16x4xbf16>, vector<16x16x4xbf16> -> vector<16x16x36xbf16>
    %31 = vector.shape_cast %30 : vector<16x16x36xbf16> to vector<256x36xbf16>
    %c0_50 = arith.constant 0 : index
    %c0_51 = arith.constant 0 : index
    %32 = vector.load %arg4[%c0_50, %c0_51] : memref<36x4xbf16, #tpu.memory_space<vmem>>, vector<36x4xbf16>
    %cst_52 = arith.constant dense<0.000000e+00> : vector<256x4xf32>
    %33 = tpu.matmul %31, %32, %cst_52 {dimension_numbers = #tpu.dot_dimension_numbers<[1], [0], [0], [1], [0, 0, 1, 1], [], []>} : vector<256x36xbf16>, vector<36x4xbf16>, vector<256x4xf32> -> vector<256x4xf32>
    %c0_53 = arith.constant 0 : index
    %c0_54 = arith.constant 0 : index
    %34 = vector.load %arg5[%c0_53, %c0_54] : memref<1x4xf32, #tpu.memory_space<vmem>>, vector<1x4xf32>
    %35 = vector.broadcast %34 : vector<1x4xf32> to vector<256x4xf32>
    %36 = arith.addf %33, %35 : vector<256x4xf32>
    %cst_55 = arith.constant 0.000000e+00 : f32
    %37 = vector.broadcast %cst_55 : f32 to vector<256x4xf32>
    %38 = arith.maximumf %36, %37 : vector<256x4xf32>
    %39 = arith.truncf %38 : vector<256x4xf32> to vector<256x4xbf16>
    %c0_56 = arith.constant 0 : index
    %c0_57 = arith.constant 0 : index
    %40 = vector.load %arg6[%c0_56, %c0_57] : memref<4x16xbf16, #tpu.memory_space<vmem>>, vector<4x16xbf16>
    %cst_58 = arith.constant dense<0.000000e+00> : vector<256x16xf32>
    %41 = tpu.matmul %39, %40, %cst_58 {dimension_numbers = #tpu.dot_dimension_numbers<[1], [0], [0], [1], [0, 0, 1, 1], [], []>} : vector<256x4xbf16>, vector<4x16xbf16>, vector<256x16xf32> -> vector<256x16xf32>
    %c0_59 = arith.constant 0 : index
    %c0_60 = arith.constant 0 : index
    %42 = vector.load %arg7[%c0_59, %c0_60] : memref<1x16xf32, #tpu.memory_space<vmem>>, vector<1x16xf32>
    %43 = vector.broadcast %42 : vector<1x16xf32> to vector<256x16xf32>
    %44 = arith.addf %41, %43 : vector<256x16xf32>
    %45 = arith.addf %44, %1 : vector<256x16xf32>
    %cst_61 = arith.constant 0.000000e+00 : f32
    %46 = vector.broadcast %cst_61 : f32 to vector<256x16xf32>
    %47 = arith.maximumf %45, %46 : vector<256x16xf32>
    %c0_62 = arith.constant 0 : index
    %c0_63 = arith.constant 0 : index
    %c0_64 = arith.constant 0 : index
    %48 = vector.load %arg8[%c0_62, %c0_63, %c0_64] : memref<1x256x16xf32, #tpu.memory_space<vmem>>, vector<1x256x16xf32>
    %49 = vector.shape_cast %48 : vector<1x256x16xf32> to vector<256x16xf32>
    %50 = vector.shape_cast %47 : vector<256x16xf32> to vector<1x256x16xf32>
    tpu.vector_store %arg8[%c0_62, %c0_63, %c0_64], %50 {strides = array<i32>} : memref<1x256x16xf32, #tpu.memory_space<vmem>>, vector<1x256x16xf32>,
    return
  }
  func.func @transform_0(%arg0: i32) -> (i32, i32, i32) {
    %c0_i32 = arith.constant 0 : i32
    %c0_i32_0 = arith.constant 0 : i32
    %c0_i32_1 = arith.constant 0 : i32
    return %arg0, %c0_i32, %c0_i32_0 : i32, i32, i32
  }
  func.func @transform_1(%arg0: i32) -> (i32, i32) {
    %c0_i32 = arith.constant 0 : i32
    %c0_i32_0 = arith.constant 0 : i32
    %c0_i32_1 = arith.constant 0 : i32
    return %c0_i32, %c0_i32_0 : i32, i32
  }
  func.func @transform_2(%arg0: i32) -> (i32, i32) {
    %c0_i32 = arith.constant 0 : i32
    %c0_i32_0 = arith.constant 0 : i32
    %c0_i32_1 = arith.constant 0 : i32
    return %c0_i32, %c0_i32_0 : i32, i32
  }
  func.func @transform_3(%arg0: i32) -> (i32, i32) {
    %c0_i32 = arith.constant 0 : i32
    %c0_i32_0 = arith.constant 0 : i32
    %c0_i32_1 = arith.constant 0 : i32
    return %c0_i32, %c0_i32_0 : i32, i32
  }
  func.func @transform_4(%arg0: i32) -> (i32, i32) {
    %c0_i32 = arith.constant 0 : i32
    %c0_i32_0 = arith.constant 0 : i32
    %c0_i32_1 = arith.constant 0 : i32
    return %c0_i32, %c0_i32_0 : i32, i32
  }
  func.func @transform_5(%arg0: i32) -> (i32, i32) {
    %c0_i32 = arith.constant 0 : i32
    %c0_i32_0 = arith.constant 0 : i32
    %c0_i32_1 = arith.constant 0 : i32
    return %c0_i32, %c0_i32_0 : i32, i32
  }
  func.func @transform_6(%arg0: i32) -> (i32, i32) {
    %c0_i32 = arith.constant 0 : i32
    %c0_i32_0 = arith.constant 0 : i32
    %c0_i32_1 = arith.constant 0 : i32
    return %c0_i32, %c0_i32_0 : i32, i32
  }
  func.func @transform_7(%arg0: i32) -> (i32, i32, i32) {
    %c0_i32 = arith.constant 0 : i32
    %c0_i32_0 = arith.constant 0 : i32
    %c0_i32_1 = arith.constant 0 : i32
    return %arg0, %c0_i32, %c0_i32_0 : i32, i32, i32
  }
}

</mosaic_0001>

<bundles_post_ra>
// kernel: tpu_custom_call.1
= control target key start
LH: loop header
LB: loop body
LE: loop exit
PB: predicated region body
PF: predicated region fallthrough
CT: control target
= control target key end

     0   :  { %s4538_s24 = smov 0   ;;  %s6354_s0 = inlined_call_operand.vmem [shape: f32[2,256,16], index: 0, kind: input, shape index: {}]   ;;  %s6355_s1 = inlined_call_operand.vmem [shape: bf16[16,4], index: 1, kind: input, shape index: {}]   ;;  %s6356_s2 = inlined_call_operand.vmem [shape: f32[1,4], index: 2, kind: input, shape index: {}]   ;;  %s6357_s3 = inlined_call_operand.vmem [shape: bf16[36,4], index: 3, kind: input, shape index: {}]   ;;  %s6358_s4 = inlined_call_operand.vmem [shape: f32[1,4], index: 4, kind: input, shape index: {}]   ;;  %s6359_s5 = inlined_call_operand.vmem [shape: bf16[4,16], index: 5, kind: input, shape index: {}]   ;;  %s6360_s6 = inlined_call_operand.vmem [shape: f32[1,16], index: 6, kind: input, shape index: {}]   ;;  %s6361_s7 = inlined_call_operand.vmem [shape: f32[2,256,16], index: 7, kind: output, shape index: {}]  }
   0x1 LB: > { %s3846_s25 = sadd.s32 4294967295, %s4487_s24   ;;  %p3850_p0 = scmp.ge.s32.totalorder %s4487_s24, 1  ;;  %s4487_s24 = sphi %s4538_s24, %s17_s24  }
   0x2   : > { %p237_p1 = scmp.lt.s32.totalorder %s4487_s24, 3 }
   0x4   : > { %p238_p2 = pnand %p3850_p0, %p237_p1 }
   0x6   : > { %241 = sbr.rel (%p238_p2) target bundleno = 1075 (0x433), region = 48 }
   0xd   : > { %v4302_v0 = vld [vmem:[%s6355_s1] sm:$0xff]   ;;  %p269_p3 = scmp.lt.s32.totalorder %s3846_s25, 1  ;;  %vm343_vm0 = vcmask 130048   ;;  %vm585_vm1 = vcmask 27648   ;;  %vm588_vm2 = vcmask 24576   ;;  %v6375_v56 = vmov 0 }
   0xe   : > { %4175 = vmatprep.subr.bf16.mxu0 %v4302_v0  ;;  %4281 = vmatprep.subr.bf16.mxu1 %v4302_v0  ;;  %vm595_vm3 = vsmask.f32 256  ;;  %v603_v49 = vld [vmem:[#allocation2 + $0x18] sm:$0x1]  ;;  %vm651_vm4 = vsmask.f32 7938 }
   0xf   : > { %s6446_s25 = smov (!%p269_p3, %s3846_s25), 1  ;;  %4176 = vmatpush3.bf16.msra.mxu0 %v4302_v0  ;;  %4282 = vmatpush3.bf16.msra.mxu1 %v4302_v0  ;;  %vm4609_vm5 = vmand %vm588_vm2, %vm595_vm3  ;;  %v600_v52 = vld [vmem:[#allocation2 + $0xc] sm:$0x1]  ;;  %v627_v53 = vld [vmem:[#allocation2 + $0x78] sm:$0x1]  ;;  %v4489_v57 = vmov 0  }
  0x10   : > { %s4088_s28 = sshll.u32 %s6446_s25, 8  ;;  %v604_v51 = vsel %vm4609_vm5, 0, %v603_v49  ;;  %v601_v54 = vsel %vm4609_vm5, 0, %v600_v52  ;;  %v624_v55 = vld [vmem:[#allocation2 + $0x6c] sm:$0x1]  ;;  %vm4619_vm6 = vmand %vm588_vm2, %vm651_vm4  ;;  %v628_v58 = vsel %vm4609_vm5, 0, %v627_v53 }
  0x11   : > { %s4557_s8 = scalar_lea.vmem %s6354_s0, %s4088_s28  ;;  %605 = vst [vmem:[#allocation2 + $0x18] sm:$0x1] %v604_v51  ;;  %v6376_v56 = vsel %vm4619_vm6, 4294967295, %v6375_v56  ;;  %586 = vst.msk [vmem:[#allocation2] sm:$0xf] %vm585_vm1, %v4489_v57  ;;  %v625_v59 = vsel %vm4609_vm5, 0, %v624_v55 }
  0x12   : > { %v280_v1 = vld [vmem:[%s4557_s8] sm:$0xff]  ;;  %v281_v2 = vld [vmem:[%s4557_s8 + $0x8] sm:$0xff]  ;;  %v282_v6 = vld [vmem:[%s4557_s8 + $0x10] sm:$0xff]  ;;  %6377 = vst [vmem:[#allocation3_spill] sm:$0xff] %v6376_v56  ;;  %vm1834_vm7 = vcmask 1046528   ;;  %s4490_s9 = smov 8  }
  0x13   : > { %v296_v3 = vld [vmem:[%s4557_s8 + $0x80] sm:$0xff]  ;;  %v312_v4 = vpack.c.bf16 %v281_v2, %v280_v1  ;;  %v297_v5 = vld [vmem:[%s4557_s8 + $0x88] sm:$0xff]  ;;  %v283_v7 = vld [vmem:[%s4557_s8 + $0x18] sm:$0xff]  ;;  %587 = vst.msk [vmem:[#allocation2 + $0x4] sm:$0xf] %vm585_vm1, %v4489_v57  ;;  %s4491_s10 = smov 4  }
  0x14   : > { %v320_v8 = vpack.c.bf16 %v297_v5, %v296_v3  ;;  %v313_v9 = vpack.c.bf16 %v283_v7, %v282_v6  ;;  %v298_v10 = vld [vmem:[%s4557_s8 + $0x90] sm:$0xff]  ;;  %v299_v11 = vld [vmem:[%s4557_s8 + $0x98] sm:$0xff]  ;;  %v284_v12 = vld [vmem:[%s4557_s8 + $0x20] sm:$0xff]  ;;  %589 = vst.msk [vmem:[#allocation2 + $0x8] sm:$0x1] %vm588_vm2, %v4489_v57  ;;  %s4492_s13 = smov 24  }
  0x15   : > { %4177 = vmatprep.mubr.msk.bf16.mxu0 %vm343_vm0, %v312_v4  ;;  %v321_v13 = vpack.c.bf16 %v299_v11, %v298_v10  ;;  %v285_v14 = vld [vmem:[%s4557_s8 + $0x28] sm:$0xff]  ;;  %v300_v16 = vld [vmem:[%s4557_s8 + $0xa0] sm:$0xff]  ;;  %v286_v18 = vld [vmem:[%s4557_s8 + $0x30] sm:$0xff]  ;;  %591 = vst.msk [vmem:[#allocation2 + $0xcc] sm:$0xf] %vm585_vm1, %v4489_v57  ;;  %s4493_s14 = smov 12  }
  0x16   : > { %4193 = vmatprep.mubr.msk.bf16.mxu1 %vm343_vm0, %v320_v8  ;;  %4178 = vmatmul.mubr.msk.bf16.vlgmr.msra.gmra.mrb[0].mxu0 %vm343_vm0, %v313_v9  ;;  %v314_v15 = vpack.c.bf16 %v285_v14, %v284_v12  ;;  %v301_v17 = vld [vmem:[%s4557_s8 + $0xa8] sm:$0xff]  ;;  %v287_v19 = vld [vmem:[%s4557_s8 + $0x38] sm:$0xff]  ;;  %v302_v21 = vld [vmem:[%s4557_s8 + $0xb0] sm:$0xff]  ;;  %592 = vst.msk [vmem:[#allocation2 + $0xd0] sm:$0xf] %vm585_vm1, %v4489_v57  ;;  %s4494_s15 = smov 20  }
  0x17   : > { %4194 = vmatmul.mubr.msk.bf16.vlgmr.msra.gmra.mrb[0].mxu1 %vm343_vm0, %v321_v13  ;;  %v322_v20 = vpack.c.bf16 %v301_v17, %v300_v16  ;;  %v303_v22 = vld [vmem:[%s4557_s8 + $0xb8] sm:$0xff]  ;;  %v288_v23 = vld [vmem:[%s4557_s8 + $0x40] sm:$0xff]  ;;  %v289_v24 = vld [vmem:[%s4557_s8 + $0x48] sm:$0xff]  ;;  %v315_v27 = vpack.c.bf16 %v287_v19, %v286_v18  ;;  %593 = vst.msk [vmem:[#allocation2 + $0xd4] sm:$0x1] %vm588_vm2, %v4489_v57  ;;  %s4495_s16 = smov 32  }
  0x18   : > { %4181 = vmatprep.mubr.msk.bf16.mxu0 %vm343_vm0, %v314_v15  ;;  %v304_v25 = vld [vmem:[%s4557_s8 + $0xc0] sm:$0xff]  ;;  %v305_v26 = vld [vmem:[%s4557_s8 + $0xc8] sm:$0xff]  ;;  %v323_v28 = vpack.c.bf16 %v303_v22, %v302_v21  ;;  %v316_v29 = vpack.c.bf16 %v289_v24, %v288_v23  ;;  %v290_v31 = vld [vmem:[%s4557_s8 + $0x50] sm:$0xff]  ;;  %602 = vst [vmem:[#allocation2 + $0xc] sm:$0x1] %v601_v54  ;;  %s4496_s17 = smov 16  }
  0x19   : > { %4197 = vmatprep.mubr.msk.bf16.mxu1 %vm343_vm0, %v322_v20  ;;  %v324_v30 = vpack.c.bf16 %v305_v26, %v304_v25  ;;  %v291_v32 = vld [vmem:[%s4557_s8 + $0x58] sm:$0xff]  ;;  %v306_v33 = vld [vmem:[%s4557_s8 + $0xd0] sm:$0xff]  ;;  %v292_v35 = vld [vmem:[%s4557_s8 + $0x60] sm:$0xff]  ;;  %629 = vst [vmem:[#allocation2 + $0x78] sm:$0x1] %v628_v58  ;;  %s4497_s18 = smov 28  }
  0x1a   : > { %v307_v34 = vld [vmem:[%s4557_s8 + $0xd8] sm:$0xff]  ;;  %v293_v36 = vld [vmem:[%s4557_s8 + $0x68] sm:$0xff]  ;;  %v308_v37 = vld [vmem:[%s4557_s8 + $0xe0] sm:$0xff]  ;;  %v317_v39 = vpack.c.bf16 %v291_v32, %v290_v31  ;;  %626 = vst [vmem:[#allocation2 + $0x6c] sm:$0x1] %v625_v59  ;;  %vm2939_vm12 = vcmask 31744  }
  0x1b   : > { %v309_v38 = vld [vmem:[%s4557_s8 + $0xe8] sm:$0xff]  ;;  %v325_v40 = vpack.c.bf16 %v307_v34, %v306_v33  ;;  %v318_v41 = vpack.c.bf16 %v293_v36, %v292_v35  ;;  %v294_v43 = vld [vmem:[%s4557_s8 + $0x70] sm:$0xff]  ;;  %v295_v44 = vld [vmem:[%s4557_s8 + $0x78] sm:$0xff]  ;;  %vm1561_vm8 = vsmask.f32 7424  ;;  %vm2972_vm13 = vcmask 64512  }
  0x1c   : > { %v326_v42 = vpack.c.bf16 %v309_v38, %v308_v37  ;;  %v310_v45 = vld [vmem:[%s4557_s8 + $0xf0] sm:$0xff]  ;;  %v311_v46 = vld [vmem:[%s4557_s8 + $0xf8] sm:$0xff]  ;;  %v319_v47 = vpack.c.bf16 %v295_v44, %v294_v43  ;;  %v659_v60 = vld [vmem:[#allocation2 + $0x20] sm:$0x1]  ;;  %vm803_vm9 = vsmask.f32 4368 }
  0x1d   : > { %v327_v48 = vpack.c.bf16 %v311_v46, %v310_v45  ;;  %v683_v61 = vld [vmem:[#allocation2 + $0x80] sm:$0x1]  ;;  %v660_v62 = vsel %vm4619_vm6, 0, %v659_v60  ;;  %v656_v0 = vld [vmem:[#allocation2 + $0x14] sm:$0x1]  ;;  %vm4704_vm10 = vmand %vm585_vm1, %vm651_vm4  ;;  %vm3005_vm14 = vcmask 97280  }
  0x1e   : > { %4182 = vmatmul.mubr.msk.bf16.gmra.mrb[4].mxu0 %vm343_vm0, %v315_v27  ;;  %v684_v63 = vsel %vm4619_vm6, 0, %v683_v61  ;;  %661 = vst [vmem:[#allocation2 + $0x20] sm:$0x1] %v660_v62  ;;  %v657_v1 = vsel %vm4619_vm6, 0, %v656_v0  ;;  %v597_v2 = vld [vmem:[#allocation2] sm:$0x1]  ;;  %vm4719_vm11 = vmor %vm595_vm3, %vm803_vm9 }
  0x1f   : > { %4198 = vmatmul.mubr.msk.bf16.gmra.mrb[4].mxu1 %vm343_vm0, %v323_v28  ;;  %4185 = vmatprep.mubr.msk.bf16.mxu0 %vm343_vm0, %v316_v29  ;;  %685 = vst [vmem:[#allocation2 + $0x80] sm:$0x1] %v684_v63  ;;  %658 = vst [vmem:[#allocation2 + $0x14] sm:$0x1] %v657_v1  ;;  %v598_v3 = vsel %vm4609_vm5, 0, %v597_v2  ;;  %vm3070_vm15 = vcmask 162816  }
  0x20   : > { %4201 = vmatprep.mubr.msk.bf16.mxu1 %vm343_vm0, %v324_v30  ;;  %599 = vst [vmem:[#allocation2] sm:$0x1] %v598_v3  ;;  %v653_v4 = vld [vmem:[#allocation2 + $0x8] sm:$0x1]  ;;  %v680_v5 = vld [vmem:[#allocation2 + $0x74] sm:$0x1] }
  0x21   : > { %v654_v6 = vsel %vm4619_vm6, 0, %v653_v4  ;;  %v681_v7 = vsel %vm4619_vm6, 0, %v680_v5  ;;  %v1241_v8 = vld [vmem:[#allocation2 + $0x4] sm:$0xf]  ;;  %v1288_v13 = vld [vmem:[#allocation2] sm:$0xe] }
  0x22   : > { %655 = vst [vmem:[#allocation2 + $0x8] sm:$0x1] %v654_v6  ;;  %682 = vst [vmem:[#allocation2 + $0x74] sm:$0x1] %v681_v7  ;;  %v3937_v14 = vcombine.low %v1288_v13, %v1241_v8  ;;  %v609_v24 = vld [vmem:[#allocation2 + $0x30] sm:$0x1] }
  0x23   : > { %v606_v25 = vld [vmem:[#allocation2 + $0x24] sm:$0x1]  ;;  %v665_v26 = vld [vmem:[#allocation2 + $0x38] sm:$0x1]  ;;  %v610_v27 = vsel %vm4609_vm5, 0, %v609_v24  ;;  %vm3136_vm2 = vcmask 228352  }
  0x24   : > { %v1835_v19 = vrot.slane %v3937_v14, 1  ;;  %v607_v28 = vsel %vm4609_vm5, 0, %v606_v25  ;;  %v666_v29 = vsel %vm4619_vm6, 0, %v665_v26  ;;  %v662_v30 = vld [vmem:[#allocation2 + $0x2c] sm:$0x1]  ;;  %vm3169_vm3 = vcmask 261120  }
  0x25   : > { %611 = vst [vmem:[#allocation2 + $0x30] sm:$0x1] %v610_v27  ;;  %608 = vst [vmem:[#allocation2 + $0x24] sm:$0x1] %v607_v28  ;;  %v663_v31 = vsel %vm4619_vm6, 0, %v662_v30  ;;  %vm3229_vm4 = vcmask 293888  }
  0x26   : > { %4186 = vmatmul.mubr.msk.bf16.gmra.mrb[8].mxu0 %vm343_vm0, %v317_v39  ;;  %667 = vst [vmem:[#allocation2 + $0x38] sm:$0x1] %v666_v29  ;;  %664 = vst [vmem:[#allocation2 + $0x2c] sm:$0x1] %v663_v31  ;;  %v633_v32 = vld [vmem:[#allocation2 + $0x90] sm:$0x1] }
  0x27   : > { %4202 = vmatmul.mubr.msk.bf16.gmra.mrb[8].mxu1 %vm343_vm0, %v325_v40  ;;  %4189 = vmatprep.mubr.msk.bf16.mxu0 %vm343_vm0, %v318_v41  ;;  %v1240_v9 = vld [vmem:[#allocation2] sm:$0xf]  ;;  %v634_v33 = vsel %vm4609_vm5, 0, %v633_v32  ;;  %v630_v34 = vld [vmem:[#allocation2 + $0x84] sm:$0x1]  ;;  %vm3262_vm9 = vcmask 1041408  }
  0x28   : > { %4205 = vmatprep.mubr.msk.bf16.mxu1 %vm343_vm0, %v326_v42  ;;  %v4645_v10 = vcombine.low %v1240_v9, %v1241_v8  ;;  %635 = vst [vmem:[#allocation2 + $0x90] sm:$0x1] %v634_v33  ;;  %v631_v35 = vsel %vm4609_vm5, 0, %v630_v34  ;;  %v689_v36 = vld [vmem:[#allocation2 + $0x98] sm:$0x1] }
  0x29   : > { %v4303_v11 = vld [vmem:[#allocation2 + $0x8] ss:$0 sps:$4 sm:$0x11]   ;;  %632 = vst [vmem:[#allocation2 + $0x84] sm:$0x1] %v631_v35  ;;  %v690_v37 = vsel %vm4619_vm6, 0, %v689_v36 }
  0x2a   : > { %6378 = vst [vmem:[#allocation4_spill] sm:$0xff] %v4645_v10  ;;  %v1565_v12 = vshll.u32 %v4645_v10, 16  ;;  %v1836_v15 = vrot.slane %v4303_v11, 1  ;;  %v1563_v16 = vshrl.u32 %v4645_v10, 16  ;;  %v1570_v18 = vshll.u32 %v4303_v11, 16 }
  0x2b   : > { %v686_v38 = vld [vmem:[#allocation2 + $0x8c] sm:$0x1]  ;;  %691 = vst [vmem:[#allocation2 + $0x98] sm:$0x1] %v690_v37  ;;  %v615_v40 = vld [vmem:[#allocation2 + $0x48] sm:$0x1] }
  0x2c   : > { %v1567_v17 = vrot.slane %v1565_v12, 1  ;;  %v1572_v21 = vrot.slane %v1570_v18, 1  ;;  %v1837_v22 = vsel %vm1834_vm7, %v1835_v19, %v1836_v15  ;;  %v687_v39 = vsel %vm4619_vm6, 0, %v686_v38  ;;  %v612_v42 = vld [vmem:[#allocation2 + $0x3c] sm:$0x1] }
  0x2d   : > { %1883 = vrot.lane.b32.xlu1 %v1837_v22, %s4490_s9  ;;  %688 = vst [vmem:[#allocation2 + $0x8c] sm:$0x1] %v687_v39  ;;  %v616_v41 = vsel %vm4609_vm5, 0, %v615_v40  ;;  %v671_v43 = vld [vmem:[#allocation2 + $0x50] sm:$0x1]  ;;  %v613_v45 = vsel %vm4609_vm5, 0, %v612_v42 }
  0x2e   : > { %4190 = vmatmul.mubr.msk.bf16.gmra.mrb[12].mxu0 %vm343_vm0, %v319_v47  ;;  %v1568_v20 = vor.u32 %v1567_v17, %v1563_v16  ;;  %617 = vst [vmem:[#allocation2 + $0x48] sm:$0x1] %v616_v41  ;;  %v668_v44 = vld [vmem:[#allocation2 + $0x44] sm:$0x1]  ;;  %v672_v46 = vsel %vm4619_vm6, 0, %v671_v43 }
  0x2f   : > { %4206 = vmatmul.mubr.msk.bf16.gmra.mrb[12].mxu1 %vm343_vm0, %v327_v48  ;;  %v669_v47 = vsel %vm4619_vm6, 0, %v668_v44  ;;  %614 = vst [vmem:[#allocation2 + $0x3c] sm:$0x1] %v613_v45  ;;  %673 = vst [vmem:[#allocation2 + $0x50] sm:$0x1] %v672_v46 }
  0x30   : > { %v1573_v23 = vsel %vm1561_vm8, %v1568_v20, %v1572_v21  ;;  %670 = vst [vmem:[#allocation2 + $0x44] sm:$0x1] %v669_v47  ;;  %v639_v48 = vld [vmem:[#allocation2 + $0xa8] sm:$0x1]  ;;  %v636_v51 = vld [vmem:[#allocation2 + $0x9c] sm:$0x1] }
  0x31   : > { %1754 = vrot.lane.b32.xlu0 %v1573_v23, %s4491_s10  ;;  %v640_v49 = vsel %vm4609_vm5, 0, %v639_v48  ;;  %v695_v52 = vld [vmem:[#allocation2 + $0xb0] sm:$0x1]  ;;  %v692_v53 = vld [vmem:[#allocation2 + $0xa4] sm:$0x1]  ;;  %v637_v54 = vsel %vm4609_vm5, 0, %v636_v51 }
  0x32   : > { %641 = vst [vmem:[#allocation2 + $0xa8] sm:$0x1] %v640_v49  ;;  %v696_v55 = vsel %vm4619_vm6, 0, %v695_v52  ;;  %v693_v57 = vsel %vm4619_vm6, 0, %v692_v53  ;;  %638 = vst [vmem:[#allocation2 + $0x9c] sm:$0x1] %v637_v54 }
  0x33   : > { %697 = vst [vmem:[#allocation2 + $0xb0] sm:$0x1] %v696_v55  ;;  %694 = vst [vmem:[#allocation2 + $0xa4] sm:$0x1] %v693_v57  ;;  %v4688_v58 = vld [vmem:[%s6356_s2] ss:$0 sm:$0xff] }
  0x34   : > { %v1135_v25 = vld [vmem:[#allocation2 + $0x18] sm:$0xf]  ;;  %v1128_v32 = vld [vmem:[#allocation2 + $0xc] sm:$0xf] }
  0x35   : > { %v1191_v31 = vld [vmem:[#allocation2 + $0x78] sm:$0xf]  ;;  %v1184_v55 = vld [vmem:[#allocation2 + $0x6c] sm:$0xf] }
  0xe9   : > { %v4179_v59 = vpop.f32.mrb[0].mxu0 }
  0xea   : > { %v435_v60 = vadd.f32 %v4179_v59, %v4688_v58  ;;  %v4195_v61 = vpop.f32.mrb[0].mxu1  ;;  %v426_v62 = vpop.f32.mrb[1].mxu0 }
  0xeb   : > { %v499_v63 = vadd.f32 %v4195_v61, %v4688_v58  ;;  %v427_v0 = vadd.f32 %v4688_v58, %v426_v62  ;;  %v490_v1 = vpop.f32.mrb[1].mxu1  ;;  %v4180_v2 = vpop.f32.mrb[2].mxu0 }
  0xec   : > { %v555_v3 = vmax.f32 %v435_v60, 0.0  ;;  %v491_v4 = vadd.f32 %v4688_v58, %v490_v1  ;;  %v438_v5 = vadd.f32 %v4180_v2, %v4688_v58  ;;  %v4196_v6 = vpop.f32.mrb[2].mxu1  ;;  %v429_v7 = vpop.f32.mrb[3].mxu0  ;;  %v1139_v1 = vld [vmem:[#allocation2 + $0x20] sm:$0x1] }
  0xed   : > { %v571_v8 = vmax.f32 %v499_v63, 0.0  ;;  %v553_v9 = vmax.f32 %v427_v0, 0.0  ;;  %v502_v11 = vadd.f32 %v4196_v6, %v4688_v58  ;;  %v4697_v12 = vadd.f32 %v4688_v58, %v429_v7  ;;  %v493_v13 = vpop.f32.mrb[3].mxu1 }
  0xee   : > { %v4092_v14 = vpack.c.bf16 %v555_v3, %v555_v3  ;;  %v569_v15 = vmax.f32 %v491_v4, 0.0  ;;  %v556_v16 = vmax.f32 %v438_v5, 0.0  ;;  %v494_v59 = vadd.f32 %v4688_v58, %v493_v13 }
  0xef   : > { %v4108_v17 = vpack.c.bf16 %v571_v8, %v571_v8  ;;  %v4090_v18 = vpack.c.bf16 %v553_v9, %v553_v9  ;;  %v572_v19 = vmax.f32 %v502_v11, 0.0  ;;  %v554_v23 = vmax.f32 %v4697_v12, 0.0 }
  0xf0   : > { %v823_v20 = vshrl.u32 %v4092_v14, 16  ;;  %v4106_v21 = vpack.c.bf16 %v569_v15, %v569_v15  ;;  %v4093_v22 = vpack.c.bf16 %v556_v16, %v556_v16  ;;  %v826_v24 = vshll.u32 %v4092_v14, 16  ;;  %v1195_v16 = vld [vmem:[#allocation2 + $0x80] sm:$0x1] }
  0xf1   : > { %v959_v26 = vshrl.u32 %v4108_v17, 16  ;;  %v962_v27 = vshll.u32 %v4108_v17, 16  ;;  %v806_v28 = vshrl.u32 %v4090_v18, 16  ;;  %v4183_v29 = vpop.f32.mrb[4].mxu0  ;;  %v809_v41 = vshll.u32 %v4090_v18, 16 }
  0xf2   : > { %v825_v30 = vrot.slane %v823_v20, 7  ;;  %v942_v33 = vshrl.u32 %v4106_v21, 16  ;;  %v945_v34 = vshll.u32 %v4106_v21, 16  ;;  %v831_v35 = vshrl.u32 %v4093_v22, 16  ;;  %v442_v36 = vpop.f32.mrb[5].mxu0  ;;  %v4700_v37 = vpop.f32.mrb[4].mxu1 }
  0xf3   : > { %v961_v39 = vrot.slane %v959_v26, 7  ;;  %v4708_v40 = vrot.slane %v806_v28, 7  ;;  %v4109_v42 = vpack.c.bf16 %v572_v19, %v572_v19  ;;  %v4184_v43 = vpop.f32.mrb[6].mxu0  ;;  %v4710_v44 = vpop.f32.mrb[5].mxu1  ;;  %v834_v48 = vshll.u32 %v4093_v22, 16 }
  0xf4   : > { %v828_v45 = vor.u32 %v826_v24, %v825_v30  ;;  %v4712_v46 = vrot.slane %v942_v33, 7  ;;  %v833_v47 = vrot.slane %v831_v35, 7  ;;  %v445_v49 = vpop.f32.mrb[7].mxu0  ;;  %v4714_v51 = vpop.f32.mrb[6].mxu1  ;;  %v829_v52 = vrot.slane %v825_v30, 4 }
  0xf5   : > { %v964_v53 = vor.u32 %v962_v27, %v961_v39  ;;  %v811_v54 = vor.u32 %v809_v41, %v4708_v40  ;;  %v4724_v60 = vpop.f32.mrb[7].mxu1  ;;  %v965_v62 = vrot.slane %v961_v39, 4  ;;  %v967_v5 = vshrl.u32 %v4109_v42, 16  ;;  %v1132_v35 = vld [vmem:[#allocation2 + $0x14] sm:$0x1] }
  0xf6   : > { %v1136_v61 = vsel %vm4704_vm10, %v828_v45, %v1135_v25  ;;  %v947_v63 = vor.u32 %v945_v34, %v4712_v46  ;;  %v836_v0 = vor.u32 %v834_v48, %v833_v47  ;;  %v838_v4 = vrot.slane %v833_v47, 4  ;;  %v1188_v48 = vld [vmem:[#allocation2 + $0x74] sm:$0x1] }
  0xf7   : > { %1137 = vst [vmem:[#allocation2 + $0x18] sm:$0xf] %v1136_v61  ;;  %v1192_v2 = vsel %vm4704_vm10, %v964_v53, %v1191_v31  ;;  %v1129_v3 = vsel %vm4704_vm10, %v811_v54, %v1128_v32  ;;  %v970_v8 = vshll.u32 %v4109_v42, 16  ;;  %v4091_v9 = vpack.c.bf16 %v554_v23, %v554_v23 }
  0xf8   : > { %1193 = vst [vmem:[#allocation2 + $0x78] sm:$0xf] %v1192_v2  ;;  %1130 = vst [vmem:[#allocation2 + $0xc] sm:$0xf] %v1129_v3  ;;  %v1185_v6 = vsel %vm4704_vm10, %v947_v63, %v1184_v55  ;;  %v837_v7 = vsel %vm4719_vm11, %v829_v52, %v836_v0  ;;  %v1140_v11 = vsel %vm4609_vm5, %v838_v4, %v1139_v1  ;;  %v969_v12 = vrot.slane %v967_v5, 7 }
  0xf9   : > { %1186 = vst [vmem:[#allocation2 + $0x6c] sm:$0xf] %v1185_v6  ;;  %1138 = vst.msk [vmem:[#allocation2 + $0x1c] sm:$0xf] %vm585_vm1, %v837_v7  ;;  %v570_v13 = vmax.f32 %v494_v59, 0.0  ;;  %v451_v14 = vadd.f32 %v4183_v29, %v4688_v58  ;;  %v4741_v15 = vpop.f32.mrb[8].mxu0  ;;  %v443_v18 = vadd.f32 %v4688_v58, %v442_v36  ;;  %v454_v19 = vadd.f32 %v4184_v43, %v4688_v58 }
  0xfa   : > { %1141 = vst [vmem:[#allocation2 + $0x20] sm:$0x1] %v1140_v11  ;;  %v814_v17 = vshrl.u32 %v4091_v9, 16  ;;  %v4745_v20 = vpop.f32.mrb[9].mxu0  ;;  %v4747_v21 = vpop.f32.mrb[8].mxu1  ;;  %v972_v22 = vor.u32 %v970_v8, %v969_v12  ;;  %v974_v23 = vrot.slane %v969_v12, 4  ;;  %v446_v45 = vadd.f32 %v4688_v58, %v445_v49 }
  0xfb   : > { %v4107_v24 = vpack.c.bf16 %v570_v13, %v570_v13  ;;  %v559_v25 = vmax.f32 %v451_v14, 0.0  ;;  %v4749_v26 = vpop.f32.mrb[10].mxu0  ;;  %v4751_v27 = vpop.f32.mrb[9].mxu1  ;;  %v812_v28 = vrot.slane %v4708_v40, 4  ;;  %v817_v30 = vshll.u32 %v4091_v9, 16 }
  0xfc   : > { %v816_v29 = vrot.slane %v814_v17, 7  ;;  %v4754_v31 = vpop.f32.mrb[11].mxu0  ;;  %v4756_v32 = vpop.f32.mrb[10].mxu1  ;;  %v973_v33 = vsel %vm4719_vm11, %v965_v62, %v972_v22  ;;  %v1196_v34 = vsel %vm4609_vm5, %v974_v23, %v1195_v16  ;;  %v948_v42 = vrot.slane %v4712_v46, 4 }
  0xfd   : > { %v950_v36 = vshrl.u32 %v4107_v24, 16  ;;  %v953_v39 = vshll.u32 %v4107_v24, 16  ;;  %v4762_v41 = vpop.f32.mrb[11].mxu1  ;;  %1194 = vst.msk [vmem:[#allocation2 + $0x7c] sm:$0xf] %vm585_vm1, %v973_v33  ;;  %v4096_v52 = vpack.c.bf16 %v559_v25, %v559_v25  ;;  %v557_v53 = vmax.f32 %v443_v18, 0.0 }
  0xfe   : > { %1197 = vst [vmem:[#allocation2 + $0x80] sm:$0x1] %v1196_v34  ;;  %v819_v40 = vor.u32 %v817_v30, %v816_v29  ;;  %v821_v43 = vrot.slane %v816_v29, 4  ;;  %v560_v54 = vmax.f32 %v454_v19, 0.0  ;;  %v1369_v61 = vld [vmem:[#allocation2 + $0x18] sm:$0xf]  ;;  %v4810_v29 = vadd.f32 %v4700_v37, %v4688_v58 }
  0xff   : > { %v952_v47 = vrot.slane %v950_v36, 7  ;;  %v1306_v1 = vld [vmem:[#allocation2 + $0x18] sm:$0xf]  ;;  %v558_v3 = vmax.f32 %v446_v45, 0.0  ;;  %v857_v8 = vshrl.u32 %v4096_v52, 16  ;;  %v4094_v9 = vpack.c.bf16 %v557_v53, %v557_v53 }
 0x100   : > { %v820_v55 = vsel %vm4719_vm11, %v812_v28, %v819_v40  ;;  %v1133_v59 = vsel %vm4609_vm5, %v821_v43, %v1132_v35  ;;  %v4771_v46 = vld [vmem:[#allocation2 + $0x1c] sm:$0xf]  ;;  %v1385_v6 = vld [vmem:[#allocation2 + $0x78] sm:$0xf]  ;;  %v4097_v12 = vpack.c.bf16 %v560_v54, %v560_v54  ;;  %v1149_v25 = vld [vmem:[#allocation2 + $0x30] sm:$0xf]  ;;  %v4815_v35 = vadd.f32 %v4688_v58, %v4710_v44 }
 0x101   : > { %v1307_v62 = vld [vmem:[#allocation2 + $0x1c] sm:$0xf]  ;;  %1131 = vst.msk [vmem:[#allocation2 + $0x10] sm:$0xf] %vm585_vm1, %v820_v55  ;;  %1134 = vst [vmem:[#allocation2 + $0x14] sm:$0x1] %v1133_v59  ;;  %v955_v63 = vor.u32 %v953_v39, %v952_v47  ;;  %v4775_v0 = vcombine.low %v1369_v61, %v4771_v46  ;;  %v4806_v28 = vpack.c.bf16 %v558_v3, %v558_v3 }
 0x102   : > { %v957_v49 = vrot.slane %v952_v47, 4  ;;  %v4777_v2 = vcombine.low %v1306_v1, %v1307_v62  ;;  %v1322_v7 = vld [vmem:[#allocation2 + $0x78] sm:$0xf]  ;;  %v4794_v18 = vrot.slane %v857_v8, 7  ;;  %v860_v33 = vshll.u32 %v4096_v52, 16 }
 0x103   : > { %v956_v4 = vsel %vm4719_vm11, %v948_v42, %v955_v63  ;;  %2507 = vrot.lane.b32.xlu0 %v4775_v0, %s4492_s13  ;;  %v1353_v11 = vld [vmem:[#allocation2 + $0x18] sm:$0xe]  ;;  %v4804_v24 = vld [vmem:[#allocation2 + $0x20] ss:$0 sps:$4 sm:$0x11]   ;;  %v840_v34 = vshrl.u32 %v4094_v9, 16  ;;  %v4828_v43 = vadd.f32 %v4714_v51, %v4688_v58 }
 0x104   : > { %v1189_v5 = vsel %vm4609_vm5, %v957_v49, %v1188_v48  ;;  %1187 = vst.msk [vmem:[#allocation2 + $0x70] sm:$0xf] %vm585_vm1, %v956_v4  ;;  %1997 = vrot.lane.b32.xlu1 %v4777_v2, %s4493_s14  ;;  %v4788_v13 = vld [vmem:[#allocation2 + $0x18] sm:$0xe]  ;;  %v3986_v14 = vcombine.low %v1353_v11, %v1307_v62  ;;  %v4790_v16 = vld [vmem:[#allocation2 + $0x7c] sm:$0xf]  ;;  %v862_v52 = vor.u32 %v860_v33, %v4794_v18 }
 0x105   : > { %1190 = vst [vmem:[#allocation2 + $0x74] sm:$0x1] %v1189_v5  ;;  %v4792_v17 = vld [vmem:[#allocation2 + $0x7c] sm:$0xf]  ;;  %v4797_v19 = vcombine.low %v1385_v6, %v4790_v16  ;;  %v4799_v22 = vld [vmem:[#allocation2 + $0x78] sm:$0xe]  ;;  %v4033_v36 = vcombine.low %v4788_v13, %v4771_v46 }
 0x106   : > { %v4802_v23 = vcombine.low %v1322_v7, %v4792_v17  ;;  %v1304_v37 = vld [vmem:[#allocation2 + $0xc] sm:$0xf]  ;;  %v865_v40 = vshrl.u32 %v4097_v12, 16  ;;  %v4830_v44 = vld [vmem:[#allocation2 + $0x78] sm:$0xe]  ;;  %v2350_v48 = vrot.slane %v3986_v14, 1  ;;  %v3994_v51 = vcombine.low %v4799_v22, %v4792_v17 }
 0x107   : > { %2523 = vrot.lane.b32.xlu0 %v4797_v19, %s4492_s13  ;;  %v1383_v45 = vld [vmem:[#allocation2 + $0x6c] sm:$0xf]  ;;  %v843_v53 = vshll.u32 %v4094_v9, 16  ;;  %v842_v55 = vrot.slane %v840_v34, 7  ;;  %v1142_v59 = vld [vmem:[#allocation2 + $0x24] sm:$0xf]  ;;  %v1150_v5 = vsel %vm4704_vm10, %v862_v52, %v1149_v25  ;;  %v4041_v8 = vcombine.low %v4830_v44, %v4790_v16 }
 0x108   : > { %2013 = vrot.lane.b32.xlu1 %v4802_v23, %s4493_s14  ;;  %v4824_v42 = vld [vmem:[#allocation2 + $0x10] sm:$0xf]  ;;  %v1320_v54 = vld [vmem:[#allocation2 + $0x6c] sm:$0xf]  ;;  %v867_v61 = vrot.slane %v865_v40, 7  ;;  %v868_v46 = vshll.u32 %v4097_v12, 16  ;;  %v4865_v14 = vadd.f32 %v4688_v58, %v4724_v60 }
 0x109   : > { %v4833_v47 = vcombine.low %v1304_v37, %v4824_v42  ;;  %v1153_v62 = vld [vmem:[#allocation2 + $0x38] sm:$0x1]  ;;  %v848_v63 = vshrl.u32 %v4806_v28, 16  ;;  %v4841_v1 = vld [vmem:[#allocation2 + $0xc] sm:$0xe]  ;;  %v2351_v3 = vrot.slane %v4804_v24, 1 }
 0x10a   : > { %v863_v4 = vrot.slane %v4794_v18, 4  ;;  %v4849_v7 = vld [vmem:[#allocation2 + $0x80] ss:$0 sps:$4 sm:$0x11]   ;;  %v4853_v9 = vld [vmem:[#allocation2 + $0x6c] sm:$0xe]  ;;  %v845_v18 = vor.u32 %v843_v53, %v842_v55  ;;  %v870_v22 = vor.u32 %v868_v46, %v867_v61 }
 0x10b   : > { %v4839_v49 = vld [vmem:[#allocation2 + $0x70] sm:$0xf]  ;;  %1995 = vrot.lane.b32.xlu0 %v4833_v47, %s4493_s14  ;;  %1151 = vst [vmem:[#allocation2 + $0x30] sm:$0xf] %v1150_v5  ;;  %v851_v12 = vshll.u32 %v4806_v28, 16  ;;  %v872_v25 = vrot.slane %v867_v61, 4 }
 0x10c   : > { %v4847_v6 = vld [vmem:[#allocation2 + $0x70] sm:$0xf]  ;;  %v4856_v11 = vcombine.low %v1383_v45, %v4839_v49  ;;  %v4861_v13 = vld [vmem:[#allocation2 + $0x20] ss:$0 sps:$4 sm:$0x11]   ;;  %v4868_v37 = vpop.f32.mrb[12].mxu0  ;;  %v1143_v61 = vsel %vm4704_vm10, %v845_v18, %v1142_v59  ;;  %v871_v46 = vsel %vm4719_vm11, %v863_v4, %v870_v22 }
 0x10d   : > { %v1146_v33 = vld [vmem:[#allocation2 + $0x2c] sm:$0x1]  ;;  %v1245_v34 = vld [vmem:[#allocation2 + $0x1c] sm:$0xf]  ;;  %6383 = vst [vmem:[#allocation5_spill] sm:$0xff] %v4868_v37  ;;  %v4875_v40 = vcombine.low %v1320_v54, %v4847_v6  ;;  %v846_v60 = vrot.slane %v842_v55, 4  ;;  %v1154_v30 = vsel %vm4609_vm5, %v872_v25, %v1153_v62 }
 0x10e   : > { %2521 = vrot.lane.b32.xlu1 %v4856_v11, %s4492_s13  ;;  %v850_v45 = vrot.slane %v848_v63, 7  ;;  %v1290_v52 = vld [vmem:[#allocation2 + $0x18] sm:$0xe]  ;;  %v4877_v5 = vld [vmem:[#allocation2 + $0x20] ss:$0 sps:$4 sm:$0x11]  }
 0x10f   : > { %v4879_v53 = vld [vmem:[#allocation2 + $0x6c] sm:$0xe]  ;;  %v2374_v17 = vrot.slane %v3994_v51, 1  ;;  %v4887_v28 = vld [vmem:[#allocation2 + $0x10] sm:$0xf]  ;;  %2011 = vrot.lane.b32.xlu0 %v4875_v40, %s4493_s14  ;;  %v2859_v63 = vrot.slane %v4033_v36, 1  ;;  %v2352_v51 = vsel %vm1834_vm7, %v2350_v48, %v2351_v3  ;;  %v3939_v22 = vcombine.low %v1290_v52, %v1245_v34 }
 0x110   : > { %1144 = vst [vmem:[#allocation2 + $0x24] sm:$0xf] %v1143_v61  ;;  %1152 = vst.msk [vmem:[#allocation2 + $0x34] sm:$0xf] %vm585_vm1, %v871_v46  ;;  %v853_v54 = vor.u32 %v851_v12, %v850_v45  ;;  %v855_v55 = vrot.slane %v850_v45, 4  ;;  %v2860_v59 = vrot.slane %v4861_v13, 1 }
 0x111   : > { %1155 = vst [vmem:[#allocation2 + $0x38] sm:$0x1] %v1154_v30  ;;  %v4893_v18 = vld [vmem:[#allocation2 + $0x14] ss:$0 sps:$4 sm:$0x11]   ;;  %v2375_v4 = vrot.slane %v4849_v7, 1 }
 0x112   : > { %v1289_v25 = vld [vmem:[#allocation2 + $0xc] sm:$0xe]  ;;  %v4899_v61 = vpop.f32.mrb[13].mxu0  ;;  %2397 = vrot.lane.b32.xlu1 %v2352_v51, %s4494_s15  ;;  %v854_v30 = vsel %vm4719_vm11, %v846_v60, %v853_v54  ;;  %v1147_v36 = vsel %vm4609_vm5, %v855_v55, %v1146_v33  ;;  %v1244_v12 = vld [vmem:[#allocation2 + $0x18] sm:$0xf]  ;;  %v1842_v45 = vrot.slane %v4877_v5, 1  ;;  %v2861_v46 = vsel %vm1834_vm7, %v2859_v63, %v2860_v59 }
 0x113   : > { %6384 = vst [vmem:[#allocation6_spill] sm:$0xff] %v4899_v61  ;;  %v3938_v48 = vcombine.low %v1289_v25, %v4887_v28  ;;  %v4908_v3 = vld [vmem:[#allocation2 + $0x80] ss:$0 sps:$4 sm:$0x11]   ;;  %v4910_v52 = vpop.f32.mrb[14].mxu0  ;;  %v1841_v51 = vrot.slane %v3939_v22, 1  ;;  %2907 = vrot.lane.b32.xlu0 %v2861_v46, %s4495_s16  ;;  %v2376_v22 = vsel %vm1834_vm7, %v2374_v17, %v2375_v4 }
 0x114   : > { %6385 = vst [vmem:[#allocation7_spill] sm:$0xff] %v4910_v52  ;;  %1145 = vst.msk [vmem:[#allocation2 + $0x28] sm:$0xf] %vm585_vm1, %v854_v30  ;;  %v1839_v60 = vrot.slane %v4893_v18, 1  ;;  %v575_v54 = vmax.f32 %v4810_v29, 0.0  ;;  %v4918_v55 = vpop.f32.mrb[15].mxu0  ;;  %v4928_v29 = vcombine.low %v1244_v12, %v1245_v34 }
 0x115   : > { %1148 = vst [vmem:[#allocation2 + $0x2c] sm:$0x1] %v1147_v36  ;;  %v4916_v33 = vld [vmem:[#allocation2 + $0x70] sm:$0xf]  ;;  %6386 = vst [vmem:[#allocation8_spill] sm:$0xff] %v4918_v55  ;;  %v1838_v62 = vrot.slane %v3938_v48, 1  ;;  %v1843_v48 = vsel %vm1834_vm7, %v1841_v51, %v1842_v45 }
 0x116   : > { %v2883_v63 = vrot.slane %v4041_v8, 1  ;;  %v2884_v59 = vrot.slane %v4908_v3, 1  ;;  %6387 = vst [vmem:[#allocation9_spill] sm:$0xff] %v4928_v29  ;;  %v4112_v30 = vpack.c.bf16 %v575_v54, %v575_v54  ;;  %v1297_v36 = vld [vmem:[#allocation2 + $0x6c] sm:$0xe]  ;;  %v573_v25 = vmax.f32 %v4815_v35, 0.0  ;;  %2413 = vrot.lane.b32.xlu1 %v2376_v22, %s4494_s15 }
 0x117   : > { %v4930_v39 = vld [vmem:[#allocation2 + $0x74] ss:$0 sps:$4 sm:$0x11]   ;;  %v1840_v46 = vsel %vm1834_vm7, %v1838_v62, %v1839_v60  ;;  %v3946_v16 = vcombine.low %v1297_v36, %v4916_v33  ;;  %v576_v44 = vmax.f32 %v4828_v43, 0.0  ;;  %v1261_v8 = vld [vmem:[#allocation2 + $0x7c] sm:$0xf]  ;;  %1887 = vrot.lane.b32.xlu0 %v1843_v48, %s4490_s9 }
 0x118   : > { %v993_v17 = vshrl.u32 %v4112_v30, 16  ;;  %v996_v34 = vshll.u32 %v4112_v30, 16  ;;  %v1863_v4 = vrot.slane %v4930_v39, 1  ;;  %v4110_v12 = vpack.c.bf16 %v573_v25, %v573_v25  ;;  %v1298_v51 = vld [vmem:[#allocation2 + $0x78] sm:$0xe] }
 0x119   : > { %v2885_v35 = vsel %vm1834_vm7, %v2883_v63, %v2884_v59  ;;  %v1862_v54 = vrot.slane %v3946_v16, 1  ;;  %v4113_v22 = vpack.c.bf16 %v576_v44, %v576_v44  ;;  %v574_v45 = vmax.f32 %v4865_v14, 0.0  ;;  %v4942_v10 = vld [vmem:[#allocation2 + $0x80] ss:$0 sps:$4 sm:$0x11]  }
 0x11a   : > { %v995_v62 = vrot.slane %v993_v17, 7  ;;  %v976_v60 = vshrl.u32 %v4110_v12, 16  ;;  %v979_v36 = vshll.u32 %v4110_v12, 16  ;;  %v3947_v43 = vcombine.low %v1298_v51, %v1261_v8  ;;  %1885 = vrot.lane.b32.xlu1 %v1840_v46, %s4490_s9  ;;  %v1205_v30 = vld [vmem:[#allocation2 + $0x90] sm:$0xf] }
 0x11b   : > { %v1864_v25 = vsel %vm1834_vm7, %v1862_v54, %v1863_v4  ;;  %v1198_v55 = vld [vmem:[#allocation2 + $0x84] sm:$0xf]  ;;  %v1001_v48 = vshrl.u32 %v4113_v22, 16  ;;  %v1004_v56 = vshll.u32 %v4113_v22, 16  ;;  %v4111_v63 = vpack.c.bf16 %v574_v45, %v574_v45  ;;  %v1209_v14 = vld [vmem:[#allocation2 + $0x98] sm:$0x1]  ;;  %2923 = vrot.lane.b32.xlu0 %v2885_v35, %s4495_s16 }
 0x11c   : > { %v998_v59 = vor.u32 %v996_v34, %v995_v62  ;;  %v999_v16 = vrot.slane %v995_v62, 4  ;;  %v978_v44 = vrot.slane %v976_v60, 7  ;;  %v1865_v52 = vrot.slane %v3947_v43, 1  ;;  %v1260_v51 = vld [vmem:[#allocation2 + $0x78] sm:$0xf] }
 0x11d   : > { %v1003_v17 = vrot.slane %v1001_v48, 7  ;;  %v984_v12 = vshrl.u32 %v4111_v63, 16  ;;  %v987_v61 = vshll.u32 %v4111_v63, 16  ;;  %v1866_v46 = vrot.slane %v4942_v10, 1 }
 0x11e   : > { %v1206_v4 = vsel %vm4704_vm10, %v998_v59, %v1205_v30  ;;  %v981_v54 = vor.u32 %v979_v36, %v978_v44  ;;  %v982_v37 = vrot.slane %v978_v44, 4  ;;  %v2088_v22 = vshrl.u32 %v4777_v2, 16  ;;  %v4951_v34 = vld [vmem:[#allocation2 + $0x14] ss:$0 sps:$4 sm:$0x11]   ;;  %1901 = vrot.lane.b32.xlu1 %v1864_v25, %s4490_s9 }
 0x11f   : > { %1207 = vst [vmem:[#allocation2 + $0x90] sm:$0xf] %v1206_v4  ;;  %v1006_v45 = vor.u32 %v1004_v56, %v1003_v17  ;;  %v1008_v35 = vrot.slane %v1003_v17, 4  ;;  %v986_v62 = vrot.slane %v984_v12, 7  ;;  %v1867_v60 = vsel %vm1834_vm7, %v1865_v52, %v1866_v46  ;;  %v1202_v30 = vld [vmem:[#allocation2 + $0x8c] sm:$0x1] }
 0x120   : > { %v4955_v43 = vld [vmem:[#allocation2 + $0x74] ss:$0 sps:$4 sm:$0x11]   ;;  %v1199_v48 = vsel %vm4704_vm10, %v981_v54, %v1198_v55  ;;  %v6388_v36 = vshll.u32 %v4777_v2, 16  ;;  %v2095_v59 = vshll.u32 %v4804_v24, 16  ;;  %v6389_v44 = vcombine.low %v4841_v1, %v4824_v42  ;;  %v4965_v56 = vpop.f32.mrb[12].mxu1  ;;  %1903 = vrot.lane.b32.xlu0 %v1867_v60, %s4490_s9 }
 0x121   : > { %1200 = vst [vmem:[#allocation2 + $0x84] sm:$0xf] %v1199_v48  ;;  %v1007_v52 = vsel %vm4719_vm11, %v999_v16, %v1006_v45  ;;  %v1210_v17 = vsel %vm4609_vm5, %v1008_v35, %v1209_v14  ;;  %v989_v55 = vor.u32 %v987_v61, %v986_v62  ;;  %v991_v12 = vrot.slane %v986_v62, 4  ;;  %v4972_v2 = vpop.f32.mrb[13].mxu1 }
 0x122   : > { %v2092_v63 = vrot.slane %v6388_v36, 1  ;;  %v2347_v25 = vrot.slane %v6389_v44, 1  ;;  %1208 = vst.msk [vmem:[#allocation2 + $0x94] sm:$0xf] %vm585_vm1, %v1007_v52  ;;  %1211 = vst [vmem:[#allocation2 + $0x98] sm:$0x1] %v1210_v17  ;;  %v4975_v24 = vcombine.low %v1260_v51, %v1261_v8 }
 0x123   : > { %v2097_v1 = vrot.slane %v2095_v59, 1  ;;  %v2348_v46 = vrot.slane %v4951_v34, 1  ;;  %v4978_v4 = vpop.f32.mrb[14].mxu1  ;;  %v990_v16 = vsel %vm4719_vm11, %v982_v37, %v989_v55  ;;  %v1203_v61 = vsel %vm4609_vm5, %v991_v12, %v1202_v30  ;;  %v4986_v45 = vld [vmem:[#allocation2 + $0x74] ss:$0 sps:$4 sm:$0x11]  }
 0x124   : > { %6390 = vst [vmem:[#allocation10_spill] sm:$0xff] %v4975_v24  ;;  %v2093_v42 = vor.u32 %v2092_v63, %v2088_v22  ;;  %v1589_v14 = vshll.u32 %v4928_v29, 16  ;;  %v1594_v54 = vshll.u32 %v4877_v5, 16  ;;  %1201 = vst.msk [vmem:[#allocation2 + $0x88] sm:$0xf] %vm585_vm1, %v990_v16  ;;  %v6391_v22 = vcombine.low %v4853_v9, %v4839_v49  ;;  %v5004_v59 = vpop.f32.mrb[15].mxu1 }
 0x125   : > { %1204 = vst [vmem:[#allocation2 + $0x8c] sm:$0x1] %v1203_v61  ;;  %v2349_v51 = vsel %vm1834_vm7, %v2347_v25, %v2348_v46  ;;  %v2881_v35 = vrot.slane %v4955_v43, 1  ;;  %v2686_v62 = vshll.u32 %v4797_v19, 16  ;;  %v1587_v5 = vshrl.u32 %v4928_v29, 16 }
 0x126   : > { %v2098_v8 = vsel %vm1561_vm8, %v2093_v42, %v2097_v1  ;;  %v2880_v37 = vrot.slane %v6391_v22, 1  ;;  %2395 = vrot.lane.b32.xlu0 %v2349_v51, %s4494_s15  ;;  %v1591_v60 = vrot.slane %v1589_v14, 1  ;;  %v6392_v48 = vshll.u32 %v4802_v23, 16  ;;  %v1242_v14 = vld [vmem:[#allocation2 + $0xc] sm:$0xf] }
 0x127   : > { %2269 = vrot.lane.b32.xlu1 %v2098_v8, %s4496_s17  ;;  %v1596_v36 = vrot.slane %v1594_v54, 1  ;;  %v2184_v49 = vshrl.u32 %v4802_v23, 16  ;;  %v2191_v9 = vshll.u32 %v4849_v7, 16  ;;  %v6393_v25 = vcombine.low %v4879_v53, %v4847_v6  ;;  %v1258_v23 = vld [vmem:[#allocation2 + $0x6c] sm:$0xf] }
 0x128   : > { %v2188_v30 = vrot.slane %v6392_v48, 1  ;;  %v2882_v63 = vsel %vm1834_vm7, %v2880_v37, %v2881_v35  ;;  %v1592_v44 = vor.u32 %v1591_v60, %v1587_v5  ;;  %v2372_v17 = vrot.slane %v4986_v45, 1 }
 0x129   : > { %v2371_v52 = vrot.slane %v6393_v25, 1  ;;  %v1685_v55 = vshll.u32 %v4975_v24, 16  ;;  %v2193_v42 = vrot.slane %v2191_v9, 1  ;;  %v1690_v1 = vshll.u32 %v4942_v10, 16 }
 0x12a   : > { %v2189_v12 = vor.u32 %v2188_v30, %v2184_v49  ;;  %v2588_v46 = vshrl.u32 %v4775_v0, 16  ;;  %v1597_v7 = vsel %vm1561_vm8, %v1592_v44, %v1596_v36  ;;  %2921 = vrot.lane.b32.xlu0 %v2882_v63, %s4495_s16  ;;  %v6394_v61 = vshll.u32 %v4775_v0, 16  ;;  %v1310_v36 = vld [vmem:[#allocation2 + $0x30] sm:$0xf]  ;;  %v5035_v63 = vld [vmem:[#allocation2 + $0x34] sm:$0xf] }
 0x12b   : > { %v1687_v16 = vrot.slane %v1685_v55, 1  ;;  %v2595_v53 = vshll.u32 %v4861_v13, 16  ;;  %1758 = vrot.lane.b32.xlu1 %v1597_v7, %s4491_s10  ;;  %v2674_v54 = vshll.u32 %v4856_v11, 16  ;;  %v5021_v10 = vcombine.low %v1242_v14, %v4887_v28  ;;  %v1371_v14 = vld [vmem:[#allocation2 + $0x24] sm:$0xf] }
 0x12c   : > { %v2592_v6 = vrot.slane %v6394_v61, 1  ;;  %v1683_v8 = vshrl.u32 %v4975_v24, 16  ;;  %v5025_v22 = vcombine.low %v1258_v23, %v4916_v33  ;;  %v2373_v37 = vsel %vm1834_vm7, %v2371_v52, %v2372_v17 }
 0x12d   : > { %v2688_v0 = vrot.slane %v2686_v62, 1  ;;  %v2691_v35 = vshll.u32 %v4908_v3, 16  ;;  %v2194_v13 = vsel %vm1561_vm8, %v2189_v12, %v2193_v42  ;;  %v1692_v60 = vrot.slane %v1690_v1, 1 }
 0x12e   : > { %v2593_v51 = vor.u32 %v2592_v6, %v2588_v46  ;;  %6395 = vst [vmem:[#allocation11_spill] sm:$0xff] %v5025_v22  ;;  %2411 = vrot.lane.b32.xlu0 %v2373_v37, %s4494_s15  ;;  %v1688_v5 = vor.u32 %v1687_v16, %v1683_v8  ;;  %v2597_v48 = vrot.slane %v2595_v53, 1  ;;  %v2684_v28 = vshrl.u32 %v4797_v19, 16  ;;  %v1355_v16 = vld [vmem:[#allocation2 + $0x30] sm:$0xe] }
 0x12f   : > { %2285 = vrot.lane.b32.xlu1 %v2194_v13, %s4496_s17  ;;  %v2078_v30 = vshll.u32 %v4833_v47, 16  ;;  %v2693_v3 = vrot.slane %v2691_v35, 1  ;;  %v1673_v49 = vshll.u32 %v5025_v22, 16  ;;  %v1577_v9 = vshll.u32 %v5021_v10, 16  ;;  %v5058_v37 = vld [vmem:[#allocation2 + $0x28] sm:$0xf] }
 0x130   : > { %v2598_v33 = vsel %vm1561_vm8, %v2593_v51, %v2597_v48  ;;  %v2689_v62 = vor.u32 %v2688_v0, %v2684_v28  ;;  %v1693_v44 = vsel %vm1561_vm8, %v1688_v5, %v1692_v60  ;;  %v2676_v25 = vrot.slane %v2674_v54, 1  ;;  %v1326_v51 = vld [vmem:[#allocation2 + $0x90] sm:$0xf]  ;;  %v5063_v5 = vld [vmem:[#allocation2 + $0x94] sm:$0xf] }
 0x131   : > { %v1575_v19 = vshrl.u32 %v5021_v10, 16  ;;  %v1579_v52 = vrot.slane %v1577_v9, 1  ;;  %v1582_v17 = vshll.u32 %v4893_v18, 16  ;;  %v5045_v55 = vcombine.low %v1310_v36, %v5035_v63  ;;  %v1373_v48 = vld [vmem:[#allocation2 + $0x30] sm:$0xf] }
 0x132   : > { %2779 = vrot.lane.b32.xlu0 %v2598_v33, %s4497_s18  ;;  %v2672_v12 = vshrl.u32 %v4856_v11, 16  ;;  %v2679_v42 = vshll.u32 %v4955_v43, 16  ;;  %v2694_v1 = vsel %vm1561_vm8, %v2689_v62, %v2693_v3  ;;  %v1675_v46 = vrot.slane %v1673_v49, 1  ;;  %v5069_v28 = vld [vmem:[#allocation2 + $0x34] sm:$0xf] }
 0x133   : > { %1774 = vrot.lane.b32.xlu1 %v1693_v44, %s4491_s10  ;;  %v1580_v23 = vor.u32 %v1579_v52, %v1575_v19  ;;  %v2080_v7 = vrot.slane %v2078_v30, 1  ;;  %v1671_v6 = vshrl.u32 %v5025_v22, 16  ;;  %v1678_v18 = vshll.u32 %v4930_v39, 16  ;;  %v1363_v39 = vld [vmem:[#allocation2 + $0x90] sm:$0xe] }
 0x134   : > { %v2677_v61 = vor.u32 %v2676_v25, %v2672_v12  ;;  %v1584_v53 = vrot.slane %v1582_v17, 1  ;;  %v2076_v11 = vshrl.u32 %v4833_v47, 16  ;;  %v2083_v43 = vshll.u32 %v4951_v34, 16  ;;  %v1387_v3 = vld [vmem:[#allocation2 + $0x84] sm:$0xf] }
 0x135   : > { %v2174_v54 = vshll.u32 %v4875_v40, 16  ;;  %v2681_v8 = vrot.slane %v2679_v42, 1  ;;  %v467_v0 = vadd.f32 %v4741_v15, %v4688_v58  ;;  %v1676_v35 = vor.u32 %v1675_v46, %v1671_v6  ;;  %v5081_v49 = vld [vmem:[#allocation2 + $0x88] sm:$0xf]  ;;  %v1389_v12 = vld [vmem:[#allocation2 + $0x90] sm:$0xf] }
 0x136   : > { %2795 = vrot.lane.b32.xlu0 %v2694_v1, %s4497_s18  ;;  %v1585_v13 = vsel %vm1561_vm8, %v1580_v23, %v1584_v53  ;;  %v2081_v60 = vor.u32 %v2080_v7, %v2076_v11  ;;  %v459_v47 = vadd.f32 %v4688_v58, %v4745_v20  ;;  %v470_v15 = vadd.f32 %v4749_v26, %v4688_v58  ;;  %v5106_v42 = vld [vmem:[#allocation2 + $0x94] sm:$0xf] }
 0x137   : > { %2001 = vrot.lane.b32.xlu1 %v5045_v55, %s4493_s14  ;;  %v2682_v34 = vsel %vm1561_vm8, %v2677_v61, %v2681_v8  ;;  %v462_v30 = vadd.f32 %v4688_v58, %v4754_v31  ;;  %v5077_v33 = vadd.f32 %v4747_v21, %v4688_v58  ;;  %v3988_v36 = vcombine.low %v1355_v16, %v5035_v63  ;;  %v5094_v63 = vld [vmem:[#allocation2 + $0x38] ss:$0 sps:$4 sm:$0x11]   ;;  %v1291_v8 = vld [vmem:[#allocation2 + $0x24] sm:$0xe] }
 0x138   : > { %v1680_v20 = vrot.slane %v1678_v18, 1  ;;  %v2085_v62 = vrot.slane %v2083_v43, 1  ;;  %v5085_v9 = vadd.f32 %v4688_v58, %v4751_v27  ;;  %v5088_v26 = vcombine.low %v1326_v51, %v5063_v5  ;;  %v5113_v18 = vld [vmem:[#allocation2 + $0x98] ss:$0 sps:$4 sm:$0x11]  }
 0x139   : > { %v3996_v31 = vcombine.low %v1363_v39, %v5063_v5  ;;  %v5092_v21 = vcombine.low %v1371_v14, %v5058_v37  ;;  %v563_v44 = vmax.f32 %v467_v0, 0.0  ;;  %v5099_v52 = vcombine.low %v1373_v48, %v5069_v28  ;;  %v5122_v5 = vld [vmem:[#allocation2 + $0x2c] ss:$0 sps:$4 sm:$0x11]  }
 0x13a   : > { %1756 = vrot.lane.b32.xlu0 %v1585_v13, %s4491_s10  ;;  %v1681_v25 = vsel %vm1561_vm8, %v1676_v35, %v1680_v20  ;;  %v2086_v19 = vsel %vm1561_vm8, %v2081_v60, %v2085_v62  ;;  %v2176_v58 = vrot.slane %v2174_v54, 1  ;;  %v5103_v27 = vcombine.low %v1387_v3, %v5081_v49  ;;  %v1163_v54 = vld [vmem:[#allocation2 + $0x48] sm:$0xf] }
 0x13b   : > { %2793 = vrot.lane.b32.xlu1 %v2682_v34, %s4497_s18  ;;  %v2179_v17 = vshll.u32 %v4986_v45, 16  ;;  %v4100_v1 = vpack.c.bf16 %v563_v44, %v563_v44  ;;  %v561_v46 = vmax.f32 %v459_v47, 0.0  ;;  %v2172_v23 = vshrl.u32 %v4875_v40, 16  ;;  %v5120_v13 = vld [vmem:[#allocation2 + $0x28] sm:$0xf] }
 0x13c   : > { %v5110_v7 = vrot.slane %v3988_v36, 1  ;;  %v564_v16 = vmax.f32 %v470_v15, 0.0  ;;  %v562_v61 = vmax.f32 %v462_v30, 0.0  ;;  %v2357_v6 = vrot.slane %v5094_v63, 1  ;;  %v1156_v47 = vld [vmem:[#allocation2 + $0x3c] sm:$0xf] }
 0x13d   : > { %v891_v53 = vshrl.u32 %v4100_v1, 16  ;;  %v894_v11 = vshll.u32 %v4100_v1, 16  ;;  %v4098_v45 = vpack.c.bf16 %v561_v46, %v561_v46  ;;  %v2177_v43 = vor.u32 %v2176_v58, %v2172_v23  ;;  %v1167_v44 = vld [vmem:[#allocation2 + $0x50] sm:$0x1]  ;;  %v1419_v58 = vld [vmem:[#allocation2 + $0x30] sm:$0xe] }
 0x13e   : > { %2267 = vrot.lane.b32.xlu0 %v2086_v19, %s4496_s17  ;;  %v5116_v14 = vcombine.low %v1389_v12, %v5106_v42  ;;  %v4101_v51 = vpack.c.bf16 %v564_v16, %v564_v16  ;;  %v4099_v0 = vpack.c.bf16 %v562_v61, %v562_v61  ;;  %v2181_v40 = vrot.slane %v2179_v17, 1  ;;  %v1299_v19 = vld [vmem:[#allocation2 + $0x84] sm:$0xe]  ;;  %v5129_v23 = vld [vmem:[#allocation2 + $0x90] sm:$0xe] }
 0x13f   : > { %1772 = vrot.lane.b32.xlu1 %v1681_v25, %s4491_s10  ;;  %v893_v35 = vrot.slane %v891_v53, 7  ;;  %v874_v39 = vshrl.u32 %v4098_v45, 16  ;;  %v877_v60 = vshll.u32 %v4098_v45, 16  ;;  %v2380_v36 = vrot.slane %v3996_v31, 1  ;;  %v1160_v25 = vld [vmem:[#allocation2 + $0x44] sm:$0x1] }
 0x140   : > { %v899_v34 = vshrl.u32 %v4101_v51, 16  ;;  %v902_v48 = vshll.u32 %v4101_v51, 16  ;;  %v882_v15 = vshrl.u32 %v4099_v0, 16  ;;  %v885_v30 = vshll.u32 %v4099_v0, 16  ;;  %v5136_v0 = vld [vmem:[#allocation2 + $0x88] sm:$0xf] }
 0x141   : > { %v896_v20 = vor.u32 %v894_v11, %v893_v35  ;;  %v3940_v62 = vcombine.low %v1291_v8, %v5120_v13  ;;  %v876_v3 = vrot.slane %v874_v39, 7  ;;  %v2182_v17 = vsel %vm1561_vm8, %v2177_v43, %v2181_v40  ;;  %v1308_v11 = vld [vmem:[#allocation2 + $0x24] sm:$0xf] }
 0x142   : > { %2511 = vrot.lane.b32.xlu0 %v5099_v52, %s4492_s13  ;;  %v897_v12 = vrot.slane %v893_v35, 4  ;;  %v901_v1 = vrot.slane %v899_v34, 7  ;;  %v884_v46 = vrot.slane %v882_v15, 7  ;;  %v2381_v16 = vrot.slane %v5113_v18, 1  ;;  %v5144_v34 = vld [vmem:[#allocation2 + $0x28] sm:$0xf] }
 0x143   : > { %2017 = vrot.lane.b32.xlu1 %v5088_v26, %s4493_s14  ;;  %v1164_v31 = vsel %vm4704_vm10, %v896_v20, %v1163_v54  ;;  %v879_v61 = vor.u32 %v877_v60, %v876_v3  ;;  %v880_v53 = vrot.slane %v876_v3, 4  ;;  %v1844_v40 = vrot.slane %v3940_v62, 1  ;;  %v5141_v54 = vld [vmem:[#allocation2 + $0x8c] ss:$0 sps:$4 sm:$0x11]  }
 0x144   : > { %1165 = vst [vmem:[#allocation2 + $0x48] sm:$0xf] %v1164_v31  ;;  %v904_v45 = vor.u32 %v902_v48, %v901_v1  ;;  %v906_v43 = vrot.slane %v901_v1, 4  ;;  %v887_v8 = vor.u32 %v885_v30, %v884_v46  ;;  %v889_v51 = vrot.slane %v884_v46, 4  ;;  %v1324_v15 = vld [vmem:[#allocation2 + $0x84] sm:$0xf] }
 0x145   : > { %v1845_v35 = vrot.slane %v5122_v5, 1  ;;  %v1157_v39 = vsel %vm4704_vm10, %v879_v61, %v1156_v47  ;;  %v3948_v60 = vcombine.low %v1299_v19, %v5136_v0  ;;  %v2114_v62 = vshll.u32 %v5045_v55, 16  ;;  %v5158_v19 = vld [vmem:[#allocation2 + $0x88] sm:$0xf] }
 0x146   : > { %2283 = vrot.lane.b32.xlu0 %v2182_v17, %s4496_s17  ;;  %1158 = vst [vmem:[#allocation2 + $0x3c] sm:$0xf] %v1157_v39  ;;  %v905_v48 = vsel %vm4719_vm11, %v897_v12, %v904_v45  ;;  %v1168_v30 = vsel %vm4609_vm5, %v906_v43, %v1167_v44  ;;  %v888_v20 = vsel %vm4719_vm11, %v880_v53, %v887_v8  ;;  %v5162_v44 = vld [vmem:[#allocation2 + $0x38] ss:$0 sps:$4 sm:$0x11]   ;;  %v579_v1 = vmax.f32 %v5077_v33, 0.0 }
 0x147   : > { %2509 = vrot.lane.b32.xlu1 %v5092_v21, %s4492_s13  ;;  %v1161_v47 = vsel %vm4609_vm5, %v889_v51, %v1160_v25  ;;  %v4035_v3 = vcombine.low %v1419_v58, %v5069_v28  ;;  %1166 = vst.msk [vmem:[#allocation2 + $0x4c] sm:$0xf] %vm585_vm1, %v905_v48  ;;  %1169 = vst [vmem:[#allocation2 + $0x50] sm:$0x1] %v1168_v30  ;;  %v5167_v25 = vld [vmem:[%s6356_s2] ss:$0 sm:$0xff]  ;;  %v2358_v17 = vsel %vm1834_vm7, %v5110_v7, %v2357_v6 }
 0x148   : > { %1159 = vst.msk [vmem:[#allocation2 + $0x40] sm:$0xf] %vm585_vm1, %v888_v20  ;;  %1162 = vst [vmem:[#allocation2 + $0x44] sm:$0x1] %v1161_v47  ;;  %v534_v28 = vadd.f32 %v5167_v25, %v4756_v32  ;;  %v2382_v46 = vsel %vm1834_vm7, %v2380_v36, %v2381_v16  ;;  %v5183_v31 = vcombine.low %v1308_v11, %v5144_v34  ;;  %v1868_v32 = vrot.slane %v3948_v60, 1 }
 0x149   : > { %v1869_v61 = vrot.slane %v5141_v54, 1  ;;  %v1846_v53 = vsel %vm1834_vm7, %v1844_v40, %v1845_v35  ;;  %v5188_v45 = vcombine.low %v1324_v15, %v5158_v19  ;;  %v1248_v43 = vld [vmem:[#allocation2 + $0x30] sm:$0xf]  ;;  %v1249_v7 = vld [vmem:[#allocation2 + $0x34] sm:$0xf]  ;;  %v4116_v6 = vpack.c.bf16 %v579_v1, %v579_v1 }
 0x14a   : > { %2527 = vrot.lane.b32.xlu0 %v5116_v14, %s4492_s13  ;;  %v577_v8 = vmax.f32 %v5085_v9, 0.0  ;;  %v2865_v33 = vrot.slane %v4035_v3, 1  ;;  %v2866_v36 = vrot.slane %v5162_v44, 1  ;;  %v2112_v16 = vshrl.u32 %v5045_v55, 16  ;;  %v1292_v11 = vld [vmem:[#allocation2 + $0x30] sm:$0xe] }
 0x14b   : > { %2525 = vrot.lane.b32.xlu1 %v5103_v27, %s4492_s13  ;;  %v580_v51 = vmax.f32 %v534_v28, 0.0  ;;  %v2116_v40 = vrot.slane %v2114_v62, 1  ;;  %v1027_v35 = vshrl.u32 %v4116_v6, 16  ;;  %v1030_v39 = vshll.u32 %v4116_v6, 16  ;;  %v1219_v3 = vld [vmem:[#allocation2 + $0xa8] sm:$0xf] }
 0x14c   : > { %v4114_v60 = vpack.c.bf16 %v577_v8, %v577_v8  ;;  %v5197_v15 = vsel %vm1834_vm7, %v1868_v32, %v1869_v61  ;;  %v5199_v9 = vcombine.low %v1248_v43, %v1249_v7  ;;  %v5201_v48 = vld [vmem:[#allocation2 + $0x38] ss:$0 sps:$4 sm:$0x11]   ;;  %v526_v20 = vadd.f32 %v5167_v25, %v4762_v41  ;;  %v1212_v1 = vld [vmem:[#allocation2 + $0x9c] sm:$0xf] }
 0x14d   : > { %v4117_v30 = vpack.c.bf16 %v580_v51, %v580_v51  ;;  %v3941_v55 = vcombine.low %v1292_v11, %v1249_v7  ;;  %v1029_v47 = vrot.slane %v1027_v35, 7  ;;  %v2867_v62 = vsel %vm1834_vm7, %v2865_v33, %v2866_v36  ;;  %v1223_v11 = vld [vmem:[#allocation2 + $0xb0] sm:$0x1] }
 0x14e   : > { %1999 = vrot.lane.b32.xlu0 %v5183_v31, %s4493_s14  ;;  %v1010_v28 = vshrl.u32 %v4114_v60, 16  ;;  %v578_v43 = vmax.f32 %v526_v20, 0.0  ;;  %v2117_v6 = vor.u32 %v2116_v40, %v2112_v16  ;;  %v2119_v8 = vshll.u32 %v5094_v63, 16  ;;  %v1264_v16 = vld [vmem:[#allocation2 + $0x90] sm:$0xf] }
 0x14f   : > { %2401 = vrot.lane.b32.xlu1 %v2358_v17, %s4494_s15  ;;  %v1013_v17 = vshll.u32 %v4114_v60, 16  ;;  %v1035_v32 = vshrl.u32 %v4117_v30, 16  ;;  %v1038_v61 = vshll.u32 %v4117_v30, 16  ;;  %v1032_v41 = vor.u32 %v1030_v39, %v1029_v47  ;;  %v5211_v60 = vld [vmem:[#allocation2 + $0x98] ss:$0 sps:$4 sm:$0x11]  }
 0x150   : > { %v1012_v7 = vrot.slane %v1010_v28, 7  ;;  %v1848_v51 = vrot.slane %v5201_v48, 1  ;;  %v1033_v35 = vrot.slane %v1029_v47, 4  ;;  %v4115_v12 = vpack.c.bf16 %v578_v43, %v578_v43  ;;  %v1265_v40 = vld [vmem:[#allocation2 + $0x94] sm:$0xf] }
 0x151   : > { %v1037_v58 = vrot.slane %v1035_v32, 7  ;;  %v1847_v33 = vrot.slane %v3941_v55, 1  ;;  %v1220_v36 = vsel %vm4704_vm10, %v1032_v41, %v1219_v3  ;;  %v1613_v30 = vshll.u32 %v5199_v9, 16  ;;  %v1300_v28 = vld [vmem:[#allocation2 + $0x90] sm:$0xe] }
 0x152   : > { %2015 = vrot.lane.b32.xlu0 %v5188_v45, %s4493_s14  ;;  %1221 = vst [vmem:[#allocation2 + $0xa8] sm:$0xf] %v1220_v36  ;;  %v1018_v20 = vshrl.u32 %v4115_v12, 16  ;;  %v1021_v47 = vshll.u32 %v4115_v12, 16  ;;  %v2121_v32 = vrot.slane %v2119_v8, 1  ;;  %v1618_v55 = vshll.u32 %v5201_v48, 16 }
 0x153   : > { %2417 = vrot.lane.b32.xlu1 %v2382_v46, %s4494_s15  ;;  %v1015_v46 = vor.u32 %v1013_v17, %v1012_v7  ;;  %v1040_v63 = vor.u32 %v1038_v61, %v1037_v58  ;;  %v1042_v39 = vrot.slane %v1037_v58, 4  ;;  %v6396_v3 = vcombine.low %v5129_v23, %v5106_v42  ;;  %v1216_v41 = vld [vmem:[#allocation2 + $0xa4] sm:$0x1]  ;;  %v4368_v8 = vld [vmem:[#allocation2 + $0x98] ss:$0 sps:$4 sm:$0x11]  }
 0x154   : > { %v4427_v58 = vld [vmem:[%s6357_s3] sm:$0xff]   ;;  %v1016_v12 = vrot.slane %v1012_v7, 4  ;;  %v1020_v61 = vrot.slane %v1018_v20, 7  ;;  %v1849_v42 = vsel %vm1834_vm7, %v1847_v33, %v1848_v51  ;;  %v2890_v23 = vrot.slane %v5211_v60, 1 }
 0x155   : > { %v2889_v43 = vrot.slane %v6396_v3, 1  ;;  %v1213_v17 = vsel %vm4704_vm10, %v1015_v46, %v1212_v1  ;;  %v1224_v48 = vsel %vm4609_vm5, %v1042_v39, %v1223_v11  ;;  %v5234_v1 = vcombine.low %v1264_v16, %v1265_v40  ;;  %4209 = vmatprep.subr.bf16.mxu1 %v4427_v58  ;;  %v1354_v33 = vld [vmem:[#allocation2 + $0x24] sm:$0xe] }
 0x156   : > { %2911 = vrot.lane.b32.xlu0 %v2867_v62, %s4495_s16  ;;  %v1418_v62 = vld [vmem:[#allocation2 + $0x24] sm:$0xe]  ;;  %1214 = vst [vmem:[#allocation2 + $0x9c] sm:$0xf] %v1213_v17  ;;  %1225 = vst [vmem:[#allocation2 + $0xb0] sm:$0x1] %v1224_v48  ;;  %v3949_v36 = vcombine.low %v1300_v28, %v1265_v40  ;;  %v1023_v46 = vor.u32 %v1021_v47, %v1020_v61  ;;  %4210 = vmatpush3.bf16.msra.mxu1 %v4427_v58 }
 0x157   : > { %1889 = vrot.lane.b32.xlu1 %v1846_v53, %s4490_s9  ;;  %v1041_v53 = vsel %vm4719_vm11, %v1033_v35, %v1040_v63  ;;  %6397 = vst [vmem:[#allocation12_spill] sm:$0xff] %v5234_v1  ;;  %v1611_v7 = vshrl.u32 %v5199_v9, 16  ;;  %v1615_v35 = vrot.slane %v1613_v30, 1  ;;  %v1025_v11 = vrot.slane %v1020_v61, 4  ;;  %v1246_v63 = vld [vmem:[#allocation2 + $0x24] sm:$0xf] }
 0x158   : > { %1222 = vst.msk [vmem:[#allocation2 + $0xac] sm:$0xf] %vm585_vm1, %v1041_v53  ;;  %v4034_v51 = vcombine.low %v1418_v62, %v5058_v37  ;;  %v2122_v16 = vsel %vm1561_vm8, %v2117_v6, %v2121_v32  ;;  %v1620_v39 = vrot.slane %v1618_v55, 1  ;;  %v1024_v40 = vsel %vm4719_vm11, %v1016_v12, %v1023_v46  ;;  %v4370_v28 = vld [vmem:[#allocation2 + $0x2c] ss:$0 sps:$4 sm:$0x11]  }
 0x159   : > { %v1217_v20 = vsel %vm4609_vm5, %v1025_v11, %v1216_v41  ;;  %v2891_v30 = vsel %vm1834_vm7, %v2889_v43, %v2890_v23  ;;  %1215 = vst.msk [vmem:[#allocation2 + $0xa0] sm:$0xf] %vm585_vm1, %v1024_v40  ;;  %v1871_v37 = vrot.slane %v3949_v36, 1  ;;  %v1872_v47 = vrot.slane %v4368_v8, 1  ;;  %v1426_v41 = vld [vmem:[#allocation2 + $0x84] sm:$0xe] }
 0x15a   : > { %1891 = vrot.lane.b32.xlu0 %v1849_v42, %s4490_s9  ;;  %1218 = vst [vmem:[#allocation2 + $0xa4] sm:$0x1] %v1217_v20  ;;  %v1616_v3 = vor.u32 %v1615_v35, %v1611_v7  ;;  %v2208_v6 = vshrl.u32 %v5088_v26, 16  ;;  %v6398_v32 = vshll.u32 %v5088_v26, 16  ;;  %v2215_v17 = vshll.u32 %v5113_v18, 16 }
 0x15b   : > { %1905 = vrot.lane.b32.xlu1 %v5197_v15, %s4490_s9  ;;  %v1709_v15 = vshll.u32 %v5234_v1, 16  ;;  %v2602_v43 = vshll.u32 %v5092_v21, 16  ;;  %v3987_v58 = vcombine.low %v1354_v33, %v5144_v34  ;;  %v5258_v62 = vcombine.low %v1246_v63, %v5120_v13  ;;  %v5261_v48 = vld [vmem:[#allocation2 + $0x2c] ss:$0 sps:$4 sm:$0x11]  }
 0x15c   : > { %v2212_v55 = vrot.slane %v6398_v32, 1  ;;  %v1707_v12 = vshrl.u32 %v5234_v1, 16  ;;  %v1714_v53 = vshll.u32 %v4368_v8, 16  ;;  %v1873_v26 = vsel %vm1834_vm7, %v1871_v37, %v1872_v47  ;;  %v1362_v23 = vld [vmem:[#allocation2 + $0x84] sm:$0xe] }
 0x15d   : > { %6399 = vst [vmem:[#allocation13_spill] sm:$0xff] %v5258_v62  ;;  %v1711_v61 = vrot.slane %v1709_v15, 1  ;;  %v2862_v42 = vrot.slane %v4034_v51, 1  ;;  %v2863_v18 = vrot.slane %v4370_v28, 1  ;;  %v1621_v36 = vsel %vm1561_vm8, %v1616_v3, %v1620_v39  ;;  %v1262_v34 = vld [vmem:[#allocation2 + $0x84] sm:$0xf] }
 0x15e   : > { %2927 = vrot.lane.b32.xlu0 %v2891_v30, %s4495_s16  ;;  %v2213_v7 = vor.u32 %v2212_v55, %v2208_v6  ;;  %v2217_v35 = vrot.slane %v2215_v17, 1  ;;  %v2600_v13 = vshrl.u32 %v5092_v21, 16  ;;  %v2604_v8 = vrot.slane %v2602_v43, 1  ;;  %v5270_v63 = vld [vmem:[#allocation2 + $0x8c] ss:$0 sps:$4 sm:$0x11]  }
 0x15f   : > { %2273 = vrot.lane.b32.xlu1 %v2122_v16, %s4496_s17  ;;  %v2607_v46 = vshll.u32 %v4370_v28, 16  ;;  %v4042_v11 = vcombine.low %v1426_v41, %v5081_v49  ;;  %v1716_v33 = vrot.slane %v1714_v53, 1  ;;  %v1601_v51 = vshll.u32 %v5258_v62, 16  ;;  %v4428_v16 = vld [vmem:[%s6357_s3 + $0x8] sm:$0xff]  }
 0x160   : > { %v1712_v39 = vor.u32 %v1711_v61, %v1707_v12  ;;  %v2864_v40 = vsel %vm1834_vm7, %v2862_v42, %v2863_v18  ;;  %v2353_v20 = vrot.slane %v3987_v58, 1  ;;  %v2354_v30 = vrot.slane %v5261_v48, 1  ;;  %4211 = vmatprep.subr.bf16.mxu1 %v4428_v16  ;;  %v5286_v6 = vld [vmem:[#allocation2 + $0x8c] ss:$0 sps:$4 sm:$0x11]  }
 0x161   : > { %v2614_v21 = vshll.u32 %v5099_v52, 16  ;;  %v5279_v37 = vcombine.low %v1262_v34, %v5136_v0  ;;  %v2218_v49 = vsel %vm1561_vm8, %v2213_v7, %v2217_v35  ;;  %v3995_v47 = vcombine.low %v1362_v23, %v5158_v19  ;;  %4212 = vmatpush3.bf16.msra.mxu1 %v4428_v16  ;;  %v621_v16 = vld [vmem:[#allocation2 + $0x60] sm:$0x1]  ;;  %v5490_v24 = vld [vmem:[#allocation2 + $0xa4] ss:$0 sps:$4 sm:$0x11]  }
 0x162   : > { %1907 = vrot.lane.b32.xlu0 %v1873_v26, %s4490_s9  ;;  %v2605_v15 = vor.u32 %v2604_v8, %v2600_v13  ;;  %v2609_v28 = vrot.slane %v2607_v46, 1  ;;  %v1606_v3 = vshll.u32 %v5122_v5, 16  ;;  %v1599_v32 = vshrl.u32 %v5258_v62, 16 }
 0x163   : > { %1762 = vrot.lane.b32.xlu1 %v1621_v36, %s4491_s10  ;;  %6400 = vst [vmem:[#allocation14_spill] sm:$0xff] %v5279_v37  ;;  %v1603_v0 = vrot.slane %v1601_v51, 1  ;;  %v2886_v55 = vrot.slane %v4042_v11, 1  ;;  %v2887_v17 = vrot.slane %v5270_v63, 1  ;;  %v2698_v43 = vshll.u32 %v5103_v27, 16 }
 0x164   : > { %v1717_v41 = vsel %vm1561_vm8, %v1712_v39, %v1716_v33  ;;  %v2355_v19 = vsel %vm1834_vm7, %v2353_v20, %v2354_v30  ;;  %v2612_v58 = vshrl.u32 %v5099_v52, 16  ;;  %v2616_v5 = vrot.slane %v2614_v21, 1  ;;  %v1314_v36 = vld [vmem:[#allocation2 + $0x48] sm:$0xf]  ;;  %v5302_v52 = vld [vmem:[#allocation2 + $0x4c] sm:$0xf] }
 0x165   : > { %v2619_v12 = vshll.u32 %v5162_v44, 16  ;;  %v1697_v53 = vshll.u32 %v5279_v37, 16  ;;  %v2710_v26 = vshll.u32 %v5116_v14, 16  ;;  %v2610_v61 = vsel %vm1561_vm8, %v2605_v15, %v2609_v28  ;;  %v618_v28 = vld [vmem:[#allocation2 + $0x54] sm:$0x1] }
 0x166   : > { %2909 = vrot.lane.b32.xlu0 %v2864_v40, %s4495_s16  ;;  %v1608_v42 = vrot.slane %v1606_v3, 1  ;;  %v1604_v18 = vor.u32 %v1603_v0, %v1599_v32  ;;  %v2888_v23 = vsel %vm1834_vm7, %v2886_v55, %v2887_v17  ;;  %v2377_v7 = vrot.slane %v3995_v47, 1  ;;  %v6401_v47 = vld [vmem:[#allocation5_spill] sm:$0xff]  ;;  %v5325_v3 = vpop.permute.xlu1 %1883 }
 0x167   : > { %2289 = vrot.lane.b32.xlu1 %v2218_v49, %s4496_s17  ;;  %v2378_v35 = vrot.slane %v5286_v6, 1  ;;  %v2696_v44 = vshrl.u32 %v5103_v27, 16  ;;  %v2700_v34 = vrot.slane %v2698_v43, 1  ;;  %v2703_v13 = vshll.u32 %v5270_v63, 16  ;;  %v5318_v49 = vpop.permute.xlu0 %1754  ;;  %v674_v43 = vld [vmem:[#allocation2 + $0x5c] sm:$0x1] }
 0x168   : > { %v1695_v8 = vshrl.u32 %v5279_v37, 16  ;;  %v2617_v46 = vor.u32 %v2616_v5, %v2612_v58  ;;  %v2621_v11 = vrot.slane %v2619_v12, 1  ;;  %v1699_v33 = vrot.slane %v1697_v53, 1  ;;  %v6402_v53 = vld [vmem:[#allocation6_spill] sm:$0xff]  ;;  %v5483_v37 = vld [vmem:[#allocation2 + $0xa0] sm:$0xf] }
 0x169   : > { %v1702_v51 = vshll.u32 %v5141_v54, 16  ;;  %v2708_v39 = vshrl.u32 %v5116_v14, 16  ;;  %v2712_v40 = vrot.slane %v2710_v26, 1  ;;  %v2715_v27 = vshll.u32 %v5211_v60, 16  ;;  %v677_v60 = vld [vmem:[#allocation2 + $0x68] sm:$0x1] }
 0x16a   : > { %2399 = vrot.lane.b32.xlu0 %v2355_v19, %s4494_s15  ;;  %v2102_v20 = vshll.u32 %v5183_v31, 16  ;;  %v5314_v63 = vcombine.low %v1314_v36, %v5302_v52  ;;  %v2379_v30 = vsel %vm1834_vm7, %v2377_v7, %v2378_v35  ;;  %v1609_v21 = vsel %vm1561_vm8, %v1604_v18, %v1608_v42  ;;  %v6403_v42 = vld [vmem:[#allocation7_spill] sm:$0xff] }
 0x16b   : > { %1778 = vrot.lane.b32.xlu1 %v1717_v41, %s4491_s10  ;;  %v2701_v54 = vor.u32 %v2700_v34, %v2696_v44  ;;  %v483_v15 = vadd.f32 %v5167_v25, %v6401_v47  ;;  %v622_v14 = vsel %vm4609_vm5, 0, %v621_v16  ;;  %v2705_v32 = vrot.slane %v2703_v13, 1  ;;  %v6405_v44 = vld [vmem:[#allocation8_spill] sm:$0xff] }
 0x16c   : > { %v2622_v0 = vsel %vm1561_vm8, %v2617_v46, %v2621_v11  ;;  %v1700_v55 = vor.u32 %v1699_v33, %v1695_v8  ;;  %v1704_v17 = vrot.slane %v1702_v51, 1  ;;  %623 = vst [vmem:[#allocation2 + $0x60] sm:$0x1] %v622_v14  ;;  %v2713_v41 = vor.u32 %v2712_v40, %v2708_v39 }
 0x16d   : > { %v2717_v19 = vrot.slane %v2715_v27, 1  ;;  %v2100_v58 = vshrl.u32 %v5183_v31, 16  ;;  %v567_v5 = vmax.f32 %v483_v15, 0.0  ;;  %v2104_v12 = vrot.slane %v2102_v20, 1 }
 0x16e   : > { %2925 = vrot.lane.b32.xlu0 %v2888_v23, %s4495_s16  ;;  %v475_v26 = vadd.f32 %v5167_v25, %v6402_v53  ;;  %v486_v18 = vadd.f32 %v5167_v25, %v6403_v42  ;;  %v2107_v23 = vshll.u32 %v5261_v48, 16  ;;  %v678_v35 = vsel %vm4619_vm6, 0, %v677_v60 }
 0x16f   : > { %2781 = vrot.lane.b32.xlu1 %v2610_v61, %s4497_s18  ;;  %v619_v61 = vsel %vm4609_vm5, 0, %v618_v28  ;;  %v4104_v36 = vpack.c.bf16 %v567_v5, %v567_v5  ;;  %v478_v31 = vadd.f32 %v5167_v25, %v6405_v44  ;;  %v2198_v34 = vshll.u32 %v5188_v45, 16  ;;  %679 = vst [vmem:[#allocation2 + $0x68] sm:$0x1] %v678_v35  ;;  %v1377_v5 = vld [vmem:[#allocation2 + $0x48] sm:$0xf] }
 0x170   : > { %620 = vst [vmem:[#allocation2 + $0x54] sm:$0x1] %v619_v61  ;;  %v565_v13 = vmax.f32 %v475_v26, 0.0  ;;  %v568_v8 = vmax.f32 %v486_v18, 0.0  ;;  %v675_v46 = vsel %vm4619_vm6, 0, %v674_v43  ;;  %v2706_v48 = vsel %vm1561_vm8, %v2701_v54, %v2705_v32 }
 0x171   : > { %v925_v33 = vshrl.u32 %v4104_v36, 16  ;;  %v928_v51 = vshll.u32 %v4104_v36, 16  ;;  %v566_v16 = vmax.f32 %v478_v31, 0.0  ;;  %676 = vst [vmem:[#allocation2 + $0x5c] sm:$0x1] %v675_v46  ;;  %v1705_v40 = vsel %vm1561_vm8, %v1700_v55, %v1704_v17 }
 0x172   : > { %2415 = vrot.lane.b32.xlu0 %v2379_v30, %s4494_s15  ;;  %v2718_v27 = vsel %vm1561_vm8, %v2713_v41, %v2717_v19  ;;  %v4102_v20 = vpack.c.bf16 %v565_v13, %v565_v13  ;;  %v4105_v30 = vpack.c.bf16 %v568_v8, %v568_v8  ;;  %v2109_v47 = vrot.slane %v2107_v23, 1  ;;  %v1330_v43 = vld [vmem:[#allocation2 + $0xa8] sm:$0xf]  ;;  %v5356_v55 = vld [vmem:[#allocation2 + $0x4c] sm:$0xf] }
 0x173   : > { %1760 = vrot.lane.b32.xlu1 %v1609_v21, %s4491_s10  ;;  %v2105_v21 = vor.u32 %v2104_v12, %v2100_v58  ;;  %v927_v15 = vrot.slane %v925_v33, 7  ;;  %v4103_v14 = vpack.c.bf16 %v566_v16, %v566_v16  ;;  %v1177_v54 = vld [vmem:[#allocation2 + $0x60] sm:$0xf]  ;;  %v2196_v17 = vshrl.u32 %v5188_v45, 16  ;;  %v5363_v26 = vld [vmem:[#allocation2 + $0xac] sm:$0xf] }
 0x174   : > { %v908_v28 = vshrl.u32 %v4102_v20, 16  ;;  %v911_v60 = vshll.u32 %v4102_v20, 16  ;;  %v933_v32 = vshrl.u32 %v4105_v30, 16  ;;  %v2200_v61 = vrot.slane %v2198_v34, 1 }
 0x175   : > { %v5348_v11 = vpop.permute.xlu0 %2507  ;;  %v930_v41 = vor.u32 %v928_v51, %v927_v15  ;;  %v916_v19 = vshrl.u32 %v4103_v14, 16  ;;  %v919_v58 = vshll.u32 %v4103_v14, 16  ;;  %v931_v42 = vrot.slane %v927_v15, 4  ;;  %v1357_v51 = vld [vmem:[#allocation2 + $0x48] sm:$0xe] }
 0x176   : > { %2783 = vrot.lane.b32.xlu0 %v2622_v0, %s4497_s18  ;;  %v5350_v39 = vpop.permute.xlu1 %1997  ;;  %v936_v0 = vshll.u32 %v4105_v30, 16  ;;  %v910_v18 = vrot.slane %v908_v28, 7  ;;  %v935_v23 = vrot.slane %v933_v32, 7  ;;  %v2110_v36 = vsel %vm1561_vm8, %v2105_v21, %v2109_v47  ;;  %v1181_v31 = vld [vmem:[#allocation2 + $0x68] sm:$0x1] }
 0x177   : > { %2005 = vrot.lane.b32.xlu1 %v5314_v63, %s4493_s14  ;;  %v2203_v35 = vshll.u32 %v5286_v6, 16  ;;  %v1178_v45 = vsel %vm4704_vm10, %v930_v41, %v1177_v54  ;;  %v1170_v44 = vld [vmem:[#allocation2 + $0x54] sm:$0xf]  ;;  %v918_v13 = vrot.slane %v916_v19, 7  ;;  %v5372_v16 = vcombine.low %v1330_v43, %v5363_v26  ;;  %v1375_v30 = vld [vmem:[#allocation2 + $0x3c] sm:$0xf] }
 0x178   : > { %1179 = vst [vmem:[#allocation2 + $0x60] sm:$0xf] %v1178_v45  ;;  %v913_v8 = vor.u32 %v911_v60, %v910_v18  ;;  %v914_v46 = vrot.slane %v910_v18, 4  ;;  %v940_v34 = vrot.slane %v935_v23, 4  ;;  %v1174_v33 = vld [vmem:[#allocation2 + $0x5c] sm:$0x1]  ;;  %v5377_v21 = vcombine.low %v1377_v5, %v5356_v55 }
 0x179   : > { %v5359_v12 = vpop.permute.xlu0 %2523  ;;  %v921_v6 = vor.u32 %v919_v58, %v918_v13  ;;  %v645_v14 = vld [vmem:[#allocation2 + $0xc0] sm:$0x1]  ;;  %v1365_v54 = vld [vmem:[#allocation2 + $0xa8] sm:$0xe]  ;;  %v2201_v60 = vor.u32 %v2200_v61, %v2196_v17  ;;  %v2205_v32 = vrot.slane %v2203_v35, 1  ;;  %v3990_v5 = vcombine.low %v1357_v51, %v5302_v52 }
 0x17a   : > { %2799 = vrot.lane.b32.xlu0 %v2718_v27, %s4497_s18  ;;  %6406 = vst [vmem:[#allocation5_spill] sm:$0xff] %v5359_v12  ;;  %v5361_v53 = vpop.permute.xlu1 %2013  ;;  %v923_v27 = vrot.slane %v918_v13, 4  ;;  %v1171_v47 = vsel %vm4704_vm10, %v913_v8, %v1170_v44  ;;  %v5385_v28 = vld [vmem:[#allocation2 + $0x40] sm:$0xf]  ;;  %v642_v17 = vld [vmem:[#allocation2 + $0xb4] sm:$0x1]  ;;  %v547_v52 = vadd.f32 %v5167_v25, %v4965_v56  ;;  %v3998_v18 = vcombine.low %v1365_v54, %v5363_v26 }
 0x17b   : > { %2797 = vrot.lane.b32.xlu1 %v2706_v48, %s4497_s18  ;;  %6407 = vst [vmem:[#allocation6_spill] sm:$0xff] %v5361_v53  ;;  %v938_v48 = vor.u32 %v936_v0, %v935_v23  ;;  %1172 = vst [vmem:[#allocation2 + $0x54] sm:$0xf] %v1171_v47  ;;  %v922_v0 = vsel %vm4719_vm11, %v914_v46, %v921_v6  ;;  %v5397_v19 = vld [vmem:[#allocation2 + $0x50] ss:$0 sps:$4 sm:$0x11]   ;;  %v5410_v23 = vcombine.low %v1375_v30, %v5385_v28 }
 0x17c   : > { %v1175_v43 = vsel %vm4609_vm5, %v923_v27, %v1174_v33  ;;  %1173 = vst.msk [vmem:[#allocation2 + $0x58] sm:$0xf] %vm585_vm1, %v922_v0  ;;  %v5402_v58 = vld [vmem:[#allocation2 + $0x3c] sm:$0xe]  ;;  %v5404_v61 = vld [vmem:[#allocation2 + $0x48] sm:$0xe]  ;;  %v539_v26 = vadd.f32 %v5167_v25, %v4972_v2 }
 0x17d   : > { %v5374_v20 = vpop.permute.xlu0 %1995  ;;  %v939_v15 = vsel %vm4719_vm11, %v931_v42, %v938_v48  ;;  %1176 = vst [vmem:[#allocation2 + $0x5c] sm:$0x1] %v1175_v43  ;;  %v1391_v42 = vld [vmem:[#allocation2 + $0x9c] sm:$0xf]  ;;  %v5414_v35 = vld [vmem:[#allocation2 + $0xa0] sm:$0xf]  ;;  %v4037_v2 = vcombine.low %v5404_v61, %v5356_v55  ;;  %v550_v55 = vadd.f32 %v5167_v25, %v4978_v4 }
 0x17e   : > { %2271 = vrot.lane.b32.xlu0 %v2110_v36, %s4496_s17  ;;  %1180 = vst.msk [vmem:[#allocation2 + $0x64] sm:$0xf] %vm585_vm1, %v939_v15  ;;  %v5416_v45 = vld [vmem:[#allocation2 + $0xb0] ss:$0 sps:$4 sm:$0x11]   ;;  %v646_v44 = vsel %vm4609_vm5, 0, %v645_v14  ;;  %v5439_v30 = vcombine.low %v1391_v42, %v5414_v35 }
 0x17f   : > { %1776 = vrot.lane.b32.xlu1 %v1705_v40, %s4491_s10  ;;  %v1182_v40 = vsel %vm4609_vm5, %v940_v34, %v1181_v31  ;;  %v2206_v31 = vsel %vm1561_vm8, %v2201_v60, %v2205_v32  ;;  %v1393_v13 = vld [vmem:[#allocation2 + $0xa8] sm:$0xf]  ;;  %v5421_v8 = vld [vmem:[#allocation2 + $0xac] sm:$0xf]  ;;  %v583_v56 = vmax.f32 %v547_v52, 0.0  ;;  %v643_v46 = vsel %vm4609_vm5, 0, %v642_v17 }
 0x180   : > { %1183 = vst [vmem:[#allocation2 + $0x68] sm:$0x1] %v1182_v40  ;;  %v5393_v41 = vpop.permute.xlu1 %2521  ;;  %647 = vst [vmem:[#allocation2 + $0xc0] sm:$0x1] %v646_v44  ;;  %v2362_v51 = vrot.slane %v3990_v5, 1  ;;  %v2363_v6 = vrot.slane %v5397_v19, 1  ;;  %v5446_v32 = vcombine.low %v1393_v13, %v5421_v8 }
 0x181   : > { %6408 = vst [vmem:[#allocation7_spill] sm:$0xff] %v5393_v41  ;;  %v5412_v36 = vpop.permute.xlu0 %2011  ;;  %644 = vst [vmem:[#allocation2 + $0xb4] sm:$0x1] %v643_v46  ;;  %v701_v27 = vld [vmem:[#allocation2 + $0xc8] sm:$0x1]  ;;  %v4120_v14 = vpack.c.bf16 %v583_v56, %v583_v56  ;;  %v581_v54 = vmax.f32 %v539_v26, 0.0 }
 0x182   : > { %2515 = vrot.lane.b32.xlu0 %v5377_v21, %s4492_s13  ;;  %6409 = vst [vmem:[#allocation3_spill] sm:$0xff] %v5412_v36  ;;  %v1312_v47 = vld [vmem:[#allocation2 + $0x3c] sm:$0xf]  ;;  %v5441_v15 = vld [vmem:[#allocation2 + $0x40] sm:$0xf]  ;;  %v2386_v0 = vrot.slane %v3998_v18, 1  ;;  %v2364_v18 = vsel %vm1834_vm7, %v2362_v51, %v2363_v6 }
 0x183   : > { %2021 = vrot.lane.b32.xlu1 %v5372_v16, %s4493_s14  ;;  %v1293_v40 = vld [vmem:[#allocation2 + $0x3c] sm:$0xe]  ;;  %v2387_v43 = vrot.slane %v5416_v45, 1  ;;  %v5449_v5 = vld [vmem:[#allocation2 + $0x40] sm:$0xf]  ;;  %v1061_v42 = vshrl.u32 %v4120_v14, 16  ;;  %v4118_v44 = vpack.c.bf16 %v581_v54, %v581_v54 }
 0x184   : > { %v5430_v33 = vpop.permute.xlu1 %2397  ;;  %v698_v17 = vld [vmem:[#allocation2 + $0xbc] sm:$0x1]  ;;  %v5453_v61 = vld [vmem:[#allocation2 + $0x44] ss:$0 sps:$4 sm:$0x11]   ;;  %v1064_v52 = vshll.u32 %v4120_v14, 16  ;;  %v3942_v13 = vcombine.low %v1293_v40, %v5449_v5  ;;  %v542_v14 = vadd.f32 %v5167_v25, %v5004_v59 }
 0x185   : > { %6410 = vst [vmem:[#allocation8_spill] sm:$0xff] %v5430_v33  ;;  %v5443_v60 = vpop.permute.xlu0 %2907  ;;  %v1328_v26 = vld [vmem:[#allocation2 + $0x9c] sm:$0xf]  ;;  %v5463_v4 = vld [vmem:[#allocation2 + $0xa0] sm:$0xf]  ;;  %v584_v46 = vmax.f32 %v550_v55, 0.0  ;;  %v2388_v55 = vsel %vm1834_vm7, %v2386_v0, %v2387_v43 }
 0x186   : > { %2287 = vrot.lane.b32.xlu0 %v2206_v31, %s4496_s17  ;;  %v702_v31 = vsel %vm4619_vm6, 0, %v701_v27  ;;  %v1301_v27 = vld [vmem:[#allocation2 + $0x9c] sm:$0xe]  ;;  %v5469_v54 = vld [vmem:[#allocation2 + $0x50] ss:$0 sps:$4 sm:$0x11]  }
 0x187   : > { %2513 = vrot.lane.b32.xlu1 %v5410_v23, %s4492_s13  ;;  %703 = vst [vmem:[#allocation2 + $0xc8] sm:$0x1] %v702_v31  ;;  %v1063_v51 = vrot.slane %v1061_v42, 7  ;;  %v1044_v6 = vshrl.u32 %v4118_v44, 16  ;;  %v1047_v34 = vshll.u32 %v4118_v44, 16  ;;  %v699_v40 = vsel %vm4619_vm6, 0, %v698_v17 }
 0x188   : > { %v5457_v56 = vpop.permute.xlu1 %2413  ;;  %v5477_v31 = vcombine.low %v1312_v47, %v5441_v15  ;;  %v1252_v59 = vld [vmem:[#allocation2 + $0x48] sm:$0xf]  ;;  %v1253_v25 = vld [vmem:[#allocation2 + $0x4c] sm:$0xf]  ;;  %v1233_v41 = vld [vmem:[#allocation2 + $0xc0] sm:$0xf]  ;;  %v4121_v12 = vpack.c.bf16 %v584_v46, %v584_v46  ;;  %v5481_v44 = vcombine.low %v1328_v26, %v5463_v4  ;;  %v3950_v26 = vcombine.low %v1301_v27, %v5483_v37 }
 0x189   : > { %6411 = vst [vmem:[#allocation15_spill] sm:$0xff] %v5457_v56  ;;  %v5473_v48 = vpop.permute.xlu0 %1887  ;;  %v582_v36 = vmax.f32 %v542_v14, 0.0  ;;  %700 = vst [vmem:[#allocation2 + $0xbc] sm:$0x1] %v699_v40  ;;  %v1851_v42 = vrot.slane %v5453_v61, 1  ;;  %v1046_v56 = vrot.slane %v1044_v6, 7 }
 0x18a   : > { %2531 = vrot.lane.b32.xlu0 %v5446_v32, %s4492_s13  ;;  %6412 = vst [vmem:[#allocation16_spill] sm:$0xff] %v5473_v48  ;;  %v1294_v17 = vld [vmem:[#allocation2 + $0x48] sm:$0xe]  ;;  %v1066_v48 = vor.u32 %v1064_v52, %v1063_v51  ;;  %v1850_v47 = vrot.slane %v3942_v13, 1  ;;  %v1226_v43 = vld [vmem:[#allocation2 + $0xb4] sm:$0xf] }
 0x18b   : > { %2529 = vrot.lane.b32.xlu1 %v5439_v30, %s4492_s13  ;;  %v1069_v46 = vshrl.u32 %v4121_v12, 16  ;;  %v1072_v14 = vshll.u32 %v4121_v12, 16  ;;  %v4119_v40 = vpack.c.bf16 %v582_v36, %v582_v36  ;;  %v2871_v29 = vrot.slane %v4037_v2, 1 }
 0x18c   : > { %v5485_v0 = vpop.permute.xlu1 %1885  ;;  %v1234_v52 = vsel %vm4704_vm10, %v1066_v48, %v1233_v41  ;;  %v1049_v6 = vor.u32 %v1047_v34, %v1046_v56  ;;  %v1067_v53 = vrot.slane %v1063_v51, 4  ;;  %v2872_v12 = vrot.slane %v5469_v54, 1 }
 0x18d   : > { %v5495_v62 = vpop.permute.xlu0 %2923  ;;  %1235 = vst [vmem:[#allocation2 + $0xc0] sm:$0xf] %v1234_v52  ;;  %v1071_v13 = vrot.slane %v1069_v46, 7  ;;  %v1052_v33 = vshrl.u32 %v4119_v40, 16  ;;  %v1055_v1 = vshll.u32 %v4119_v40, 16  ;;  %v5498_v36 = vcombine.low %v1252_v59, %v1253_v25 }
 0x18e   : > { %2003 = vrot.lane.b32.xlu0 %v5477_v31, %s4493_s14  ;;  %6413 = vst [vmem:[#allocation17_spill] sm:$0xff] %v5495_v62  ;;  %v3943_v22 = vcombine.low %v1294_v17, %v1253_v25  ;;  %v1227_v2 = vsel %vm4704_vm10, %v1049_v6, %v1226_v43  ;;  %v1237_v27 = vld [vmem:[#allocation2 + $0xc8] sm:$0x1]  ;;  %v1050_v48 = vrot.slane %v1046_v56, 4  ;;  %v1852_v59 = vsel %vm1834_vm7, %v1850_v47, %v1851_v42  ;;  %v1356_v43 = vld [vmem:[#allocation2 + $0x3c] sm:$0xe] }
 0x18f   : > { %2405 = vrot.lane.b32.xlu1 %v2364_v18, %s4494_s15  ;;  %6414 = vst [vmem:[#allocation18_spill] sm:$0xff] %v5498_v36  ;;  %v5500_v18 = vld [vmem:[#allocation2 + $0x50] ss:$0 sps:$4 sm:$0x11]   ;;  %1228 = vst [vmem:[#allocation2 + $0xb4] sm:$0xf] %v1227_v2  ;;  %v1074_v34 = vor.u32 %v1072_v14, %v1071_v13 }
 0x190   : > { %v5504_v41 = vpop.permute.xlu1 %1901  ;;  %v1076_v51 = vrot.slane %v1071_v13, 4  ;;  %v1054_v46 = vrot.slane %v1052_v33, 7  ;;  %v1874_v40 = vrot.slane %v3950_v26, 1  ;;  %v1875_v25 = vrot.slane %v5490_v24, 1  ;;  %v1230_v17 = vld [vmem:[#allocation2 + $0xbc] sm:$0x1] }
 0x191   : > { %v2136_v38 = vshrl.u32 %v5314_v63, 16  ;;  %v1075_v56 = vsel %vm4719_vm11, %v1067_v53, %v1074_v34  ;;  %v6415_v42 = vshll.u32 %v5314_v63, 16  ;;  %v1853_v26 = vrot.slane %v3943_v22, 1  ;;  %v5522_v2 = vld [vmem:[#allocation2 + $0x44] ss:$0 sps:$4 sm:$0x11]  }
 0x192   : > { %2019 = vrot.lane.b32.xlu0 %v5481_v44, %s4493_s14  ;;  %v5512_v52 = vpop.permute.xlu0 %1903  ;;  %v1238_v14 = vsel %vm4609_vm5, %v1076_v51, %v1237_v27  ;;  %v1057_v33 = vor.u32 %v1055_v1, %v1054_v46  ;;  %v1059_v6 = vrot.slane %v1054_v46, 4  ;;  %v1854_v13 = vrot.slane %v5500_v18, 1  ;;  %1236 = vst.msk [vmem:[#allocation2 + $0xc4] sm:$0xf] %vm585_vm1, %v1075_v56 }
 0x193   : > { %2421 = vrot.lane.b32.xlu1 %v2388_v55, %s4494_s15  ;;  %v2873_v55 = vsel %vm1834_vm7, %v2871_v29, %v2872_v12  ;;  %v2140_v47 = vrot.slane %v6415_v42, 1  ;;  %1239 = vst [vmem:[#allocation2 + $0xc8] sm:$0x1] %v1238_v14  ;;  %v2143_v53 = vshll.u32 %v5397_v19, 16  ;;  %v1637_v1 = vshll.u32 %v5498_v36, 16 }
 0x194   : > { %v1058_v29 = vsel %vm4719_vm11, %v1050_v48, %v1057_v33  ;;  %v1231_v63 = vsel %vm4609_vm5, %v1059_v6, %v1230_v17  ;;  %v2234_v22 = vshll.u32 %v5372_v16, 16  ;;  %v1428_v12 = vld [vmem:[#allocation2 + $0x9c] sm:$0xe]  ;;  %v3989_v27 = vcombine.low %v1356_v43, %v5441_v15  ;;  %v5546_v56 = vld [vmem:[#allocation2 + $0x44] ss:$0 sps:$4 sm:$0x11]  }
 0x195   : > { %1229 = vst.msk [vmem:[#allocation2 + $0xb8] sm:$0xf] %vm585_vm1, %v1058_v29  ;;  %1232 = vst [vmem:[#allocation2 + $0xbc] sm:$0x1] %v1231_v63  ;;  %v1876_v19 = vsel %vm1834_vm7, %v1874_v40, %v1875_v25  ;;  %v2141_v57 = vor.u32 %v2140_v47, %v2136_v38  ;;  %v1855_v48 = vsel %vm1834_vm7, %v1853_v26, %v1854_v13  ;;  %v2869_v17 = vrot.slane %v5522_v2, 1 }
 0x196   : > { %2915 = vrot.lane.b32.xlu0 %v2873_v55, %s4495_s16  ;;  %v6416_v46 = vcombine.low %v5402_v58, %v5385_v28  ;;  %v2145_v14 = vrot.slane %v2143_v53, 1  ;;  %v1635_v15 = vshrl.u32 %v5498_v36, 16  ;;  %v1639_v43 = vrot.slane %v1637_v1, 1  ;;  %v1250_v25 = vld [vmem:[#allocation2 + $0x3c] sm:$0xf] }
 0x197   : > { %1893 = vrot.lane.b32.xlu1 %v1852_v59, %s4490_s9  ;;  %v1642_v40 = vshll.u32 %v5500_v18, 16  ;;  %v1364_v38 = vld [vmem:[#allocation2 + $0x9c] sm:$0xe]  ;;  %v4044_v33 = vcombine.low %v1428_v12, %v5414_v35  ;;  %v2232_v58 = vshrl.u32 %v5372_v16, 16  ;;  %v2236_v6 = vrot.slane %v2234_v22, 1 }
 0x198   : > { %v5539_v51 = vpop.permute.xlu0 %2395  ;;  %v2868_v59 = vrot.slane %v6416_v46, 1  ;;  %v2239_v55 = vshll.u32 %v5416_v45, 16  ;;  %v5557_v42 = vld [vmem:[#allocation2 + $0xa4] ss:$0 sps:$4 sm:$0x11]   ;;  %v2626_v47 = vshll.u32 %v5410_v23, 16  ;;  %v5565_v35 = vcombine.low %v1250_v25, %v5449_v5 }
 0x199   : > { %v5536_v34 = vpop.permute.xlu1 %2269  ;;  %v2359_v13 = vrot.slane %v3989_v27, 1  ;;  %v2360_v53 = vrot.slane %v5546_v56, 1  ;;  %v2146_v1 = vsel %vm1561_vm8, %v2141_v57, %v2145_v14  ;;  %v1640_v16 = vor.u32 %v1639_v43, %v1635_v15  ;;  %v5575_v5 = vld [vmem:[#allocation2 + $0xa4] ss:$0 sps:$4 sm:$0x11]  }
 0x19a   : > { %1895 = vrot.lane.b32.xlu0 %v1855_v48, %s4490_s9  ;;  %v2870_v18 = vsel %vm1834_vm7, %v2868_v59, %v2869_v17  ;;  %v1644_v29 = vrot.slane %v1642_v40, 1  ;;  %v2638_v45 = vshll.u32 %v5377_v21, 16  ;;  %v3997_v63 = vcombine.low %v1364_v38, %v5463_v4  ;;  %v4426_v36 = vld [vmem:[#allocation2 + $0x5c] ss:$0 sps:$4 sm:$0x11]  }
 0x19b   : > { %1909 = vrot.lane.b32.xlu1 %v1876_v19, %s4490_s9  ;;  %v2237_v12 = vor.u32 %v2236_v6, %v2232_v58  ;;  %v2241_v27 = vrot.slane %v2239_v55, 1  ;;  %v2624_v19 = vshrl.u32 %v5410_v23, 16  ;;  %v2361_v57 = vsel %vm1834_vm7, %v2359_v13, %v2360_v53 }
 0x19c   : > { %v5553_v28 = vpop.permute.xlu0 %2921  ;;  %v2628_v46 = vrot.slane %v2626_v47, 1  ;;  %v2892_v59 = vrot.slane %v4044_v33, 1  ;;  %v2893_v17 = vrot.slane %v5557_v42, 1  ;;  %v1645_v14 = vsel %vm1561_vm8, %v1640_v16, %v1644_v29  ;;  %v1266_v29 = vld [vmem:[#allocation2 + $0x9c] sm:$0xf] }
 0x19d   : > { %6417 = vst [vmem:[#allocation19_spill] sm:$0xff] %v5553_v28  ;;  %v5560_v26 = vpop.permute.xlu1 %1758  ;;  %v2631_v4 = vshll.u32 %v5522_v2, 16  ;;  %v1625_v15 = vshll.u32 %v5565_v35, 16  ;;  %v2734_v23 = vshll.u32 %v5446_v32, 16  ;;  %v2383_v40 = vrot.slane %v3997_v63, 1 }
 0x19e   : > { %2913 = vrot.lane.b32.xlu0 %v2870_v18, %s4495_s16  ;;  %v2384_v25 = vrot.slane %v5575_v5, 1  ;;  %v2636_v38 = vshrl.u32 %v5377_v21, 16  ;;  %v2640_v33 = vrot.slane %v2638_v45, 1  ;;  %v2242_v6 = vsel %vm1561_vm8, %v2237_v12, %v2241_v27  ;;  %v5596_v18 = vld [vmem:[#allocation2 + $0xb0] ss:$0 sps:$4 sm:$0x11]  }
 0x19f   : > { %2277 = vrot.lane.b32.xlu1 %v2146_v1, %s4496_s17  ;;  %v2629_v2 = vor.u32 %v2628_v46, %v2624_v19  ;;  %v2894_v55 = vsel %vm1834_vm7, %v2892_v59, %v2893_v17  ;;  %v2643_v47 = vshll.u32 %v5469_v54, 16  ;;  %v2633_v13 = vrot.slane %v2631_v4, 1 }
 0x1a0   : > { %v5572_v22 = vpop.permute.xlu0 %2411  ;;  %v1623_v53 = vshrl.u32 %v5565_v35, 16  ;;  %v1627_v1 = vrot.slane %v1625_v15, 1  ;;  %v1630_v21 = vshll.u32 %v5453_v61, 16  ;;  %v2722_v16 = vshll.u32 %v5439_v30, 16  ;;  %v6421_v15 = vld [vmem:[#allocation4_spill] sm:$0xff] }
 0x1a1   : > { %6418 = vst [vmem:[#allocation20_spill] sm:$0xff] %v5572_v22  ;;  %v5577_v48 = vpop.permute.xlu1 %2285  ;;  %v2126_v45 = vshll.u32 %v5477_v31, 16  ;;  %v2385_v63 = vsel %vm1834_vm7, %v2383_v40, %v2384_v25  ;;  %v2641_v12 = vor.u32 %v2640_v33, %v2636_v38  ;;  %v2645_v19 = vrot.slane %v2643_v47, 1  ;;  %v1318_v25 = vld [vmem:[#allocation2 + $0x60] sm:$0xf] }
 0x1a2   : > { %2403 = vrot.lane.b32.xlu0 %v2361_v57, %s4494_s15  ;;  %v2732_v57 = vshrl.u32 %v5446_v32, 16  ;;  %v2736_v61 = vrot.slane %v2734_v23, 1  ;;  %v2739_v46 = vshll.u32 %v5596_v18, 16  ;;  %v5612_v59 = vcombine.low %v1266_v29, %v5483_v37  ;;  %v5623_v37 = vld [vmem:[#allocation2 + $0x64] sm:$0xf] }
 0x1a3   : > { %1766 = vrot.lane.b32.xlu1 %v1645_v14, %s4491_s10  ;;  %v2634_v17 = vsel %vm1561_vm8, %v2629_v2, %v2633_v13  ;;  %v1628_v14 = vor.u32 %v1627_v1, %v1623_v53  ;;  %v1632_v4 = vrot.slane %v1630_v21, 1  ;;  %v2941_v40 = vsel %vm2939_vm12, %v6421_v15, %v5318_v49  ;;  %v704_v22 = vld [vmem:[#allocation2 + $0xd4] sm:$0x1] }
 0x1a4   : > { %v5587_v43 = vpop.permute.xlu0 %2779  ;;  %6420 = vst [vmem:[#allocation22_spill] sm:$0xff] %v5612_v59  ;;  %v2720_v32 = vshrl.u32 %v5439_v30, 16  ;;  %v2724_v23 = vrot.slane %v2722_v16, 1  ;;  %v2727_v33 = vshll.u32 %v5557_v42, 16  ;;  %v2128_v2 = vrot.slane %v2126_v45, 1 }
 0x1a5   : > { %v5591_v58 = vpop.permute.xlu1 %1774  ;;  %v2646_v49 = vsel %vm1561_vm8, %v2641_v12, %v2645_v19  ;;  %v2737_v13 = vor.u32 %v2736_v61, %v2732_v57  ;;  %v2741_v53 = vrot.slane %v2739_v46, 1  ;;  %v2974_v30 = vsel %vm2972_vm13, %v2941_v40, %v5325_v3  ;;  %v1381_v40 = vld [vmem:[#allocation2 + $0x60] sm:$0xf] }
 0x1a6   : > { %2929 = vrot.lane.b32.xlu0 %v2894_v55, %s4495_s16  ;;  %v2131_v55 = vshll.u32 %v5546_v56, 16  ;;  %v2222_v1 = vshll.u32 %v5481_v44, 16  ;;  %v1633_v21 = vsel %vm1561_vm8, %v1628_v14, %v1632_v4  ;;  %v3007_v56 = vsel %vm3005_vm14, %v2974_v30, %v5374_v20  ;;  %v1379_v30 = vld [vmem:[#allocation2 + $0x54] sm:$0xf] }
 0x1a7   : > { %2293 = vrot.lane.b32.xlu1 %v2242_v6, %s4496_s17  ;;  %v2124_v6 = vshrl.u32 %v5477_v31, 16  ;;  %v1721_v31 = vshll.u32 %v5612_v59, 16  ;;  %v5641_v42 = vcombine.low %v1318_v25, %v5623_v37  ;;  %vm3103_vm1 = vcmask 195584  }
 0x1a8   : > { %v5604_v54 = vpop.permute.xlu0 %2795  ;;  %v2725_v3 = vor.u32 %v2724_v23, %v2720_v32  ;;  %v2729_v29 = vrot.slane %v2727_v33, 1  ;;  %v2742_v57 = vsel %vm1561_vm8, %v2737_v13, %v2741_v53  ;;  %v1719_v20 = vshrl.u32 %v5612_v59, 16  ;;  %v1382_v32 = vld [vmem:[#allocation2 + $0x64] sm:$0xf] }
 0x1a9   : > { %6419 = vst [vmem:[#allocation21_spill] sm:$0xff] %v5604_v54  ;;  %v5607_v27 = vpop.permute.xlu1 %2001  ;;  %v2129_v45 = vor.u32 %v2128_v2, %v2124_v6  ;;  %v1723_v46 = vrot.slane %v1721_v31, 1  ;;  %v2220_v23 = vshrl.u32 %v5481_v44, 16  ;;  %v2224_v33 = vrot.slane %v2222_v1, 1  ;;  %v5681_v1 = vld [vmem:[#allocation2 + $0x58] sm:$0xf] }
 0x1aa   : > { %2419 = vrot.lane.b32.xlu0 %v2385_v63, %s4494_s15  ;;  %v2133_v63 = vrot.slane %v2131_v55, 1  ;;  %v2730_v6 = vsel %vm1561_vm8, %v2725_v3, %v2729_v29  ;;  %v1359_v31 = vld [vmem:[#allocation2 + $0x60] sm:$0xe]  ;;  %v1316_v3 = vld [vmem:[#allocation2 + $0x54] sm:$0xf] }
 0x1ab   : > { %2785 = vrot.lane.b32.xlu1 %v2634_v17, %s4497_s18  ;;  %v1726_v17 = vshll.u32 %v5490_v24, 16  ;;  %v1724_v2 = vor.u32 %v1723_v46, %v1719_v20  ;;  %v2225_v44 = vor.u32 %v2224_v33, %v2220_v23  ;;  %v5690_v29 = vld [vmem:[#allocation2 + $0x58] sm:$0xf]  ;;  %v1295_v20 = vld [vmem:[#allocation2 + $0x54] sm:$0xe]  ;;  %v2162_v33 = vshll.u32 %v5641_v42, 16 }
 0x1ac   : > { %v5621_v38 = vpop.permute.xlu0 %1756  ;;  %v2134_v15 = vsel %vm1561_vm8, %v2129_v45, %v2133_v63  ;;  %v5695_v63 = vcombine.low %v1379_v30, %v5681_v1  ;;  %v648_v23 = vld [vmem:[#allocation2 + $0xcc] sm:$0x1]  ;;  %v5722_v30 = vld [vmem:[#allocation2 + $0x68] ss:$0 sps:$4 sm:$0x11]  }
 0x1ad   : > { %v5628_v47 = vpop.permute.xlu1 %2793  ;;  %v1728_v55 = vrot.slane %v1726_v17, 1  ;;  %v3992_v17 = vcombine.low %v1359_v31, %v5623_v37  ;;  %v5712_v37 = vcombine.low %v1316_v3, %v5690_v29  ;;  %v4425_v54 = vld [vmem:[#allocation2 + $0x5c] ss:$0 sps:$4 sm:$0x11]  }
 0x1ae   : > { %6422 = vst [vmem:[#allocation4_spill] sm:$0xff] %v5628_v47  ;;  %2787 = vrot.lane.b32.xlu0 %v2646_v49, %s4497_s18  ;;  %v5673_v49 = vcombine.low %v1381_v40, %v1382_v32  ;;  %v1255_v40 = vld [vmem:[#allocation2 + $0x58] sm:$0xf]  ;;  %v649_v47 = vsel %vm4609_vm5, 0, %v648_v23  ;;  %v2650_v50 = vshll.u32 %v5695_v63, 16 }
 0x1af   : > { %1764 = vrot.lane.b32.xlu1 %v1633_v21, %s4491_s10  ;;  %v1729_v53 = vsel %vm1561_vm8, %v1724_v2, %v1728_v55  ;;  %v1423_v21 = vld [vmem:[#allocation2 + $0x60] sm:$0xe]  ;;  %v5714_v2 = vld [vmem:[#allocation2 + $0x5c] ss:$0 sps:$4 sm:$0x11]   ;;  %v3944_v55 = vcombine.low %v1295_v20, %v1255_v40  ;;  %v2368_v31 = vrot.slane %v3992_v17, 1 }
 0x1b0   : > { %v2268_v16 = vpop.permute.xlu0 %2267  ;;  %v1857_v28 = vrot.slane %v5714_v2, 1  ;;  %650 = vst [vmem:[#allocation2 + $0xcc] sm:$0x1] %v649_v47 }
 0x1b1   : > { %v5643_v12 = vpop.permute.xlu1 %1772  ;;  %v3039_v19 = vsel %vm343_vm0, %v3007_v56, %v2268_v16  ;;  %v5688_v16 = vld [vmem:[#allocation2 + $0x68] ss:$0 sps:$4 sm:$0x11]   ;;  %v1856_v17 = vrot.slane %v3944_v55, 1 }
 0x1b2   : > { %v3072_v61 = vsel %vm3070_vm15, %v3039_v19, %v5539_v51  ;;  %2803 = vrot.lane.b32.xlu0 %v2742_v57, %s4497_s18  ;;  %v4039_v19 = vcombine.low %v1423_v21, %v1382_v32  ;;  %v1257_v32 = vld [vmem:[#allocation2 + $0x64] sm:$0xf] }
 0x1b3   : > { %2009 = vrot.lane.b32.xlu1 %v5641_v42, %s4493_s14  ;;  %v3105_v14 = vsel %vm3103_vm1, %v3072_v61, %v5348_v11  ;;  %v2227_v11 = vshll.u32 %v5575_v5, 16  ;;  %v4431_v5 = vld [vmem:[%s6357_s3 + $0x10] ss:$0 sps:$4 sm:$0x33]  }
 0x1b4   : > { %v5656_v4 = vpop.permute.xlu0 %2511  ;;  %v3138_v51 = vsel %vm3136_vm2, %v3105_v14, %v5587_v43  ;;  %v5698_v61 = vld [vmem:[#allocation2 + $0x68] ss:$0 sps:$4 sm:$0x11]   ;;  %4283 = vmatprep.subr.msk.bf16.mxu1 %vm3262_vm9, %v4431_v5  ;;  %v3264_v46 = vsel %vm3262_vm9, %v4431_v5, 0  ;;  %v1395_v14 = vld [vmem:[#allocation2 + $0xb4] sm:$0xf] }
 0x1b5   : > { %v5661_v25 = vpop.permute.xlu1 %2017  ;;  %v3171_v24 = vsel %vm3169_vm3, %v3138_v51, %v5443_v60  ;;  %v2229_v13 = vrot.slane %v2227_v11, 1  ;;  %v1296_v51 = vld [vmem:[#allocation2 + $0x60] sm:$0xe]  ;;  %4214 = vmatpush3.bf16.msra.mxu1 %v3264_v46  ;;  %v1422_v11 = vld [vmem:[#allocation2 + $0x54] sm:$0xe] }
 0x1b6   : > { %2275 = vrot.lane.b32.xlu0 %v2134_v15, %s4496_s17  ;;  %4215 = vmatprep.mubr.msk.bf16.mxu1 %vm3229_vm4, %v3171_v24  ;;  %v5703_v15 = vld [vmem:[#allocation2 + $0xb8] sm:$0xf]  ;;  %v1256_v24 = vld [vmem:[#allocation2 + $0x60] sm:$0xf]  ;;  %v3945_v21 = vcombine.low %v1296_v51, %v1257_v32  ;;  %v4038_v20 = vcombine.low %v1422_v11, %v5681_v1  ;;  %v1358_v46 = vld [vmem:[#allocation2 + $0x54] sm:$0xe] }
 0x1b7   : > { %2801 = vrot.lane.b32.xlu1 %v2730_v6, %s4497_s18  ;;  %v2230_v57 = vsel %vm1561_vm8, %v2225_v44, %v2229_v13  ;;  %v2877_v44 = vrot.slane %v4039_v19, 1  ;;  %v5719_v5 = vcombine.low %v1395_v14, %v5703_v15  ;;  %v5727_v3 = vcombine.low %v1256_v24, %v1257_v32  ;;  %v1254_v51 = vld [vmem:[#allocation2 + $0x54] sm:$0xf] }
 0x1b8   : > { %v5671_v43 = vpop.permute.xlu0 %2283  ;;  %v2160_v19 = vshrl.u32 %v5641_v42, 16  ;;  %v2164_v14 = vrot.slane %v2162_v33, 1  ;;  %v2167_v1 = vshll.u32 %v5688_v16, 16  ;;  %v1859_v32 = vrot.slane %v3945_v21, 1 }
 0x1b9   : > { %6423 = vst [vmem:[#allocation23_spill] sm:$0xff] %v5671_v43  ;;  %v5675_v60 = vpop.permute.xlu1 %2509  ;;  %v1860_v11 = vrot.slane %v5722_v30, 1  ;;  %v1661_v55 = vshll.u32 %v5727_v3, 16  ;;  %v2874_v23 = vrot.slane %v4038_v20, 1  ;;  %v2875_v20 = vrot.slane %v4425_v54, 1 }
 0x1ba   : > { %2519 = vrot.lane.b32.xlu0 %v5673_v49, %s4492_s13  ;;  %v2165_v47 = vor.u32 %v2164_v14, %v2160_v19  ;;  %v705_v19 = vsel %vm4619_vm6, 0, %v704_v22  ;;  %v2652_v14 = vrot.slane %v2650_v50, 1 }
 0x1bb   : > { %1780 = vrot.lane.b32.xlu1 %v1729_v53, %s4491_s10  ;;  %v2878_v53 = vrot.slane %v5698_v61, 1  ;;  %v1861_v43 = vsel %vm1834_vm7, %v1859_v32, %v1860_v11  ;;  %v1663_v59 = vrot.slane %v1661_v55, 1  ;;  %706 = vst [vmem:[#allocation2 + $0xd4] sm:$0x1] %v705_v19  ;;  %v2876_v22 = vsel %vm1834_vm7, %v2874_v23, %v2875_v20 }
 0x1bc   : > { %v5686_v56 = vpop.permute.xlu0 %2527  ;;  %v5787_v20 = vld [vmem:[#allocation2 + $0xb0] ss:$0 sps:$4 sm:$0x11]  }
 0x1bd   : > { %v5692_v45 = vpop.permute.xlu1 %2525  ;;  %v2879_v42 = vsel %vm1834_vm7, %v2877_v44, %v2878_v53  ;;  %v2662_v44 = vshll.u32 %v5673_v49, 16  ;;  %v5750_v53 = vcombine.low %v1254_v51, %v1255_v40  ;;  %v1268_v40 = vld [vmem:[#allocation2 + $0xa8] sm:$0xf]  ;;  %v5766_v51 = vld [vmem:[#allocation2 + $0xac] sm:$0xf] }
 0x1be   : > { %2291 = vrot.lane.b32.xlu0 %v2230_v57, %s4496_s17  ;;  %v2369_v57 = vrot.slane %v5688_v16, 1  ;;  %v3991_v16 = vcombine.low %v1358_v46, %v5690_v29  ;;  %v1666_v29 = vshll.u32 %v5722_v30, 16  ;;  %v2648_v46 = vshrl.u32 %v5695_v63, 16 }
 0x1bf   : > { %2517 = vrot.lane.b32.xlu1 %v5695_v63, %s4492_s13  ;;  %v2655_v30 = vshll.u32 %v4425_v54, 16  ;;  %v2366_v63 = vrot.slane %v4426_v36, 1  ;;  %v2943_v54 = vsel %vm2939_vm12, %v5021_v10, %v5621_v38  ;;  %v2155_v38 = vshll.u32 %v4426_v36, 16 }
 0x1c0   : > { %v5709_v6 = vpop.permute.xlu0 %1999  ;;  %v2370_v33 = vsel %vm1834_vm7, %v2368_v31, %v2369_v57  ;;  %v1858_v57 = vsel %vm1834_vm7, %v1856_v17, %v1857_v28  ;;  %v2660_v28 = vshrl.u32 %v5673_v49, 16  ;;  %v2150_v17 = vshll.u32 %v5712_v37, 16 }
 0x1c1   : > { %v5716_v13 = vpop.permute.xlu1 %2401  ;;  %v2667_v49 = vshll.u32 %v5698_v61, 16  ;;  %v1668_v50 = vrot.slane %v1666_v29, 1  ;;  %v2657_v61 = vrot.slane %v2655_v30, 1  ;;  %v2976_v30 = vsel %vm2972_vm13, %v2943_v54, %v5485_v0  ;;  %v1303_v54 = vld [vmem:[#allocation2 + $0xb4] sm:$0xe] }
 0x1c2   : > { %2007 = vrot.lane.b32.xlu0 %v5712_v37, %s4493_s14  ;;  %v2152_v23 = vrot.slane %v2150_v17, 1  ;;  %v1647_v17 = vshrl.u32 %v5750_v53, 16  ;;  %v1738_v36 = vshll.u32 %v5787_v20, 16 }
 0x1c3   : > { %2533 = vrot.lane.b32.xlu1 %v5719_v5, %s4492_s13  ;;  %v2669_v10 = vrot.slane %v2667_v49, 1 }
 0x1c4   : > { %v5733_v62 = vpop.permute.xlu0 %2015 }
 0x1c5   : > { %v5738_v24 = vpop.permute.xlu1 %2417 }
 0x1c6   : > { %2919 = vrot.lane.b32.xlu0 %v2879_v42, %s4495_s16  ;;  %v2169_v42 = vrot.slane %v2167_v1, 1  ;;  %v2365_v1 = vrot.slane %v3991_v16, 1  ;;  %v2148_v16 = vshrl.u32 %v5712_v37, 16 }
 0x1c7   : > { %2409 = vrot.lane.b32.xlu1 %v2370_v33, %s4494_s15  ;;  %v1659_v33 = vshrl.u32 %v5727_v3, 16 }
 0x1c8   : > { %v5752_v21 = vpop.permute.xlu0 %2911  ;;  %v2170_v7 = vsel %vm1561_vm8, %v2165_v47, %v2169_v42  ;;  %v1654_v42 = vshll.u32 %v5714_v2, 16  ;;  %v2153_v49 = vor.u32 %v2152_v23, %v2148_v16 }
 0x1c9   : > { %v5754_v31 = vpop.permute.xlu1 %1889  ;;  %v1664_v55 = vor.u32 %v1663_v59, %v1659_v33  ;;  %v2653_v59 = vor.u32 %v2652_v14, %v2648_v46  ;;  %v1429_v33 = vld [vmem:[#allocation2 + $0xa8] sm:$0xe] }
 0x1ca   : > { %1899 = vrot.lane.b32.xlu0 %v1861_v43, %s4490_s9  ;;  %v2664_v43 = vrot.slane %v2662_v44, 1  ;;  %v1649_v44 = vshll.u32 %v5750_v53, 16  ;;  %v4045_v2 = vcombine.low %v1429_v33, %v5421_v8 }
 0x1cb   : > { %1897 = vrot.lane.b32.xlu1 %v1858_v57, %s4490_s9  ;;  %v5777_v57 = vcombine.low %v1268_v40, %v5766_v51  ;;  %v2367_v40 = vsel %vm1834_vm7, %v2365_v1, %v2366_v63  ;;  %v1669_v37 = vsel %vm1561_vm8, %v1664_v55, %v1668_v50  ;;  %v1430_v1 = vld [vmem:[#allocation2 + $0xb4] sm:$0xe]  ;;  %v2157_v55 = vrot.slane %v2155_v38, 1 }
 0x1cc   : > { %v1892_v32 = vpop.permute.xlu0 %1891  ;;  %v2665_v19 = vor.u32 %v2664_v43, %v2660_v28  ;;  %v1651_v46 = vrot.slane %v1649_v44, 1  ;;  %v2658_v28 = vsel %vm1561_vm8, %v2653_v59, %v2657_v61  ;;  %v1334_v59 = vld [vmem:[#allocation2 + $0xc0] sm:$0xf]  ;;  %v5808_v61 = vld [vmem:[#allocation2 + $0xc4] sm:$0xf]  ;;  %v2895_v16 = vrot.slane %v4045_v2, 1 }
 0x1cd   : > { %v5769_v11 = vpop.permute.xlu1 %1905  ;;  %v1733_v14 = vshll.u32 %v5777_v57, 16  ;;  %v1731_v8 = vshrl.u32 %v5777_v57, 16  ;;  %v4046_v23 = vcombine.low %v1430_v1, %v5703_v15  ;;  %v1740_v38 = vrot.slane %v1738_v36, 1 }
 0x1ce   : > { %2917 = vrot.lane.b32.xlu0 %v2876_v22, %s4495_s16  ;;  %v1656_v22 = vrot.slane %v1654_v42, 1  ;;  %v2670_v63 = vsel %vm1561_vm8, %v2665_v19, %v2669_v10  ;;  %v1652_v44 = vor.u32 %v1651_v46, %v1647_v17  ;;  %v3009_v19 = vsel %vm3005_vm14, %v2976_v30, %v5350_v39  ;;  %v6424_v39 = vld [vmem:[#allocation11_spill] sm:$0xff] }
 0x1cf   : > { %2281 = vrot.lane.b32.xlu1 %v2170_v7, %s4496_s17  ;;  %v1735_v0 = vrot.slane %v1733_v14, 1  ;;  %v2896_v17 = vrot.slane %v5596_v18, 1  ;;  %v3968_v2 = vcombine.low %v1334_v59, %v5808_v61  ;;  %v2959_v30 = vsel %vm2939_vm12, %v6424_v39, %v5643_v12 }
 0x1d0   : > { %v5784_v47 = vpop.permute.xlu0 %2927  ;;  %v1657_v46 = vsel %vm1561_vm8, %v1652_v44, %v1656_v22  ;;  %v3041_v18 = vsel %vm343_vm0, %v3009_v19, %v5536_v34  ;;  %v2898_v36 = vrot.slane %v4046_v23, 1  ;;  %v6425_v44 = vld [vmem:[#allocation12_spill] sm:$0xff] }
 0x1d1   : > { %v5789_v29 = vpop.permute.xlu1 %2273  ;;  %v1736_v15 = vor.u32 %v1735_v0, %v1731_v8  ;;  %v2258_v0 = vshll.u32 %v3968_v2, 16 }
 0x1d2   : > { %2407 = vrot.lane.b32.xlu0 %v2367_v40, %s4494_s15  ;;  %v5816_v40 = vld [vmem:[#allocation2 + $0xbc] ss:$0 sps:$4 sm:$0x11]  }
 0x1d3   : > { %1770 = vrot.lane.b32.xlu1 %v1669_v37, %s4491_s10  ;;  %v2158_v37 = vsel %vm1561_vm8, %v2153_v49, %v2157_v55  ;;  %v1881_v22 = vrot.slane %v5816_v40, 1  ;;  %v5841_v55 = vld [vmem:[#allocation2 + $0xc8] ss:$0 sps:$4 sm:$0x11]   ;;  %v1741_v8 = vsel %vm1561_vm8, %v1736_v15, %v1740_v38  ;;  %v1878_v15 = vrot.slane %v5787_v20, 1 }
 0x1d4   : > { %v1908_v43 = vpop.permute.xlu0 %1907  ;;  %v2260_v39 = vrot.slane %v2258_v0, 1  ;;  %v6428_v0 = vld [vmem:[#allocation13_spill] sm:$0xff] }
 0x1d5   : > { %v1763_v7 = vpop.permute.xlu1 %1762 }
 0x1d6   : > { %v2949_v50 = vsel %vm2939_vm12, %v5199_v9, %v1763_v7  ;;  %2791 = vrot.lane.b32.xlu0 %v2670_v63, %s4497_s18  ;;  %v5814_v9 = vld [vmem:[#allocation2 + $0xb8] sm:$0xf]  ;;  %v2897_v63 = vsel %vm1834_vm7, %v2895_v16, %v2896_v17  ;;  %v2263_v17 = vshll.u32 %v5841_v55, 16 }
 0x1d7   : > { %2789 = vrot.lane.b32.xlu1 %v2658_v28, %s4497_s18  ;;  %v5811_v42 = vsel %vm2972_vm13, %v2949_v50, %v1892_v32  ;;  %v5824_v32 = vld [vmem:[#allocation2 + $0xbc] ss:$0 sps:$4 sm:$0x11]   ;;  %v3952_v14 = vcombine.low %v1303_v54, %v5814_v9  ;;  %v1302_v28 = vld [vmem:[#allocation2 + $0xa8] sm:$0xe]  ;;  %v6426_v54 = vld [vmem:[#allocation8_spill] sm:$0xff] }
 0x1d8   : > { %v2910_v33 = vpop.permute.xlu0 %2909  ;;  %v2899_v49 = vrot.slane %v5824_v32, 1  ;;  %v3951_v50 = vcombine.low %v1302_v28, %v5766_v51  ;;  %v3074_v59 = vsel %vm3070_vm15, %v3041_v18, %v6426_v54  ;;  %v2992_v51 = vsel %vm2972_vm13, %v2959_v30, %v5504_v41  ;;  %v5866_v30 = vld [vmem:[#allocation2 + $0xc4] sm:$0xf] }
 0x1d9   : > { %v5820_v10 = vpop.permute.xlu1 %2289  ;;  %v1880_v34 = vrot.slane %v3952_v14, 1  ;;  %v3107_v23 = vsel %vm3103_vm1, %v3074_v59, %v5675_v60  ;;  %v1366_v14 = vld [vmem:[#allocation2 + $0xb4] sm:$0xe]  ;;  %v2256_v41 = vshrl.u32 %v3968_v2, 16  ;;  %v1397_v60 = vld [vmem:[#allocation2 + $0xc0] sm:$0xf] }
 0x1da   : > { %2279 = vrot.lane.b32.xlu0 %v2158_v37, %s4496_s17  ;;  %v2900_v37 = vsel %vm1834_vm7, %v2898_v36, %v2899_v49  ;;  %v1367_v36 = vld [vmem:[#allocation2 + $0xc0] sm:$0xe] }
 0x1db   : > { %1768 = vrot.lane.b32.xlu1 %v1657_v46, %s4491_s10  ;;  %v1877_v46 = vrot.slane %v3951_v50, 1  ;;  %v1882_v28 = vsel %vm1834_vm7, %v1880_v34, %v1881_v22  ;;  %v5875_v22 = vld [vmem:[#allocation2 + $0xbc] ss:$0 sps:$4 sm:$0x11]   ;;  %v1270_v34 = vld [vmem:[#allocation2 + $0xb4] sm:$0xf]  ;;  %v2261_v59 = vor.u32 %v2260_v39, %v2256_v41 }
 0x1dc   : > { %v5836_v1 = vpop.permute.xlu0 %2399  ;;  %v6430_v41 = vld [vmem:[#allocation10_spill] sm:$0xff]  ;;  %v5907_v39 = vcombine.low %v1270_v34, %v5814_v9  ;;  %v6431_v9 = vld [vmem:[#allocation15_spill] sm:$0xff] }
 0x1dd   : > { %v1779_v7 = vpop.permute.xlu1 %1778 }
 0x1de   : > { %v2965_v12 = vsel %vm2939_vm12, %v6425_v44, %v1779_v7  ;;  %2931 = vrot.lane.b32.xlu0 %v2897_v63, %s4495_s16  ;;  %v1333_v7 = vld [vmem:[#allocation2 + $0xb8] sm:$0xf]  ;;  %v6427_v63 = vld [vmem:[#allocation6_spill] sm:$0xff] }
 0x1df   : > { %1782 = vrot.lane.b32.xlu1 %v1741_v8, %s4491_s10  ;;  %v5852_v16 = vsel %vm2972_vm13, %v2965_v12, %v1908_v43  ;;  %v3025_v20 = vsel %vm3005_vm14, %v2992_v51, %v6427_v63  ;;  %v3999_v50 = vcombine.low %v1366_v14, %v1333_v7  ;;  %v1879_v12 = vsel %vm1834_vm7, %v1877_v46, %v1878_v15  ;;  %v1332_v8 = vld [vmem:[#allocation2 + $0xb4] sm:$0xf] }
 0x1e0   : > { %v5858_v19 = vpop.permute.xlu0 %2925  ;;  %v2265_v51 = vrot.slane %v2263_v17, 1  ;;  %v3057_v46 = vsel %vm343_vm0, %v3025_v20, %v5577_v48  ;;  %v2746_v15 = vshll.u32 %v5719_v5, 16  ;;  %v5904_v48 = vsel %vm2939_vm12, %v6430_v41, %v5591_v58  ;;  %v6432_v20 = vld [vmem:[#allocation16_spill] sm:$0xff] }
 0x1e1   : > { %v2782_v38 = vpop.permute.xlu1 %2781  ;;  %v3090_v63 = vsel %vm3070_vm15, %v3057_v46, %v6431_v9 }
 0x1e2   : > { %v3140_v43 = vsel %vm3136_vm2, %v3107_v23, %v2782_v38  ;;  %2933 = vrot.lane.b32.xlu0 %v2900_v37, %s4495_s16  ;;  %v4000_v23 = vcombine.low %v1367_v36, %v5808_v61  ;;  %v6429_v38 = vld [vmem:[#allocation9_spill] sm:$0xff]  ;;  %v5898_v61 = vcombine.low %v1332_v8, %v1333_v7  ;;  %v2393_v7 = vrot.slane %v5841_v55, 1 }
 0x1e3   : > { %v3173_v18 = vsel %vm3169_vm3, %v3140_v43, %v2910_v33  ;;  %1913 = vrot.lane.b32.xlu1 %v1882_v28, %s4490_s9  ;;  %v5879_v33 = vcombine.low %v1397_v60, %v5866_v30  ;;  %v2945_v37 = vsel %vm2939_vm12, %v6429_v38, %v5560_v26  ;;  %v2389_v28 = vrot.slane %v3999_v50, 1 }
 0x1e4   : > { %4216 = vmatmul.mubr.msk.bf16.vlgmr.msra.gmra.mrb[16].mxu1 %vm3229_vm4, %v3173_v18  ;;  %v5873_v49 = vpop.permute.xlu0 %2415  ;;  %v2390_v26 = vrot.slane %v5875_v22, 1  ;;  %v2266_v18 = vsel %vm1561_vm8, %v2261_v59, %v2265_v51  ;;  %v2392_v36 = vrot.slane %v4000_v23, 1  ;;  %v2978_v50 = vsel %vm2972_vm13, %v2945_v37, %v6432_v20 }
 0x1e5   : > { %v1761_v44 = vpop.permute.xlu1 %1760  ;;  %v2758_v60 = vshll.u32 %v5879_v33, 16  ;;  %v2751_v55 = vshll.u32 %v5824_v32, 16  ;;  %v3123_v8 = vsel %vm3103_vm1, %v3090_v63, %v5692_v45  ;;  %v3011_v34 = vsel %vm3005_vm14, %v2978_v50, %v5709_v6  ;;  %v6433_v50 = vld [vmem:[#allocation14_spill] sm:$0xff] }
 0x1e6   : > { %v2947_v54 = vsel %vm2939_vm12, %v6428_v0, %v1761_v44  ;;  %1911 = vrot.lane.b32.xlu0 %v1879_v12, %s4490_s9  ;;  %v1399_v44 = vld [vmem:[#allocation2 + $0xcc] sm:$0xf]  ;;  %v5930_v12 = vld [vmem:[#allocation2 + $0xd0] sm:$0xf]  ;;  %v2756_v59 = vshrl.u32 %v5879_v33, 16  ;;  %v2246_v38 = vshll.u32 %v5898_v61, 16  ;;  %v2394_v45 = vsel %vm1834_vm7, %v2392_v36, %v2393_v7 }
 0x1e7   : > { %v2980_v14 = vsel %vm2972_vm13, %v2947_v54, %v5754_v31  ;;  %2025 = vrot.lane.b32.xlu1 %v3968_v2, %s4493_s14  ;;  %v5913_v2 = vld [vmem:[#allocation2 + $0xc8] ss:$0 sps:$4 sm:$0x11]   ;;  %v2760_v51 = vrot.slane %v2758_v60, 1  ;;  %v4016_v37 = vcombine.low %v1399_v44, %v5930_v12  ;;  %v1745_v6 = vshll.u32 %v5907_v39, 16 }
 0x1e8   : > { %v3013_v17 = vsel %vm3005_vm14, %v2980_v14, %v5607_v27  ;;  %v5896_v43 = vpop.permute.xlu0 %2783  ;;  %v2763_v23 = vshll.u32 %v5913_v2, 16  ;;  %v2753_v46 = vrot.slane %v2751_v55, 1  ;;  %v2251_v14 = vshll.u32 %v5875_v22, 16  ;;  %v5956_v60 = vld [vmem:[#allocation2 + $0xd4] ss:$0 sps:$4 sm:$0x11]  }
 0x1e9   : > { %v5909_v31 = vpop.permute.xlu1 %2005  ;;  %v3045_v27 = vsel %vm343_vm0, %v3013_v17, %v5789_v29  ;;  %v2744_v29 = vshrl.u32 %v5719_v5, 16  ;;  %v2391_v5 = vsel %vm1834_vm7, %v2389_v28, %v2390_v26  ;;  %v1431_v17 = vld [vmem:[#allocation2 + $0xc0] sm:$0xe]  ;;  %v2244_v36 = vshrl.u32 %v5898_v61, 16 }
 0x1ea   : > { %2023 = vrot.lane.b32.xlu0 %v5898_v61, %s4493_s14  ;;  %v5922_v58 = vsel %vm3070_vm15, %v3045_v27, %v5716_v13  ;;  %v2748_v13 = vrot.slane %v2746_v15, 1  ;;  %v1743_v15 = vshrl.u32 %v5907_v39, 16  ;;  %v1750_v27 = vshll.u32 %v5816_v40, 16 }
 0x1eb   : > { %2297 = vrot.lane.b32.xlu1 %v2266_v18, %s4496_s17  ;;  %v2770_v18 = vshll.u32 %v4016_v37, 16  ;;  %v2761_v63 = vor.u32 %v2760_v51, %v2756_v59  ;;  %v2765_v20 = vrot.slane %v2763_v23, 1  ;;  %v2248_v22 = vrot.slane %v2246_v38, 1 }
 0x1ec   : > { %v5937_v0 = vpop.permute.xlu0 %2799  ;;  %v2749_v41 = vor.u32 %v2748_v13, %v2744_v29  ;;  %v1747_v40 = vrot.slane %v1745_v6, 1  ;;  %v4047_v29 = vcombine.low %v1431_v17, %v5866_v30  ;;  %v2253_v13 = vrot.slane %v2251_v14, 1 }
 0x1ed   : > { %v2798_v54 = vpop.permute.xlu1 %2797  ;;  %v2775_v30 = vshll.u32 %v5956_v60, 16  ;;  %v2249_v51 = vor.u32 %v2248_v22, %v2244_v36 }
 0x1ee   : > { %v3156_v32 = vsel %vm3136_vm2, %v3123_v8, %v2798_v54  ;;  %2423 = vrot.lane.b32.xlu0 %v2391_v5, %s4494_s15  ;;  %v2768_v8 = vshrl.u32 %v4016_v37, 16  ;;  %v2772_v5 = vrot.slane %v2770_v18, 1  ;;  %v2754_v23 = vsel %vm1561_vm8, %v2749_v41, %v2753_v46 }
 0x1ef   : > { %2425 = vrot.lane.b32.xlu1 %v2394_v45, %s4494_s15  ;;  %v5953_v28 = vsel %vm3169_vm3, %v3156_v32, %v5858_v19  ;;  %v1748_v38 = vor.u32 %v1747_v40, %v1743_v15  ;;  %v1752_v32 = vrot.slane %v1750_v27, 1  ;;  %v2777_v6 = vrot.slane %v2775_v30, 1 }
 0x1f0   : > { %v2272_v26 = vpop.permute.xlu0 %2271  ;;  %v2254_v17 = vsel %vm1561_vm8, %v2249_v51, %v2253_v13  ;;  %v2905_v18 = vrot.slane %v5956_v60, 1 }
 0x1f1   : > { %v1777_v7 = vpop.permute.xlu1 %1776  ;;  %v3043_v9 = vsel %vm343_vm0, %v3011_v34, %v2272_v26  ;;  %v2902_v26 = vrot.slane %v5913_v2, 1 }
 0x1f2   : > { %v2963_v44 = vsel %vm2939_vm12, %v6433_v50, %v1777_v7  ;;  %v3076_v19 = vsel %vm3070_vm15, %v3043_v9, %v5836_v1  ;;  %2535 = vrot.lane.b32.xlu0 %v5879_v33, %s4492_s13 }
 0x1f3   : > { %v2996_v61 = vsel %vm2972_vm13, %v2963_v44, %v5769_v11  ;;  %2537 = vrot.lane.b32.xlu1 %v4016_v37, %s4492_s13  ;;  %v3109_v55 = vsel %vm3103_vm1, %v3076_v19, %v5656_v4  ;;  %v2766_v11 = vsel %vm1561_vm8, %v2761_v63, %v2765_v20  ;;  %v2773_v37 = vor.u32 %v2772_v5, %v2768_v8 }
 0x1f4   : > { %v3029_v34 = vsel %vm3005_vm14, %v2996_v61, %v5661_v25  ;;  %v5974_v1 = vpop.permute.xlu0 %2515  ;;  %v3142_v33 = vsel %vm3136_vm2, %v3109_v55, %v5896_v43  ;;  %v1432_v25 = vld [vmem:[#allocation2 + $0xcc] sm:$0xe] }
 0x1f5   : > { %v5979_v54 = vpop.permute.xlu1 %2021  ;;  %v3175_v4 = vsel %vm3169_vm3, %v3142_v33, %v5752_v21  ;;  %v3061_v59 = vsel %vm343_vm0, %v3029_v34, %v5820_v10  ;;  %v2994_v21 = vsel %vm2972_vm13, %v5904_v48, %v5512_v52  ;;  %v4048_v46 = vcombine.low %v1432_v25, %v5930_v12 }
 0x1f6   : > { %2807 = vrot.lane.b32.xlu0 %v2766_v11, %s4497_s18  ;;  %4219 = vmatprep.mubr.msk.bf16.mxu1 %vm3229_vm4, %v3175_v4  ;;  %v3094_v43 = vsel %vm3070_vm15, %v3061_v59, %v5738_v24  ;;  %v3027_v10 = vsel %vm3005_vm14, %v2994_v21, %v5733_v62  ;;  %v2901_v24 = vrot.slane %v4047_v29, 1  ;;  %v1753_v52 = vsel %vm1561_vm8, %v1748_v38, %v1752_v32 }
 0x1f7   : > { %2805 = vrot.lane.b32.xlu1 %v2754_v23, %s4497_s18  ;;  %v2778_v12 = vsel %vm1561_vm8, %v2773_v37, %v2777_v6  ;;  %v2904_v27 = vrot.slane %v4048_v46, 1 }
 0x1f8   : > { %v2288_v45 = vpop.permute.xlu0 %2287 }
 0x1f9   : > { %v2514_v15 = vpop.permute.xlu1 %2513  ;;  %v3059_v14 = vsel %vm343_vm0, %v3027_v10, %v2288_v45 }
 0x1fa   : > { %v3092_v48 = vsel %vm3070_vm15, %v3059_v14, %v5873_v49  ;;  %2295 = vrot.lane.b32.xlu0 %v2254_v17, %s4496_s17  ;;  %v2903_v49 = vsel %vm1834_vm7, %v2901_v24, %v2902_v26  ;;  %v3111_v33 = vsel %vm3103_vm1, %v5922_v58, %v2514_v15  ;;  %v6434_v17 = vld [vmem:[#allocation22_spill] sm:$0xff] }
 0x1fb   : > { %1784 = vrot.lane.b32.xlu1 %v1753_v52, %s4491_s10  ;;  %v3125_v62 = vsel %vm3103_vm1, %v3092_v48, %v5686_v56  ;;  %v2906_v56 = vsel %vm1834_vm7, %v2904_v27, %v2905_v18 }
 0x1fc   : > { %v6009_v41 = vpop.permute.xlu0 %2531  ;;  %v3158_v2 = vsel %vm3136_vm2, %v3125_v62, %v5937_v0 }
 0x1fd   : > { %v2530_v36 = vpop.permute.xlu1 %2529  ;;  %v6017_v7 = vsel %vm3169_vm3, %v3158_v2, %v5784_v47 }
 0x1fe   : > { %v3127_v9 = vsel %vm3103_vm1, %v3094_v43, %v2530_v36  ;;  %2935 = vrot.lane.b32.xlu0 %v2903_v49, %s4495_s16 }
 0x1ff   : > { %2809 = vrot.lane.b32.xlu1 %v2778_v12, %s4497_s18 }
 0x200   : > { %v2004_v63 = vpop.permute.xlu0 %2003 }
 0x201   : > { %v2406_v60 = vpop.permute.xlu1 %2405  ;;  %v3015_v43 = vsel %vm3005_vm14, %v5811_v42, %v2004_v63 }
 0x203   : > { %2937 = vrot.lane.b32.xlu1 %v2906_v56, %s4495_s16  ;;  %s6225_s16 = scalar_lea.vmem %s6361_s7, %s4088_s28 }
 0x204   : > { %v2020_v0 = vpop.permute.xlu0 %2019 }
 0x205   : > { %v2422_v20 = vpop.permute.xlu1 %2421  ;;  %v3031_v22 = vsel %vm3005_vm14, %v5852_v16, %v2020_v0  ;;  %v3475_v0 = vld [vmem:[%s6359_s5] sm:$0x3] }
 0x206   : > { %4284 = vmatprep.subr.msk.bf16.mxu0 %vm3262_vm9, %v3475_v0 }
 0x208   : > { %v2916_v50 = vpop.permute.xlu0 %2915 }
 0x209   : > { %v1894_v47 = vpop.permute.xlu1 %1893 }
 0x20c   : > { %v6026_v44 = vpop.permute.xlu0 %1895 }
 0x20d   : > { %v1910_v19 = vpop.permute.xlu1 %1909 }
 0x210   : > { %v2914_v40 = vpop.permute.xlu0 %2913 }
 0x211   : > { %v2278_v29 = vpop.permute.xlu1 %2277 }
 0x214   : > { %v2404_v61 = vpop.permute.xlu0 %2403 }
 0x215   : > { %v1767_v55 = vpop.permute.xlu1 %1766 }
 0x218   : > { %v2930_v8 = vpop.permute.xlu0 %2929 }
 0x219   : > { %v2294_v13 = vpop.permute.xlu1 %2293 }
 0x21c   : > { %v2420_v34 = vpop.permute.xlu0 %2419 }
 0x21d   : > { %v2786_v5 = vpop.permute.xlu1 %2785 }
 0x21e   : > { %v3144_v30 = vsel %vm3136_vm2, %v3111_v33, %v2786_v5 }
 0x21f   : > { %v3177_v16 = vsel %vm3169_vm3, %v3144_v30, %v2914_v40  ;;  %v6437_v30 = vld [vmem:[#allocation23_spill] sm:$0xff] }
 0x220   : > { %4220 = vmatmul.mubr.msk.bf16.gmra.mrb[20].mxu1 %vm3229_vm4, %v3177_v16  ;;  %v2788_v11 = vpop.permute.xlu0 %2787 }
 0x221   : > { %v1765_v4 = vpop.permute.xlu1 %1764 }
 0x222   : > { %v2951_v59 = vsel %vm2939_vm12, %v5565_v35, %v1765_v4 }
 0x223   : > { %v2984_v51 = vsel %vm2972_vm13, %v2951_v59, %v1894_v47 }
 0x224   : > { %v3017_v25 = vsel %vm3005_vm14, %v2984_v51, %v5909_v31  ;;  %v2804_v23 = vpop.permute.xlu0 %2803 }
 0x225   : > { %v6038_v38 = vpop.permute.xlu1 %2009  ;;  %v3049_v58 = vsel %vm343_vm0, %v3017_v25, %v2278_v29  ;;  %v6435_v29 = vld [vmem:[#allocation18_spill] sm:$0xff] }
 0x226   : > { %v3082_v32 = vsel %vm3070_vm15, %v3049_v58, %v2406_v60 }
 0x228   : > { %v2276_v21 = vpop.permute.xlu0 %2275 }
 0x229   : > { %v2802_v10 = vpop.permute.xlu1 %2801  ;;  %v3047_v45 = vsel %vm343_vm0, %v3015_v43, %v2276_v21 }
 0x22a   : > { %v3160_v35 = vsel %vm3136_vm2, %v3127_v9, %v2802_v10  ;;  %v3080_v37 = vsel %vm3070_vm15, %v3047_v45, %v2404_v61  ;;  %v2953_v61 = vsel %vm2939_vm12, %v6435_v29, %v1767_v55 }
 0x22b   : > { %v3113_v31 = vsel %vm3103_vm1, %v3080_v37, %v5974_v1  ;;  %v6050_v6 = vsel %vm3169_vm3, %v3160_v35, %v2930_v8  ;;  %v6436_v8 = vld [vmem:[#allocation3_spill] sm:$0xff]  ;;  %v6439_v37 = vld [vmem:[#allocation5_spill] sm:$0xff] }
 0x22c   : > { %v2520_v46 = vpop.permute.xlu0 %2519  ;;  %v3146_v15 = vsel %vm3136_vm2, %v3113_v31, %v2788_v11 }
 0x22d   : > { %v1781_v14 = vpop.permute.xlu1 %1780  ;;  %v3179_v42 = vsel %vm3169_vm3, %v3146_v15, %v2916_v50 }
 0x22e   : > { %v2967_v24 = vsel %vm2939_vm12, %v6434_v17, %v1781_v14  ;;  %4223 = vmatprep.mubr.msk.bf16.mxu1 %vm3229_vm4, %v3179_v42  ;;  %v6440_v17 = vld [vmem:[#allocation7_spill] sm:$0xff] }
 0x22f   : > { %v3000_v26 = vsel %vm2972_vm13, %v2967_v24, %v1910_v19  ;;  %v6441_v24 = vld [vmem:[#allocation21_spill] sm:$0xff] }
 0x230   : > { %v3033_v52 = vsel %vm3005_vm14, %v3000_v26, %v5979_v54  ;;  %v2292_v1 = vpop.permute.xlu0 %2291  ;;  %v6442_v26 = vld [vmem:[#allocation4_spill] sm:$0xff] }
 0x231   : > { %v2518_v48 = vpop.permute.xlu1 %2517  ;;  %v3065_v62 = vsel %vm343_vm0, %v3033_v52, %v2294_v13  ;;  %v3063_v12 = vsel %vm343_vm0, %v3031_v22, %v2292_v1  ;;  %v3532_v22 = vsel %vm3262_vm9, %v3475_v0, 0 }
 0x232   : > { %v6063_v27 = vsel %vm3070_vm15, %v3065_v62, %v2422_v20  ;;  %v3096_v18 = vsel %vm3070_vm15, %v3063_v12, %v2420_v34  ;;  %4248 = vmatpush3.bf16.msra.mxu0 %v3532_v22  ;;  %v3115_v33 = vsel %vm3103_vm1, %v3082_v32, %v2518_v48  ;;  %v6443_v62 = vld [vmem:[#allocation19_spill] sm:$0xff] }
 0x233   : > { %v3129_v2 = vsel %vm3103_vm1, %v3096_v18, %v6009_v41  ;;  %v6444_v18 = vld [vmem:[#allocation17_spill] sm:$0xff] }
 0x234   : > { %v2008_v36 = vpop.permute.xlu0 %2007  ;;  %v6069_v49 = vsel %vm3136_vm2, %v3129_v2, %v2804_v23  ;;  %v6438_v23 = vld [vmem:[#allocation20_spill] sm:$0xff] }
 0x235   : > { %v6071_v9 = vpop.permute.xlu1 %2533 }
 0x238   : > { %v2920_v54 = vpop.permute.xlu0 %2919 }
 0x239   : > { %v2410_v56 = vpop.permute.xlu1 %2409 }
 0x23c   : > { %v1900_v63 = vpop.permute.xlu0 %1899 }
 0x23d   : > { %v1898_v60 = vpop.permute.xlu1 %1897 }
 0x240   : > { %v2918_v20 = vpop.permute.xlu0 %2917 }
 0x241   : > { %v2282_v41 = vpop.permute.xlu1 %2281 }
 0x244   : > { %v2408_v50 = vpop.permute.xlu0 %2407 }
 0x245   : > { %v1771_v47 = vpop.permute.xlu1 %1770 }
 0x246   : > { %v2957_v19 = vsel %vm2939_vm12, %v5727_v3, %v1771_v47  ;;  %v2986_v3 = vsel %vm2972_vm13, %v2953_v61, %v6026_v44 }
 0x247   : > { %v2990_v40 = vsel %vm2972_vm13, %v2957_v19, %v1900_v63  ;;  %v3019_v59 = vsel %vm3005_vm14, %v2986_v3, %v2008_v36 }
 0x248   : > { %v3023_v13 = vsel %vm3005_vm14, %v2990_v40, %v6436_v8  ;;  %v2792_v34 = vpop.permute.xlu0 %2791 }
 0x249   : > { %v2790_v5 = vpop.permute.xlu1 %2789  ;;  %v3055_v16 = vsel %vm343_vm0, %v3023_v13, %v6437_v30 }
 0x24a   : > { %v3148_v11 = vsel %vm3136_vm2, %v3115_v33, %v2790_v5  ;;  %v3088_v58 = vsel %vm3070_vm15, %v3055_v16, %v6438_v23 }
 0x24b   : > { %v3181_v4 = vsel %vm3169_vm3, %v3148_v11, %v2918_v20  ;;  %v3121_v31 = vsel %vm3103_vm1, %v3088_v58, %v6439_v37 }
 0x24c   : > { %4224 = vmatmul.mubr.msk.bf16.gmra.mrb[24].mxu1 %vm3229_vm4, %v3181_v4  ;;  %v2280_v55 = vpop.permute.xlu0 %2279 }
 0x24d   : > { %v1769_v51 = vpop.permute.xlu1 %1768  ;;  %v3051_v25 = vsel %vm343_vm0, %v3019_v59, %v2280_v55 }
 0x24e   : > { %v2955_v32 = vsel %vm2939_vm12, %v5750_v53, %v1769_v51  ;;  %v3084_v43 = vsel %vm3070_vm15, %v3051_v25, %v2408_v50  ;;  %v6161_v51 = vld [vmem:[%s6358_s4] ss:$0 sm:$0xff] }
 0x24f   : > { %v2988_v44 = vsel %vm2972_vm13, %v2955_v32, %v1898_v60  ;;  %v3117_v21 = vsel %vm3103_vm1, %v3084_v43, %v2520_v46 }
 0x250   : > { %v3021_v10 = vsel %vm3005_vm14, %v2988_v44, %v6038_v38  ;;  %v2932_v45 = vpop.permute.xlu0 %2931  ;;  %v3150_v35 = vsel %vm3136_vm2, %v3117_v21, %v2792_v34  ;;  %v3154_v38 = vsel %vm3136_vm2, %v3121_v31, %v6441_v24 }
 0x251   : > { %v3053_v15 = vsel %vm343_vm0, %v3021_v10, %v2282_v41  ;;  %v1783_v14 = vpop.permute.xlu1 %1782  ;;  %v3183_v53 = vsel %vm3169_vm3, %v3150_v35, %v2920_v54  ;;  %v3187_v2 = vsel %vm3169_vm3, %v3154_v38, %v6444_v18  ;;  %v3195_v41 = vsel %vm3169_vm3, %v6069_v49, %v2932_v45 }
 0x252   : > { %4227 = vmatprep.mubr.msk.bf16.mxu1 %vm3229_vm4, %v3183_v53  ;;  %v3086_v42 = vsel %vm3070_vm15, %v3053_v15, %v2410_v56 }
 0x253   : > { %v3119_v46 = vsel %vm3103_vm1, %v3086_v42, %v6440_v17 }
 0x254   : > { %v3152_v52 = vsel %vm3136_vm2, %v3119_v46, %v6442_v26  ;;  %v2934_v1 = vpop.permute.xlu0 %2933 }
 0x255   : > { %v1914_v48 = vpop.permute.xlu1 %1913  ;;  %v3185_v12 = vsel %vm3169_vm3, %v3152_v52, %v6443_v62 }
 0x256   : > { %4228 = vmatmul.mubr.msk.bf16.gmra.mrb[28].mxu1 %vm3229_vm4, %v3185_v12 }
 0x257   : > { %4231 = vmatprep.mubr.msk.bf16.mxu1 %vm3229_vm4, %v3187_v2 }
 0x258   : > { %v1912_v36 = vpop.permute.xlu0 %1911 }
 0x259   : > { %v2026_v54 = vpop.permute.xlu1 %2025 }
 0x25c   : > { %v2024_v56 = vpop.permute.xlu0 %2023 }
 0x25d   : > { %v2298_v63 = vpop.permute.xlu1 %2297 }
 0x25e   : > { %4232 = vmatmul.mubr.msk.bf16.gmra.mrb[32].mxu1 %vm3229_vm4, %v5953_v28  ;;  %v3131_v28 = vsel %vm3103_vm1, %v6063_v27, %v6071_v9 }
 0x25f   : > { %4235 = vmatprep.mubr.msk.bf16.mxu1 %vm3229_vm4, %v6017_v7  ;;  %v2969_v7 = vsel %vm2939_vm12, %v5777_v57, %v1783_v14 }
 0x260   : > { %v2424_v60 = vpop.permute.xlu0 %2423  ;;  %v3002_v40 = vsel %vm2972_vm13, %v2969_v7, %v1912_v36 }
 0x261   : > { %v2426_v0 = vpop.permute.xlu1 %2425  ;;  %v3035_v49 = vsel %vm3005_vm14, %v3002_v40, %v2024_v56 }
 0x264   : > { %v2536_v20 = vpop.permute.xlu0 %2535 }
 0x265   : > { %v2538_v22 = vpop.permute.xlu1 %2537 }
 0x266   : > { %4236 = vmatmul.mubr.msk.bf16.gmra.mrb[36].mxu1 %vm3229_vm4, %v6050_v6 }
 0x267   : > { %4239 = vmatprep.mubr.msk.bf16.mxu1 %vm3229_vm4, %v3195_v41 }
 0x268   : > { %v2808_v50 = vpop.permute.xlu0 %2807 }
 0x269   : > { %v2806_v47 = vpop.permute.xlu1 %2805 }
 0x26a   : > { %v3164_v19 = vsel %vm3136_vm2, %v3131_v28, %v2806_v47 }
 0x26b   : > { %v3197_v6 = vsel %vm3169_vm3, %v3164_v19, %v2934_v1 }
 0x26c   : > { %v2296_v29 = vpop.permute.xlu0 %2295 }
 0x26d   : > { %v1785_v61 = vpop.permute.xlu1 %1784  ;;  %v3067_v8 = vsel %vm343_vm0, %v3035_v49, %v2296_v29 }
 0x26e   : > { %v2971_v13 = vsel %vm2939_vm12, %v5907_v39, %v1785_v61  ;;  %4240 = vmatmul.mubr.msk.bf16.gmra.mrb[40].mxu1 %vm3229_vm4, %v3197_v6  ;;  %v3100_v27 = vsel %vm3070_vm15, %v3067_v8, %v2424_v60 }
 0x26f   : > { %v3004_v57 = vsel %vm2972_vm13, %v2971_v13, %v1914_v48  ;;  %v3133_v9 = vsel %vm3103_vm1, %v3100_v27, %v2536_v20 }
 0x270   : > { %v3037_v34 = vsel %vm3005_vm14, %v3004_v57, %v2026_v54  ;;  %v3166_v33 = vsel %vm3136_vm2, %v3133_v9, %v2808_v50  ;;  %v2936_v5 = vpop.permute.xlu0 %2935 }
 0x271   : > { %v3069_v30 = vsel %vm343_vm0, %v3037_v34, %v2298_v63  ;;  %v2810_v16 = vpop.permute.xlu1 %2809  ;;  %v3199_v11 = vsel %vm3169_vm3, %v3166_v33, %v2936_v5 }
 0x272   : > { %v3102_v39 = vsel %vm3070_vm15, %v3069_v30, %v2426_v0  ;;  %4243 = vmatprep.mubr.msk.bf16.mxu1 %vm3229_vm4, %v3199_v11 }
 0x273   : > { %v3135_v3 = vsel %vm3103_vm1, %v3102_v39, %v2538_v22 }
 0x274   : > { %v3168_v4 = vsel %vm3136_vm2, %v3135_v3, %v2810_v16 }
 0x275   : > { %v2938_v59 = vpop.permute.xlu1 %2937 }
 0x276   : > { %v3201_v55 = vsel %vm3169_vm3, %v3168_v4, %v2938_v59 }
 0x277   : > { %4244 = vmatmul.mubr.msk.bf16.gmra.mrb[44].mxu1 %vm3229_vm4, %v3201_v55 }
 0x2b7   : > { %v4217_v25 = vpop.f32.mrb[16].mxu1 }
 0x2b8   : > { %v3309_v23 = vadd.f32 %v4217_v25, %v6161_v51  ;;  %v3300_v58 = vpop.f32.mrb[17].mxu1 }
 0x2b9   : > { %v3301_v32 = vadd.f32 %v6161_v51, %v3300_v58  ;;  %v4218_v43 = vpop.f32.mrb[18].mxu1 }
 0x2ba   : > { %v3312_v44 = vadd.f32 %v4218_v43, %v6161_v51  ;;  %v3303_v21 = vpop.f32.mrb[19].mxu1  ;;  %v3429_v45 = vmax.f32 %v3309_v23, 0.0 }
 0x2bb   : > { %v3304_v10 = vadd.f32 %v6161_v51, %v3303_v21  ;;  %v3427_v37 = vmax.f32 %v3301_v32, 0.0 }
 0x2bc   : > { %v3430_v35 = vmax.f32 %v3312_v44, 0.0 }
 0x2bd   : > { %v3428_v31 = vmax.f32 %v3304_v10, 0.0 }
 0x2be   : > { %v3460_v15 = vpack.c.bf16 %v3430_v35, %v3429_v45 }
 0x2bf   : > { %v3459_v14 = vpack.c.bf16 %v3428_v31, %v3427_v37 }
 0x2c1   : > { %4249 = vmatprep.mubr.msk.bf16.mxu0 %vm2939_vm12, %v3459_v14 }
 0x2c2   : > { %4250 = vmatmul.mubr.msk.bf16.vlgmr.msra.gmra.mrb[16].mxu0 %vm2939_vm12, %v3460_v15 }
 0x2f3   : > { %v4221_v53 = vpop.f32.mrb[20].mxu1 }
 0x2f4   : > { %v3325_v42 = vadd.f32 %v4221_v53, %v6161_v51  ;;  %v3316_v17 = vpop.f32.mrb[21].mxu1 }
 0x2f5   : > { %v3317_v46 = vadd.f32 %v6161_v51, %v3316_v17  ;;  %v4222_v24 = vpop.f32.mrb[22].mxu1 }
 0x2f6   : > { %v3328_v38 = vadd.f32 %v4222_v24, %v6161_v51  ;;  %v3319_v26 = vpop.f32.mrb[23].mxu1  ;;  %v3433_v1 = vmax.f32 %v3325_v42, 0.0 }
 0x2f7   : > { %v3320_v52 = vadd.f32 %v6161_v51, %v3319_v26  ;;  %v3431_v62 = vmax.f32 %v3317_v46, 0.0 }
 0x2f8   : > { %v3434_v48 = vmax.f32 %v3328_v38, 0.0 }
 0x2f9   : > { %v3432_v12 = vmax.f32 %v3320_v52, 0.0 }
 0x2fa   : > { %v3462_v18 = vpack.c.bf16 %v3434_v48, %v3433_v1 }
 0x2fb   : > { %v3461_v2 = vpack.c.bf16 %v3432_v12, %v3431_v62 }
 0x2fd   : > { %4253 = vmatprep.mubr.msk.bf16.mxu0 %vm2939_vm12, %v3461_v2 }
 0x2fe   : > { %4254 = vmatmul.mubr.msk.bf16.gmra.mrb[20].mxu0 %vm2939_vm12, %v3462_v18 }
 0x31f   : > { %v4225_v36 = vpop.f32.mrb[24].mxu1 }
 0x320   : > { %v3341_v54 = vadd.f32 %v4225_v36, %v6161_v51  ;;  %v3332_v56 = vpop.f32.mrb[25].mxu1 }
 0x321   : > { %v3333_v63 = vadd.f32 %v6161_v51, %v3332_v56  ;;  %v4226_v60 = vpop.f32.mrb[26].mxu1 }
 0x322   : > { %v3344_v0 = vadd.f32 %v4226_v60, %v6161_v51  ;;  %v3335_v20 = vpop.f32.mrb[27].mxu1  ;;  %v3437_v41 = vmax.f32 %v3341_v54, 0.0 }
 0x323   : > { %v3336_v22 = vadd.f32 %v6161_v51, %v3335_v20  ;;  %v3435_v28 = vmax.f32 %v3333_v63, 0.0 }
 0x324   : > { %v3438_v50 = vmax.f32 %v3344_v0, 0.0 }
 0x325   : > { %v3436_v47 = vmax.f32 %v3336_v22, 0.0 }
 0x326   : > { %v3464_v7 = vpack.c.bf16 %v3438_v50, %v3437_v41 }
 0x327   : > { %v3463_v19 = vpack.c.bf16 %v3436_v47, %v3435_v28 }
 0x329   : > { %4257 = vmatprep.mubr.msk.bf16.mxu0 %vm2939_vm12, %v3463_v19  ;;  %v4229_v40 = vpop.f32.mrb[28].mxu1 }
 0x32a   : > { %4258 = vmatmul.mubr.msk.bf16.gmra.mrb[24].mxu0 %vm2939_vm12, %v3464_v7  ;;  %v3357_v49 = vadd.f32 %v4229_v40, %v6161_v51  ;;  %v3348_v29 = vpop.f32.mrb[29].mxu1 }
 0x32b   : > { %v3349_v61 = vadd.f32 %v6161_v51, %v3348_v29  ;;  %v4230_v6 = vpop.f32.mrb[30].mxu1 }
 0x32c   : > { %v3360_v8 = vadd.f32 %v4230_v6, %v6161_v51  ;;  %v3351_v13 = vpop.f32.mrb[31].mxu1  ;;  %v3441_v57 = vmax.f32 %v3357_v49, 0.0 }
 0x32d   : > { %v3352_v27 = vadd.f32 %v6161_v51, %v3351_v13  ;;  %v3439_v34 = vmax.f32 %v3349_v61, 0.0 }
 0x32e   : > { %v3442_v9 = vmax.f32 %v3360_v8, 0.0 }
 0x32f   : > { %v3440_v33 = vmax.f32 %v3352_v27, 0.0  ;;  %v6214_v27 = vld [vmem:[%s6360_s6] ss:$0 sm:$0xff] }
 0x330   : > { %v3466_v5 = vpack.c.bf16 %v3442_v9, %v3441_v57 }
 0x331   : > { %v3465_v30 = vpack.c.bf16 %v3440_v33, %v3439_v34  ;;  %v4233_v16 = vpop.f32.mrb[32].mxu1 }
 0x332   : > { %v3373_v11 = vadd.f32 %v4233_v16, %v6161_v51  ;;  %v3364_v39 = vpop.f32.mrb[33].mxu1 }
 0x333   : > { %v3365_v3 = vadd.f32 %v6161_v51, %v3364_v39  ;;  %v4234_v4 = vpop.f32.mrb[34].mxu1  ;;  %4261 = vmatprep.mubr.msk.bf16.mxu0 %vm2939_vm12, %v3465_v30  ;;  %v4450_v39 = vld [vmem:[%s4557_s8] sm:$0xff] }
 0x334   : > { %v3376_v59 = vadd.f32 %v4234_v4, %v6161_v51  ;;  %v3367_v55 = vpop.f32.mrb[35].mxu1  ;;  %4262 = vmatmul.mubr.msk.bf16.gmra.mrb[28].mxu0 %vm2939_vm12, %v3466_v5  ;;  %v3445_v23 = vmax.f32 %v3373_v11, 0.0  ;;  %v4449_v5 = vld [vmem:[%s4557_s8 + $0x10] sm:$0xff] }
 0x335   : > { %v3368_v25 = vadd.f32 %v6161_v51, %v3367_v55  ;;  %v3443_v32 = vmax.f32 %v3365_v3, 0.0  ;;  %v4451_v55 = vld [vmem:[%s4557_s8 + $0x18] sm:$0xff] }
 0x336   : > { %v3446_v58 = vmax.f32 %v3376_v59, 0.0 }
 0x337   : > { %v3444_v43 = vmax.f32 %v3368_v25, 0.0 }
 0x338   : > { %v3468_v44 = vpack.c.bf16 %v3446_v58, %v3445_v23  ;;  %v4452_v58 = vld [vmem:[%s4557_s8 + $0x8] sm:$0xff] }
 0x339   : > { %v3467_v21 = vpack.c.bf16 %v3444_v43, %v3443_v32  ;;  %v4237_v10 = vpop.f32.mrb[36].mxu1 }
 0x33a   : > { %v3389_v45 = vadd.f32 %v4237_v10, %v6161_v51  ;;  %v3380_v35 = vpop.f32.mrb[37].mxu1 }
 0x33b   : > { %v3381_v37 = vadd.f32 %v6161_v51, %v3380_v35  ;;  %v4238_v31 = vpop.f32.mrb[38].mxu1  ;;  %4265 = vmatprep.mubr.msk.bf16.mxu0 %vm2939_vm12, %v3467_v21 }
 0x33c   : > { %v3392_v15 = vadd.f32 %v4238_v31, %v6161_v51  ;;  %v3383_v14 = vpop.f32.mrb[39].mxu1  ;;  %4266 = vmatmul.mubr.msk.bf16.gmra.mrb[32].mxu0 %vm2939_vm12, %v3468_v44  ;;  %v3449_v42 = vmax.f32 %v3389_v45, 0.0  ;;  %v4453_v31 = vld [vmem:[%s4557_s8 + $0x30] sm:$0xff] }
 0x33d   : > { %v3384_v53 = vadd.f32 %v6161_v51, %v3383_v14  ;;  %v3447_v46 = vmax.f32 %v3381_v37, 0.0 }
 0x33e   : > { %v3450_v17 = vmax.f32 %v3392_v15, 0.0 }
 0x33f   : > { %v3448_v24 = vmax.f32 %v3384_v53, 0.0 }
 0x340   : > { %v3470_v38 = vpack.c.bf16 %v3450_v17, %v3449_v42  ;;  %v4454_v42 = vld [vmem:[%s4557_s8 + $0x20] sm:$0xff] }
 0x341   : > { %v3469_v26 = vpack.c.bf16 %v3448_v24, %v3447_v46  ;;  %v4241_v52 = vpop.f32.mrb[40].mxu1 }
 0x342   : > { %v3405_v1 = vadd.f32 %v4241_v52, %v6161_v51  ;;  %v3396_v48 = vpop.f32.mrb[41].mxu1 }
 0x343   : > { %v3397_v62 = vadd.f32 %v6161_v51, %v3396_v48  ;;  %v4242_v12 = vpop.f32.mrb[42].mxu1  ;;  %4269 = vmatprep.mubr.msk.bf16.mxu0 %vm2939_vm12, %v3469_v26 }
 0x344   : > { %v3408_v18 = vadd.f32 %v4242_v12, %v6161_v51  ;;  %v3399_v2 = vpop.f32.mrb[43].mxu1  ;;  %4270 = vmatmul.mubr.msk.bf16.gmra.mrb[36].mxu0 %vm2939_vm12, %v3470_v38  ;;  %v3453_v54 = vmax.f32 %v3405_v1, 0.0  ;;  %v4455_v38 = vld [vmem:[%s4557_s8 + $0x38] sm:$0xff]  ;;  %v4456_v1 = vld [vmem:[%s4557_s8 + $0x28] sm:$0xff] }
 0x345   : > { %v3400_v36 = vadd.f32 %v6161_v51, %v3399_v2  ;;  %v3451_v63 = vmax.f32 %v3397_v62, 0.0 }
 0x346   : > { %v3454_v56 = vmax.f32 %v3408_v18, 0.0 }
 0x347   : > { %v3452_v60 = vmax.f32 %v3400_v36, 0.0 }
 0x348   : > { %v3472_v0 = vpack.c.bf16 %v3454_v56, %v3453_v54 }
 0x349   : > { %v3471_v20 = vpack.c.bf16 %v3452_v60, %v3451_v63  ;;  %v4457_v63 = vld [vmem:[%s4557_s8 + $0x50] sm:$0xff] }
 0x34a   : > { %v4245_v22 = vpop.f32.mrb[44].mxu1 }
 0x34b   : > { %v3421_v41 = vadd.f32 %v4245_v22, %v6161_v51  ;;  %v3412_v50 = vpop.f32.mrb[45].mxu1  ;;  %4273 = vmatprep.mubr.msk.bf16.mxu0 %vm2939_vm12, %v3471_v20  ;;  %v4458_v22 = vld [vmem:[%s4557_s8 + $0x40] sm:$0xff] }
 0x34c   : > { %v3413_v28 = vadd.f32 %v6161_v51, %v3412_v50  ;;  %v4246_v47 = vpop.f32.mrb[46].mxu1  ;;  %4274 = vmatmul.mubr.msk.bf16.gmra.mrb[40].mxu0 %vm2939_vm12, %v3472_v0 }
 0x34d   : > { %v3424_v7 = vadd.f32 %v4246_v47, %v6161_v51  ;;  %v3415_v19 = vpop.f32.mrb[47].mxu1  ;;  %v3457_v49 = vmax.f32 %v3421_v41, 0.0  ;;  %v4459_v47 = vld [vmem:[%s4557_s8 + $0x58] sm:$0xff] }
 0x34e   : > { %v3416_v40 = vadd.f32 %v6161_v51, %v3415_v19  ;;  %v3455_v61 = vmax.f32 %v3413_v28, 0.0 }
 0x34f   : > { %v3458_v29 = vmax.f32 %v3424_v7, 0.0 }
 0x350   : > { %v3456_v6 = vmax.f32 %v3416_v40, 0.0  ;;  %v4460_v40 = vld [vmem:[%s4557_s8 + $0x48] sm:$0xff] }
 0x351   : > { %v3474_v8 = vpack.c.bf16 %v3458_v29, %v3457_v49 }
 0x352   : > { %v3473_v13 = vpack.c.bf16 %v3456_v6, %v3455_v61 }
 0x354   : > { %4277 = vmatprep.mubr.msk.bf16.mxu0 %vm2939_vm12, %v3473_v13 }
 0x355   : > { %4278 = vmatmul.mubr.msk.bf16.gmra.mrb[44].mxu0 %vm2939_vm12, %v3474_v8 }
 0x395   : > { %v4251_v57 = vpop.f32.mrb[16].mxu0 }
 0x396   : > { %v3577_v51 = vadd.f32 %v4251_v57, %v6214_v27  ;;  %v3568_v9 = vpop.f32.mrb[17].mxu0 }
 0x397   : > { %v3569_v34 = vadd.f32 %v6214_v27, %v3568_v9  ;;  %v4252_v33 = vpop.f32.mrb[18].mxu0  ;;  %v4461_v9 = vld [vmem:[%s4557_s8 + $0x70] sm:$0xff] }
 0x398   : > { %v3697_v30 = vadd.f32 %v4449_v5, %v3577_v51  ;;  %v3580_v16 = vadd.f32 %v4252_v33, %v6214_v27  ;;  %v3571_v11 = vpop.f32.mrb[19].mxu0 }
 0x399   : > { %v3695_v3 = vadd.f32 %v4450_v39, %v3569_v34  ;;  %v3572_v4 = vadd.f32 %v6214_v27, %v3571_v11 }
 0x39a   : > { %v3729_v59 = vmax.f32 %v3697_v30, 0.0  ;;  %v3698_v25 = vadd.f32 %v4451_v55, %v3580_v16  ;;  %v4462_v30 = vld [vmem:[%s4557_s8 + $0x60] sm:$0xff]  ;;  %v4464_v55 = vld [vmem:[%s4557_s8 + $0x68] sm:$0xff] }
 0x39b   : > { %v3727_v23 = vmax.f32 %v3695_v3, 0.0  ;;  %v3696_v32 = vadd.f32 %v4452_v58, %v3572_v4  ;;  %v4463_v3 = vld [vmem:[%s4557_s8 + $0x78] sm:$0xff] }
 0x39c   : > { %3761 = vst.msk [vmem:[%s6225_s16 + $0x10] sm:$0xff] %vm343_vm0, %v3729_v59  ;;  %v3730_v43 = vmax.f32 %v3698_v25, 0.0 }
 0x39d   : > { %3759 = vst.msk [vmem:[%s6225_s16] sm:$0xff] %vm343_vm0, %v3727_v23  ;;  %v3728_v44 = vmax.f32 %v3696_v32, 0.0 }
 0x39e   : > { %3762 = vst.msk [vmem:[%s6225_s16 + $0x18] sm:$0xff] %vm343_vm0, %v3730_v43 }
 0x39f   : > { %3760 = vst.msk [vmem:[%s6225_s16 + $0x8] sm:$0xff] %vm343_vm0, %v3728_v44 }
 0x3d1   : > { %v4255_v21 = vpop.f32.mrb[20].mxu0 }
 0x3d2   : > { %v3593_v10 = vadd.f32 %v4255_v21, %v6214_v27  ;;  %v3584_v45 = vpop.f32.mrb[21].mxu0 }
 0x3d3   : > { %v3585_v35 = vadd.f32 %v6214_v27, %v3584_v45  ;;  %v4256_v37 = vpop.f32.mrb[22].mxu0  ;;  %v4465_v45 = vld [vmem:[%s4557_s8 + $0x90] sm:$0xff] }
 0x3d4   : > { %v3701_v15 = vadd.f32 %v4453_v31, %v3593_v10  ;;  %v3596_v14 = vadd.f32 %v4256_v37, %v6214_v27  ;;  %v3587_v53 = vpop.f32.mrb[23].mxu0 }
 0x3d5   : > { %v3699_v17 = vadd.f32 %v4454_v42, %v3585_v35  ;;  %v3588_v46 = vadd.f32 %v6214_v27, %v3587_v53 }
 0x3d6   : > { %v3733_v24 = vmax.f32 %v3701_v15, 0.0  ;;  %v3702_v26 = vadd.f32 %v4455_v38, %v3596_v14  ;;  %v4466_v15 = vld [vmem:[%s4557_s8 + $0x80] sm:$0xff]  ;;  %v4468_v38 = vld [vmem:[%s4557_s8 + $0x88] sm:$0xff] }
 0x3d7   : > { %v3731_v52 = vmax.f32 %v3699_v17, 0.0  ;;  %v3700_v48 = vadd.f32 %v4456_v1, %v3588_v46  ;;  %v4467_v17 = vld [vmem:[%s4557_s8 + $0x98] sm:$0xff] }
 0x3d8   : > { %3765 = vst.msk [vmem:[%s6225_s16 + $0x30] sm:$0xff] %vm343_vm0, %v3733_v24  ;;  %v3734_v62 = vmax.f32 %v3702_v26, 0.0 }
 0x3d9   : > { %3763 = vst.msk [vmem:[%s6225_s16 + $0x20] sm:$0xff] %vm343_vm0, %v3731_v52  ;;  %v3732_v12 = vmax.f32 %v3700_v48, 0.0 }
 0x3da   : > { %3766 = vst.msk [vmem:[%s6225_s16 + $0x38] sm:$0xff] %vm343_vm0, %v3734_v62 }
 0x3db   : > { %3764 = vst.msk [vmem:[%s6225_s16 + $0x28] sm:$0xff] %vm343_vm0, %v3732_v12 }
 0x3fd   : > { %v4259_v18 = vpop.f32.mrb[24].mxu0 }
 0x3fe   : > { %v3609_v2 = vadd.f32 %v4259_v18, %v6214_v27  ;;  %v3600_v36 = vpop.f32.mrb[25].mxu0 }
 0x3ff   : > { %v3601_v54 = vadd.f32 %v6214_v27, %v3600_v36  ;;  %v4260_v56 = vpop.f32.mrb[26].mxu0  ;;  %v4469_v36 = vld [vmem:[%s4557_s8 + $0xb0] sm:$0xff] }
 0x400   : > { %v3705_v60 = vadd.f32 %v4457_v63, %v3609_v2  ;;  %v3612_v0 = vadd.f32 %v4260_v56, %v6214_v27  ;;  %v3603_v20 = vpop.f32.mrb[27].mxu0 }
 0x401   : > { %v3703_v41 = vadd.f32 %v4458_v22, %v3601_v54  ;;  %v3604_v50 = vadd.f32 %v6214_v27, %v3603_v20 }
 0x402   : > { %v3737_v28 = vmax.f32 %v3705_v60, 0.0  ;;  %v3706_v7 = vadd.f32 %v4459_v47, %v3612_v0  ;;  %v4470_v60 = vld [vmem:[%s4557_s8 + $0xa0] sm:$0xff]  ;;  %v4472_v47 = vld [vmem:[%s4557_s8 + $0xa8] sm:$0xff] }
 0x403   : > { %v3735_v19 = vmax.f32 %v3703_v41, 0.0  ;;  %v3704_v49 = vadd.f32 %v4460_v40, %v3604_v50  ;;  %v4471_v41 = vld [vmem:[%s4557_s8 + $0xb8] sm:$0xff] }
 0x404   : > { %3769 = vst.msk [vmem:[%s6225_s16 + $0x50] sm:$0xff] %vm343_vm0, %v3737_v28  ;;  %v3738_v29 = vmax.f32 %v3706_v7, 0.0 }
 0x405   : > { %3767 = vst.msk [vmem:[%s6225_s16 + $0x40] sm:$0xff] %vm343_vm0, %v3735_v19  ;;  %v3736_v61 = vmax.f32 %v3704_v49, 0.0 }
 0x406   : > { %3770 = vst.msk [vmem:[%s6225_s16 + $0x58] sm:$0xff] %vm343_vm0, %v3738_v29 }
 0x407   : > { %3768 = vst.msk [vmem:[%s6225_s16 + $0x48] sm:$0xff] %vm343_vm0, %v3736_v61  ;;  %v4263_v6 = vpop.f32.mrb[28].mxu0 }
 0x408   : > { %v3625_v8 = vadd.f32 %v4263_v6, %v6214_v27  ;;  %v3616_v13 = vpop.f32.mrb[29].mxu0 }
 0x409   : > { %v3617_v57 = vadd.f32 %v6214_v27, %v3616_v13  ;;  %v4264_v51 = vpop.f32.mrb[30].mxu0  ;;  %v4473_v13 = vld [vmem:[%s4557_s8 + $0xd0] sm:$0xff] }
 0x40a   : > { %v3709_v34 = vadd.f32 %v4461_v9, %v3625_v8  ;;  %v3628_v33 = vadd.f32 %v4264_v51, %v6214_v27  ;;  %v3619_v5 = vpop.f32.mrb[31].mxu0 }
 0x40b   : > { %v3707_v16 = vadd.f32 %v4462_v30, %v3617_v57  ;;  %v3620_v11 = vadd.f32 %v6214_v27, %v3619_v5 }
 0x40c   : > { %v3741_v39 = vmax.f32 %v3709_v34, 0.0  ;;  %v3710_v4 = vadd.f32 %v4463_v3, %v3628_v33  ;;  %v4474_v34 = vld [vmem:[%s4557_s8 + $0xc0] sm:$0xff]  ;;  %v4476_v3 = vld [vmem:[%s4557_s8 + $0xc8] sm:$0xff] }
 0x40d   : > { %v3739_v59 = vmax.f32 %v3707_v16, 0.0  ;;  %v3708_v25 = vadd.f32 %v4464_v55, %v3620_v11  ;;  %v4475_v16 = vld [vmem:[%s4557_s8 + $0xd8] sm:$0xff] }
 0x40e   : > { %3773 = vst.msk [vmem:[%s6225_s16 + $0x70] sm:$0xff] %vm343_vm0, %v3741_v39  ;;  %v3742_v23 = vmax.f32 %v3710_v4, 0.0 }
 0x40f   : > { %3771 = vst.msk [vmem:[%s6225_s16 + $0x60] sm:$0xff] %vm343_vm0, %v3739_v59  ;;  %v3740_v58 = vmax.f32 %v3708_v25, 0.0  ;;  %v4267_v32 = vpop.f32.mrb[32].mxu0 }
 0x410   : > { %3774 = vst.msk [vmem:[%s6225_s16 + $0x78] sm:$0xff] %vm343_vm0, %v3742_v23  ;;  %v3641_v43 = vadd.f32 %v4267_v32, %v6214_v27  ;;  %v3632_v44 = vpop.f32.mrb[33].mxu0 }
 0x411   : > { %3772 = vst.msk [vmem:[%s6225_s16 + $0x68] sm:$0xff] %vm343_vm0, %v3740_v58  ;;  %v3633_v21 = vadd.f32 %v6214_v27, %v3632_v44  ;;  %v4268_v10 = vpop.f32.mrb[34].mxu0  ;;  %v4477_v44 = vld [vmem:[%s4557_s8 + $0xf0] sm:$0xff] }
 0x412   : > { %v3713_v35 = vadd.f32 %v4465_v45, %v3641_v43  ;;  %v3644_v37 = vadd.f32 %v4268_v10, %v6214_v27  ;;  %v3635_v31 = vpop.f32.mrb[35].mxu0 }
 0x413   : > { %v3711_v14 = vadd.f32 %v4466_v15, %v3633_v21  ;;  %v3636_v53 = vadd.f32 %v6214_v27, %v3635_v31 }
 0x414   : > { %v3745_v42 = vmax.f32 %v3713_v35, 0.0  ;;  %v3714_v46 = vadd.f32 %v4467_v17, %v3644_v37  ;;  %v4478_v35 = vld [vmem:[%s4557_s8 + $0xe0] sm:$0xff]  ;;  %v4480_v17 = vld [vmem:[%s4557_s8 + $0xe8] sm:$0xff] }
 0x415   : > { %v3743_v24 = vmax.f32 %v3711_v14, 0.0  ;;  %v3712_v26 = vadd.f32 %v4468_v38, %v3636_v53  ;;  %v4479_v14 = vld [vmem:[%s4557_s8 + $0xf8] sm:$0xff] }
 0x416   : > { %3777 = vst.msk [vmem:[%s6225_s16 + $0x90] sm:$0xff] %vm343_vm0, %v3745_v42  ;;  %v3746_v52 = vmax.f32 %v3714_v46, 0.0 }
 0x417   : > { %3775 = vst.msk [vmem:[%s6225_s16 + $0x80] sm:$0xff] %vm343_vm0, %v3743_v24  ;;  %v3744_v1 = vmax.f32 %v3712_v26, 0.0  ;;  %v4271_v48 = vpop.f32.mrb[36].mxu0 }
 0x418   : > { %3778 = vst.msk [vmem:[%s6225_s16 + $0x98] sm:$0xff] %vm343_vm0, %v3746_v52  ;;  %v3657_v62 = vadd.f32 %v4271_v48, %v6214_v27  ;;  %v3648_v12 = vpop.f32.mrb[37].mxu0 }
 0x419   : > { %3776 = vst.msk [vmem:[%s6225_s16 + $0x88] sm:$0xff] %vm343_vm0, %v3744_v1  ;;  %v3649_v18 = vadd.f32 %v6214_v27, %v3648_v12  ;;  %v4272_v2 = vpop.f32.mrb[38].mxu0 }
 0x41a   : > { %v3717_v54 = vadd.f32 %v4469_v36, %v3657_v62  ;;  %v3660_v56 = vadd.f32 %v4272_v2, %v6214_v27  ;;  %v3651_v63 = vpop.f32.mrb[39].mxu0 }
 0x41b   : > { %v3715_v0 = vadd.f32 %v4470_v60, %v3649_v18  ;;  %v3652_v20 = vadd.f32 %v6214_v27, %v3651_v63 }
 0x41c   : > { %v3749_v22 = vmax.f32 %v3717_v54, 0.0  ;;  %v3718_v50 = vadd.f32 %v4471_v41, %v3660_v56 }
 0x41d   : > { %v3747_v28 = vmax.f32 %v3715_v0, 0.0  ;;  %v3716_v7 = vadd.f32 %v4472_v47, %v3652_v20 }
 0x41e   : > { %3781 = vst.msk [vmem:[%s6225_s16 + $0xb0] sm:$0xff] %vm343_vm0, %v3749_v22  ;;  %v3750_v19 = vmax.f32 %v3718_v50, 0.0 }
 0x41f   : > { %3779 = vst.msk [vmem:[%s6225_s16 + $0xa0] sm:$0xff] %vm343_vm0, %v3747_v28  ;;  %v3748_v40 = vmax.f32 %v3716_v7, 0.0  ;;  %v4275_v49 = vpop.f32.mrb[40].mxu0 }
 0x420   : > { %3782 = vst.msk [vmem:[%s6225_s16 + $0xb8] sm:$0xff] %vm343_vm0, %v3750_v19  ;;  %v3673_v29 = vadd.f32 %v4275_v49, %v6214_v27  ;;  %v3664_v61 = vpop.f32.mrb[41].mxu0 }
 0x421   : > { %3780 = vst.msk [vmem:[%s6225_s16 + $0xa8] sm:$0xff] %vm343_vm0, %v3748_v40  ;;  %v3665_v6 = vadd.f32 %v6214_v27, %v3664_v61  ;;  %v4276_v8 = vpop.f32.mrb[42].mxu0 }
 0x422   : > { %v3721_v57 = vadd.f32 %v4473_v13, %v3673_v29  ;;  %v3676_v51 = vadd.f32 %v4276_v8, %v6214_v27  ;;  %v3667_v9 = vpop.f32.mrb[43].mxu0 }
 0x423   : > { %v3719_v33 = vadd.f32 %v4474_v34, %v3665_v6  ;;  %v3668_v5 = vadd.f32 %v6214_v27, %v3667_v9 }
 0x424   : > { %v3753_v30 = vmax.f32 %v3721_v57, 0.0  ;;  %v3722_v11 = vadd.f32 %v4475_v16, %v3676_v51 }
 0x425   : > { %v3751_v39 = vmax.f32 %v3719_v33, 0.0  ;;  %v3720_v4 = vadd.f32 %v4476_v3, %v3668_v5 }
 0x426   : > { %3785 = vst.msk [vmem:[%s6225_s16 + $0xd0] sm:$0xff] %vm343_vm0, %v3753_v30  ;;  %v3754_v59 = vmax.f32 %v3722_v11, 0.0 }
 0x427   : > { %3783 = vst.msk [vmem:[%s6225_s16 + $0xc0] sm:$0xff] %vm343_vm0, %v3751_v39  ;;  %v3752_v55 = vmax.f32 %v3720_v4, 0.0 }
 0x428   : > { %3786 = vst.msk [vmem:[%s6225_s16 + $0xd8] sm:$0xff] %vm343_vm0, %v3754_v59  ;;  %v4279_v25 = vpop.f32.mrb[44].mxu0 }
 0x429   : > { %3784 = vst.msk [vmem:[%s6225_s16 + $0xc8] sm:$0xff] %vm343_vm0, %v3752_v55  ;;  %v3689_v23 = vadd.f32 %v4279_v25, %v6214_v27  ;;  %v3680_v58 = vpop.f32.mrb[45].mxu0 }
 0x42a   : > { %v3681_v32 = vadd.f32 %v6214_v27, %v3680_v58  ;;  %v4280_v43 = vpop.f32.mrb[46].mxu0 }
 0x42b   : > { %v3725_v21 = vadd.f32 %v4477_v44, %v3689_v23  ;;  %v3692_v10 = vadd.f32 %v4280_v43, %v6214_v27  ;;  %v3683_v45 = vpop.f32.mrb[47].mxu0 }
 0x42c   : > { %v3723_v37 = vadd.f32 %v4478_v35, %v3681_v32  ;;  %v3684_v31 = vadd.f32 %v6214_v27, %v3683_v45 }
 0x42d   : > { %v3757_v15 = vmax.f32 %v3725_v21, 0.0  ;;  %v3726_v53 = vadd.f32 %v4479_v14, %v3692_v10 }
 0x42e   : > { %v3755_v42 = vmax.f32 %v3723_v37, 0.0  ;;  %v3724_v46 = vadd.f32 %v4480_v17, %v3684_v31 }
 0x42f   : > { %3789 = vst.msk [vmem:[%s6225_s16 + $0xf0] sm:$0xff] %vm343_vm0, %v3757_v15  ;;  %v3758_v24 = vmax.f32 %v3726_v53, 0.0 }
 0x430   : > { %3787 = vst.msk [vmem:[%s6225_s16 + $0xe0] sm:$0xff] %vm343_vm0, %v3755_v42  ;;  %v3756_v38 = vmax.f32 %v3724_v46, 0.0 }
 0x431   : > { %3790 = vst.msk [vmem:[%s6225_s16 + $0xf8] sm:$0xff] %vm343_vm0, %v3758_v24 }
 0x432   : > { %3788 = vst.msk [vmem:[%s6225_s16 + $0xe8] sm:$0xff] %vm343_vm0, %v3756_v38 }
 0x433 PF: > { %s17_s24 = sadd.s32 1, %s4487_s24  }
 0x434   : > { %p14_p4 = scmp.ge.s32.totalorder %s17_s24, 4  }
 0x436   :  { %16 = sbr.rel (!%p14_p4) target bundleno = 1 (0x1), region = 81 }

</bundles_post_ra>
